<compile_context>
chip_gen: v5e
topology: v5e:2x2
jax: 0.10.0
libtpu: 0.0.40
codegen_flags: <defaults>
</compile_context>

<pallas_src>
import jax
import jax.numpy as jnp
from jax.experimental import pallas as pl
from jax.experimental.pallas import tpu as pltpu

H = W = 32
C_IN = 3
FLAT = H * W                 # 1024 (spatial; conv has a single out channel)
FLAT_IN = C_IN * FLAT        # 3072 (1x1 conv folded into fc1's K dim)
HIDDEN = 256
NUM_CLASSES = 100
N_PAD = 128                  # class dim padded to one full lane width


def _round_up(x, m):
    return -(-x // m) * m


def _device_tiling_caps():
    """(max_tm, min_tiles, vmem_limit_bytes) for the local TPU generation."""
    kind = jax.devices()[0].device_kind.lower()
    if "v7" in kind or "7x" in kind:
        # 64 MiB VMEM per TC, 2 TCs per chip -> want >=2 grid steps so
        # dimension_semantics=("parallel",) can shard batch across both cores.
        return 1024, 2, 48 * 1024 * 1024
    if "v5" in kind or "v6" in kind:
        # 128 MiB physical VMEM, single TC per chip.
        return 1024, 1, 64 * 1024 * 1024
    # Unknown / older generation: stay inside the default scoped-VMEM limit.
    return 256, 1, None


def fc2_kernel(x_ref, w1_ref, b1_ref, w2_ref, b2_ref, out_ref):
    # x_ref  : (TM, 3072)  f32   -- flattened (C*H*W) input tile
    # w1_ref : (3072, 256) bf16  -- fc1 weight with the 1x1 conv folded in
    # b1_ref : (1, 256)    f32
    # w2_ref : (256, 128)  bf16  -- fc2 weight, class dim zero-padded to 128
    # b2_ref : (1, 128)    f32
    # out_ref: (TM, 128)   bf16
    x = x_ref[...].astype(jnp.bfloat16)            # in-kernel cast, VMEM-only
    h = jnp.dot(x, w1_ref[...], preferred_element_type=jnp.float32)
    h = jnp.maximum(h + b1_ref[...], 0.0)          # f32 bias + ReLU
    o = jnp.dot(h.astype(jnp.bfloat16), w2_ref[...],
                preferred_element_type=jnp.float32)
    out_ref[...] = (o + b2_ref[...]).astype(out_ref.dtype)   # lane-dense bf16 store


def prepare_params(params):
    """One-time weight prep (hoisted out of the per-call forward).

    conv(x)[b, hw] = sum_c cw[c] * x[b, c, hw] + cb, so with
    x_flat[b, c*1024 + hw] = x[b, c, hw]:
        w1_eff[c*1024 + hw, :] = cw[c] * w1[hw, :]
        b1_eff                 = b1 + cb * sum_hw w1[hw, :]
    and the fc2 class dim is zero-padded 100 -> 128 for unmasked lane stores.
    """
    cw, cb, w1, b1, w2, b2 = params
    w1_eff = (cw[:, None, None] * w1[None, :, :]).reshape(FLAT_IN, HIDDEN)
    b1_eff = b1 + cb[0] * jnp.sum(w1, axis=0, keepdims=True)
    w2_pad = jnp.zeros((HIDDEN, N_PAD), w2.dtype).at[:, :NUM_CLASSES].set(w2)
    b2_pad = jnp.zeros((1, N_PAD), b2.dtype).at[:, :NUM_CLASSES].set(b2)
    return (w1_eff.astype(jnp.bfloat16), b1_eff.astype(jnp.float32),
            w2_pad.astype(jnp.bfloat16), b2_pad.astype(jnp.float32))


def fc2_forward(x_nchw, prepared):
    w1_eff, b1_eff, w2_pad, b2_pad = prepared
    B = x_nchw.shape[0]
    x_flat = x_nchw.reshape(B, FLAT_IN)            # free reshape of NCHW layout

    max_tm, min_tiles, vmem_limit = _device_tiling_caps()

    # Tiling policy: balanced tiles, tm a multiple of 16, batch padding kept to
    # (at most) one extra row-of-16 per tile, and >= min_tiles grid steps.
    b16 = _round_up(max(B, 16), 16)
    n_tiles = max(pl.cdiv(b16, max_tm), min_tiles)
    n_tiles = max(min(n_tiles, b16 // 16), 1)      # every tile >= 16 rows
    tm = _round_up(pl.cdiv(b16, n_tiles), 16)
    n_tiles = pl.cdiv(b16, tm)
    b_pad = n_tiles * tm
    if b_pad != B:
        x_flat = jnp.pad(x_flat, ((0, b_pad - B), (0, 0)))

    compiler_kwargs = dict(dimension_semantics=("parallel",))
    if vmem_limit is not None:
        compiler_kwargs["vmem_limit_bytes"] = vmem_limit

    out = pl.pallas_call(
        fc2_kernel,
        out_shape=jax.ShapeDtypeStruct((b_pad, N_PAD), jnp.bfloat16),
        grid=(n_tiles,),
        in_specs=[
            pl.BlockSpec((tm, FLAT_IN), lambda i: (i, 0)),        # x tile (f32)
            pl.BlockSpec((FLAT_IN, HIDDEN), lambda i: (0, 0)),    # w1 (resident)
            pl.BlockSpec((1, HIDDEN), lambda i: (0, 0)),          # b1 (resident)
            pl.BlockSpec((HIDDEN, N_PAD), lambda i: (0, 0)),      # w2 (resident)
            pl.BlockSpec((1, N_PAD), lambda i: (0, 0)),           # b2 (resident)
        ],
        out_specs=pl.BlockSpec((tm, N_PAD), lambda i: (i, 0)),
        compiler_params=pltpu.CompilerParams(**compiler_kwargs),
    )(x_flat, w1_eff, b1_eff, w2_pad, b2_pad)
    return out[:B, :NUM_CLASSES]


def init_params(key):
    """Deterministic init mirroring PyTorch default shapes (synthetic weights)."""
    k = jax.random.split(key, 6)
    # conv: weight (1,3,1,1) -> (3,), bias (1,)
    bound_c = 1.0 / jnp.sqrt(3.0)
    cw = jax.random.uniform(k[0], (C_IN,), jnp.float32, -bound_c, bound_c)
    cb = jax.random.uniform(k[1], (1,), jnp.float32, -bound_c, bound_c)
    # fc1: PyTorch weight (256, 1024); stored transposed (1024, 256)
    bound_1 = 1.0 / jnp.sqrt(float(FLAT))
    w1 = jax.random.uniform(k[2], (FLAT, HIDDEN), jnp.float32, -bound_1, bound_1)
    b1 = jax.random.uniform(k[3], (1, HIDDEN), jnp.float32, -bound_1, bound_1)
    # fc2: PyTorch weight (100, 256); stored transposed (256, 100)
    bound_2 = 1.0 / jnp.sqrt(float(HIDDEN))
    w2 = jax.random.uniform(k[4], (HIDDEN, NUM_CLASSES), jnp.float32, -bound_2, bound_2)
    b2 = jax.random.uniform(k[5], (1, NUM_CLASSES), jnp.float32, -bound_2, bound_2)
    return (cw, cb, w1, b1, w2, b2)


def fc2_reference(x_nchw, params):
    """Plain-JAX f32 reference of the original module's forward."""
    cw, cb, w1, b1, w2, b2 = params
    B = x_nchw.shape[0]
    conv = jnp.einsum('bchw,c->bhw', x_nchw, cw) + cb[0]       # (B,32,32)
    flat = conv.reshape(B, FLAT)
    h = jnp.maximum(flat @ w1 + b1, 0.0)
    return h @ w2 + b2


if __name__ == "__main__":
    key = jax.random.PRNGKey(0)
    kx, kp = jax.random.split(key)
    x = jax.random.normal(kx, (2, C_IN, H, W), jnp.float32)    # NCHW, like PyTorch
    params = init_params(kp)

    # One-time weight prep (conv folding, padding, bf16 cast) — not per call.
    prepared = jax.tree_util.tree_map(jax.block_until_ready, prepare_params(params))

    out = fc2_forward(x, prepared)
    out = jax.block_until_ready(out)

    ref = fc2_reference(x, params)
    assert out.shape == (2, NUM_CLASSES)
    # bf16 matmul operands + bf16 output -> tolerance looser than pure f32.
    err = jnp.max(jnp.abs(out.astype(jnp.float32) - ref))
    assert jnp.allclose(out.astype(jnp.float32), ref, atol=2e-2, rtol=2e-2), (
        f"mismatch vs JAX reference, max abs err = {err}")
    print("KERNEL_OK")
</pallas_src>

<mosaic_0001>
module attributes {stable_mosaic.version = 11 : i64} {
  func.func @fc2_kernel(%arg0: i32, %arg1: memref<16x3072xf32, #tpu.memory_space<vmem>>, %arg2: memref<3072x256xbf16, #tpu.memory_space<vmem>>, %arg3: memref<1x256xf32, #tpu.memory_space<vmem>>, %arg4: memref<256x128xbf16, #tpu.memory_space<vmem>>, %arg5: memref<1x128xf32, #tpu.memory_space<vmem>>, %arg6: memref<16x128xbf16, #tpu.memory_space<vmem>>) attributes {dimension_semantics = [#tpu.dimension_semantics<parallel>], iteration_bounds = array<i64: 1>, scalar_prefetch = 0 : i64, scratch_operands = 0 : i64, tpu.core_type = #tpu.core_type<tc>, window_params = [{transform_indices = @transform_0, window_bounds = array<i64: 16, 3072>}, {pipeline_mode = #tpu.pipeline_mode<synchronous>, transform_indices = @transform_1, window_bounds = array<i64: 3072, 256>}, {pipeline_mode = #tpu.pipeline_mode<synchronous>, transform_indices = @transform_2, window_bounds = array<i64: 1, 256>}, {pipeline_mode = #tpu.pipeline_mode<synchronous>, transform_indices = @transform_3, window_bounds = array<i64: 256, 128>}, {pipeline_mode = #tpu.pipeline_mode<synchronous>, transform_indices = @transform_4, window_bounds = array<i64: 1, 128>}, {transform_indices = @transform_5, window_bounds = array<i64: 16, 128>}]} {
    %c0 = arith.constant 0 : index
    %c0_0 = arith.constant 0 : index
    %0 = vector.load %arg1[%c0, %c0_0] : memref<16x3072xf32, #tpu.memory_space<vmem>>, vector<16x3072xf32>
    %1 = arith.truncf %0 : vector<16x3072xf32> to vector<16x3072xbf16>
    %c0_1 = arith.constant 0 : index
    %c0_2 = arith.constant 0 : index
    %2 = vector.load %arg2[%c0_1, %c0_2] : memref<3072x256xbf16, #tpu.memory_space<vmem>>, vector<3072x256xbf16>
    %cst = arith.constant dense<0.000000e+00> : vector<16x256xf32>
    %3 = tpu.matmul %1, %2, %cst {dimension_numbers = #tpu.dot_dimension_numbers<[1], [0], [0], [1], [0, 0, 1, 1], [], []>} : vector<16x3072xbf16>, vector<3072x256xbf16>, vector<16x256xf32> -> vector<16x256xf32>
    %c0_3 = arith.constant 0 : index
    %c0_4 = arith.constant 0 : index
    %4 = vector.load %arg3[%c0_3, %c0_4] : memref<1x256xf32, #tpu.memory_space<vmem>>, vector<1x256xf32>
    %5 = vector.broadcast %4 : vector<1x256xf32> to vector<16x256xf32>
    %6 = arith.addf %3, %5 : vector<16x256xf32>
    %cst_5 = arith.constant 0.000000e+00 : f32
    %7 = vector.broadcast %cst_5 : f32 to vector<16x256xf32>
    %8 = arith.maximumf %6, %7 : vector<16x256xf32>
    %9 = arith.truncf %8 : vector<16x256xf32> to vector<16x256xbf16>
    %c0_6 = arith.constant 0 : index
    %c0_7 = arith.constant 0 : index
    %10 = vector.load %arg4[%c0_6, %c0_7] : memref<256x128xbf16, #tpu.memory_space<vmem>>, vector<256x128xbf16>
    %cst_8 = arith.constant dense<0.000000e+00> : vector<16x128xf32>
    %11 = tpu.matmul %9, %10, %cst_8 {dimension_numbers = #tpu.dot_dimension_numbers<[1], [0], [0], [1], [0, 0, 1, 1], [], []>} : vector<16x256xbf16>, vector<256x128xbf16>, vector<16x128xf32> -> vector<16x128xf32>
    %c0_9 = arith.constant 0 : index
    %c0_10 = arith.constant 0 : index
    %12 = vector.load %arg5[%c0_9, %c0_10] : memref<1x128xf32, #tpu.memory_space<vmem>>, vector<1x128xf32>
    %13 = vector.broadcast %12 : vector<1x128xf32> to vector<16x128xf32>
    %14 = arith.addf %11, %13 : vector<16x128xf32>
    %15 = arith.truncf %14 : vector<16x128xf32> to vector<16x128xbf16>
    %c0_11 = arith.constant 0 : index
    %c0_12 = arith.constant 0 : index
    %16 = vector.load %arg6[%c0_11, %c0_12] : memref<16x128xbf16, #tpu.memory_space<vmem>>, vector<16x128xbf16>
    tpu.vector_store %arg6[%c0_11, %c0_12], %15 {strides = array<i32>} : memref<16x128xbf16, #tpu.memory_space<vmem>>, vector<16x128xbf16>,
    return
  }
  func.func @transform_0(%arg0: i32) -> (i32, i32) {
    %c0_i32 = arith.constant 0 : i32
    %c0_i32_0 = arith.constant 0 : i32
    return %arg0, %c0_i32 : i32, i32
  }
  func.func @transform_1(%arg0: i32) -> (i32, i32) {
    %c0_i32 = arith.constant 0 : i32
    %c0_i32_0 = arith.constant 0 : i32
    %c0_i32_1 = arith.constant 0 : i32
    return %c0_i32, %c0_i32_0 : i32, i32
  }
  func.func @transform_2(%arg0: i32) -> (i32, i32) {
    %c0_i32 = arith.constant 0 : i32
    %c0_i32_0 = arith.constant 0 : i32
    %c0_i32_1 = arith.constant 0 : i32
    return %c0_i32, %c0_i32_0 : i32, i32
  }
  func.func @transform_3(%arg0: i32) -> (i32, i32) {
    %c0_i32 = arith.constant 0 : i32
    %c0_i32_0 = arith.constant 0 : i32
    %c0_i32_1 = arith.constant 0 : i32
    return %c0_i32, %c0_i32_0 : i32, i32
  }
  func.func @transform_4(%arg0: i32) -> (i32, i32) {
    %c0_i32 = arith.constant 0 : i32
    %c0_i32_0 = arith.constant 0 : i32
    %c0_i32_1 = arith.constant 0 : i32
    return %c0_i32, %c0_i32_0 : i32, i32
  }
  func.func @transform_5(%arg0: i32) -> (i32, i32) {
    %c0_i32 = arith.constant 0 : i32
    %c0_i32_0 = arith.constant 0 : i32
    return %arg0, %c0_i32 : i32, i32
  }
}

</mosaic_0001>

<bundles_post_ra>
// kernel: tpu_custom_call.1
= control target key start
LH: loop header
LB: loop body
LE: loop exit
PB: predicated region body
PF: predicated region fallthrough
CT: control target
= control target key end

     0   :  { %10 = vsyncpa [#allocation3], 0  ;;  %s5781_s0 = inlined_call_operand.hbm [shape: f32[16,3072], index: 0, kind: input, shape index: {}]   ;;  %s5782_s1 = inlined_call_operand.hbm [shape: bf16[3072,256], index: 1, kind: input, shape index: {}]   ;;  %s5783_s2 = inlined_call_operand.hbm [shape: f32[1,256], index: 2, kind: input, shape index: {}]   ;;  %s5784_s3 = inlined_call_operand.hbm [shape: bf16[256,128], index: 3, kind: input, shape index: {}]   ;;  %s5785_s4 = inlined_call_operand.hbm [shape: f32[1,128], index: 4, kind: input, shape index: {}]   ;;  %s5786_s5 = inlined_call_operand.hbm [shape: bf16[16,128], index: 5, kind: output, shape index: {}]  }
   0x1   :  { %11 = vsyncpa [#allocation6], 0 }
   0x2   :  { %12 = vsyncpa [#allocation9], 0  ;;  %s31_s20 = sshll.u32 %s5782_s1, 4  ;;  %s32_s20 = int_to_ptr.hbm [resolvable:$true] %s31_s20 }
   0x3   :  { %13 = vsyncpa [#allocation4], 0  ;;  %s5510_s21 = smov [#allocation5]   ;;  %s55_s25 = sshll.u32 %s5784_s3, 4  ;;  %s56_s25 = int_to_ptr.hbm [resolvable:$true] %s55_s25 }
   0x4   :  { %s33_s22 = sshll.u32 %s5510_s21, 4  ;;  %s5511_s26 = smov 128   ;;  %s34_s22 = int_to_ptr.vmem [resolvable:$true] %s33_s22 }
   0x5   :  { %s5512_s27 = smov 8   ;;  %s5513_s28 = smov [#allocation8]  }
   0x6   :  { %39 = dma.hbm_to_vmem [thread:$0]  %s32_s20, 49152, %s34_s22, [#allocation6], %s5511_s26, %s5511_s26, %s5512_s27  }
   0x7   :  { %s57_s29 = sshll.u32 %s5513_s28, 4  ;;  %s5514_s30 = smov 64   ;;  %s58_s29 = int_to_ptr.vmem [resolvable:$true] %s57_s29 }
   0x8   :  { %s5515_s6 = smov 4   ;;  %s18_s8 = sshll.u32 %s5781_s0, 4  ;;  %s19_s8 = int_to_ptr.hbm [resolvable:$true] %s18_s8 }
   0x9   :  { %63 = dma.hbm_to_vmem [thread:$0]  %s56_s25, 2048, %s58_s29, [#allocation9], %s5514_s30, %s5514_s30, %s5515_s6  }
   0xa   :  { %s5516_s9 = smov [#allocation2]   ;;  %s45_s12 = sshll.u32 %s5783_s2, 4  ;;  %s46_s12 = int_to_ptr.hbm [resolvable:$true] %s45_s12 }
   0xb   :  { %s20_s3 = sshll.u32 %s5516_s9, 4  ;;  %s5517_s13 = smov 3072   ;;  %s21_s3 = int_to_ptr.vmem [resolvable:$true] %s20_s3 }
   0xc   :  { %s5518_s14 = smov 192   ;;  %s5519_s15 = smov [#allocation7]  }
   0xd   :  { %26 = dma.hbm_to_vmem [thread:$0]  %s19_s8, 6144, %s21_s3, [#allocation3], %s5517_s13, %s5517_s13, %s5518_s14  }
   0xe   :  { %s47_s16 = sshll.u32 %s5519_s15, 4  ;;  %s69_s19 = sshll.u32 %s5785_s4, 4  ;;  %s48_s16 = int_to_ptr.vmem [resolvable:$true] %s47_s16  ;;  %s70_s19 = int_to_ptr.hbm [resolvable:$true] %s69_s19 }
   0xf   :  { %50 = dma.hbm_to_vmem [thread:$0]  %s46_s12, 32, %s48_s16, [#allocation6]  }
  0x10   :  { %s5520_s0 = smov [#allocation10]  }
  0x11   :  { %s71_s20 = sshll.u32 %s5520_s0, 4  ;;  %s72_s20 = int_to_ptr.vmem [resolvable:$true] %s71_s20 }
  0x12   :  { %74 = dma.hbm_to_vmem [thread:$0]  %s70_s19, 16, %s72_s20, [#allocation9]  }
  0x13   :  { %5502 = dma.done.wait [#allocation3], 6144  }
  0x14   :  { %5503 = vsyncadd [#allocation3], 4294961152 }
  0x15   :  { %5504 = dma.done.wait [#allocation6], 49184  }
  0x16   :  { %5505 = vsyncadd [#allocation6], 4294918112 }
  0x17   :  { %5506 = dma.done.wait [#allocation9], 2064  }
  0x18   :  { %5507 = vsyncadd [#allocation9], 4294965232  ;;  %v3398_v0 = vld [vmem:[#allocation5 + $0x70] sm:$0xf]  ;;  %v4955_v1 = vld [vmem:[#allocation5 + $0x74] sm:$0xf0] }
  0x19   :  { %v3462_v2 = vld [vmem:[#allocation5 + $0xf0] sm:$0xf]  ;;  %v3399_v3 = vor.u32 %v4955_v1, %v3398_v0  ;;  %v4971_v4 = vld [vmem:[#allocation5 + $0xf4] sm:$0xf0]  ;;  %v3390_v11 = vld [vmem:[#allocation5 + $0x60] sm:$0xf] }
  0x1a   :  { %v3526_v5 = vld [vmem:[#allocation5 + $0x170] sm:$0xf]  ;;  %v4987_v6 = vld [vmem:[#allocation5 + $0x174] sm:$0xf0]  ;;  %v3463_v7 = vor.u32 %v4971_v4, %v3462_v2  ;;  %v4953_v13 = vld [vmem:[#allocation5 + $0x64] sm:$0xf0] }
  0x1b   :  { %v3527_v8 = vor.u32 %v4987_v6, %v3526_v5  ;;  %v3590_v9 = vld [vmem:[#allocation5 + $0x1f0] sm:$0xf]  ;;  %v5003_v10 = vld [vmem:[#allocation5 + $0x1f4] sm:$0xf0]  ;;  %2477 = vmatpush.bf16.msra.mxu0 %v3399_v3  ;;  %v3454_v14 = vld [vmem:[#allocation5 + $0xe0] sm:$0xf]  ;;  %v3391_v16 = vor.u32 %v4953_v13, %v3390_v11 }
  0x1c   :  { %v3591_v12 = vor.u32 %v5003_v10, %v3590_v9  ;;  %v4969_v15 = vld [vmem:[#allocation5 + $0xe4] sm:$0xf0]  ;;  %2491 = vmatpush.bf16.msra.mxu1 %v3463_v7  ;;  %v3518_v18 = vld [vmem:[#allocation5 + $0x160] sm:$0xf]  ;;  %v3382_v23 = vld [vmem:[#allocation5 + $0x50] sm:$0xf] }
  0x1d   :  { %2505 = vmatpush.bf16.msra.mxu2 %v3527_v8  ;;  %v3455_v17 = vor.u32 %v4969_v15, %v3454_v14  ;;  %v4985_v19 = vld [vmem:[#allocation5 + $0x164] sm:$0xf0]  ;;  %v3582_v20 = vld [vmem:[#allocation5 + $0x1e0] sm:$0xf]  ;;  %v4951_v24 = vld [vmem:[#allocation5 + $0x54] sm:$0xf0] }
  0x1e   :  { %2519 = vmatpush.bf16.msra.mxu3 %v3591_v12  ;;  %v3519_v21 = vor.u32 %v4985_v19, %v3518_v18  ;;  %v5001_v22 = vld [vmem:[#allocation5 + $0x1e4] sm:$0xf0]  ;;  %v3446_v26 = vld [vmem:[#allocation5 + $0xd0] sm:$0xf]  ;;  %v4967_v27 = vld [vmem:[#allocation5 + $0xd4] sm:$0xf0]  ;;  %v3383_v29 = vor.u32 %v4951_v24, %v3382_v23 }
  0x1f   :  { %v3583_v25 = vor.u32 %v5001_v22, %v3582_v20  ;;  %v3510_v28 = vld [vmem:[#allocation5 + $0x150] sm:$0xf]  ;;  %2478 = vmatpush.bf16.msra.mxu0 %v3391_v16  ;;  %v4983_v30 = vld [vmem:[#allocation5 + $0x154] sm:$0xf0]  ;;  %v3447_v33 = vor.u32 %v4967_v27, %v3446_v26  ;;  %v3374_v35 = vld [vmem:[#allocation5 + $0x40] sm:$0xf] }
  0x20   :  { %v3574_v31 = vld [vmem:[#allocation5 + $0x1d0] sm:$0xf]  ;;  %v4999_v32 = vld [vmem:[#allocation5 + $0x1d4] sm:$0xf0]  ;;  %2492 = vmatpush.bf16.msra.mxu1 %v3455_v17  ;;  %v3511_v34 = vor.u32 %v4983_v30, %v3510_v28  ;;  %v4949_v36 = vld [vmem:[#allocation5 + $0x44] sm:$0xf0] }
  0x21   :  { %2506 = vmatpush.bf16.msra.mxu2 %v3519_v21  ;;  %v3438_v37 = vld [vmem:[#allocation5 + $0xc0] sm:$0xf]  ;;  %v3575_v38 = vor.u32 %v4999_v32, %v3574_v31  ;;  %v4965_v39 = vld [vmem:[#allocation5 + $0xc4] sm:$0xf0]  ;;  %v3375_v44 = vor.u32 %v4949_v36, %v3374_v35  ;;  %v3366_v47 = vld [vmem:[#allocation5 + $0x30] sm:$0xf] }
  0x22   :  { %2520 = vmatpush.bf16.msra.mxu3 %v3583_v25  ;;  %v3502_v40 = vld [vmem:[#allocation5 + $0x140] sm:$0xf]  ;;  %v4981_v41 = vld [vmem:[#allocation5 + $0x144] sm:$0xf0]  ;;  %v3439_v45 = vor.u32 %v4965_v39, %v3438_v37  ;;  %v4947_v48 = vld [vmem:[#allocation5 + $0x34] sm:$0xf0] }
  0x23   :  { %v3566_v42 = vld [vmem:[#allocation5 + $0x1c0] sm:$0xf]  ;;  %v4997_v43 = vld [vmem:[#allocation5 + $0x1c4] sm:$0xf0]  ;;  %2479 = vmatpush.bf16.msra.mxu0 %v3383_v29  ;;  %v3503_v46 = vor.u32 %v4981_v41, %v3502_v40  ;;  %v3430_v49 = vld [vmem:[#allocation5 + $0xb0] sm:$0xf]  ;;  %v3367_v56 = vor.u32 %v4947_v48, %v3366_v47 }
  0x24   :  { %2493 = vmatpush.bf16.msra.mxu1 %v3447_v33  ;;  %v3567_v50 = vor.u32 %v4997_v43, %v3566_v42  ;;  %v4963_v51 = vld [vmem:[#allocation5 + $0xb4] sm:$0xf0]  ;;  %v3494_v52 = vld [vmem:[#allocation5 + $0x130] sm:$0xf]  ;;  %v3358_v59 = vld [vmem:[#allocation5 + $0x20] sm:$0xf] }
  0x25   :  { %2507 = vmatpush.bf16.msra.mxu2 %v3511_v34  ;;  %v4979_v53 = vld [vmem:[#allocation5 + $0x134] sm:$0xf0]  ;;  %v3558_v54 = vld [vmem:[#allocation5 + $0x1b0] sm:$0xf]  ;;  %v3431_v57 = vor.u32 %v4963_v51, %v3430_v49  ;;  %v4945_v60 = vld [vmem:[#allocation5 + $0x24] sm:$0xf0] }
  0x26   :  { %2521 = vmatpush.bf16.msra.mxu3 %v3575_v38  ;;  %v4995_v55 = vld [vmem:[#allocation5 + $0x1b4] sm:$0xf0]  ;;  %v3495_v58 = vor.u32 %v4979_v53, %v3494_v52  ;;  %v3422_v61 = vld [vmem:[#allocation5 + $0xa0] sm:$0xf]  ;;  %v4961_v63 = vld [vmem:[#allocation5 + $0xa4] sm:$0xf0]  ;;  %v3359_v4 = vor.u32 %v4945_v60, %v3358_v59 }
  0x27   :  { %2480 = vmatpush.bf16.msra.mxu0 %v3375_v44  ;;  %v3559_v62 = vor.u32 %v4995_v55, %v3558_v54  ;;  %v3486_v0 = vld [vmem:[#allocation5 + $0x120] sm:$0xf]  ;;  %v4977_v1 = vld [vmem:[#allocation5 + $0x124] sm:$0xf0]  ;;  %v3423_v5 = vor.u32 %v4961_v63, %v3422_v61  ;;  %v3350_v7 = vld [vmem:[#allocation5 + $0x10] sm:$0xf] }
  0x28   :  { %2494 = vmatpush.bf16.msra.mxu1 %v3439_v45  ;;  %v3550_v2 = vld [vmem:[#allocation5 + $0x1a0] sm:$0xf]  ;;  %v4993_v3 = vld [vmem:[#allocation5 + $0x1a4] sm:$0xf0]  ;;  %v3487_v6 = vor.u32 %v4977_v1, %v3486_v0  ;;  %v4943_v8 = vld [vmem:[#allocation5 + $0x14] sm:$0xf0] }
  0x29   :  { %2508 = vmatpush.bf16.msra.mxu2 %v3503_v46  ;;  %v3414_v9 = vld [vmem:[#allocation5 + $0x90] sm:$0xf]  ;;  %v3551_v10 = vor.u32 %v4993_v3, %v3550_v2  ;;  %v4959_v11 = vld [vmem:[#allocation5 + $0x94] sm:$0xf0]  ;;  %v3351_v16 = vor.u32 %v4943_v8, %v3350_v7  ;;  %v3342_v17 = vld [vmem:[#allocation5] sm:$0xf] }
  0x2a   :  { %2522 = vmatpush.bf16.msra.mxu3 %v3567_v50  ;;  %v3478_v12 = vld [vmem:[#allocation5 + $0x110] sm:$0xf]  ;;  %v4975_v13 = vld [vmem:[#allocation5 + $0x114] sm:$0xf0]  ;;  %v4941_v18 = vld [vmem:[#allocation5 + $0x4] sm:$0xf0]  ;;  %v3415_v19 = vor.u32 %v4959_v11, %v3414_v9 }
  0x2b   :  { %2481 = vmatpush.bf16.msra.mxu0 %v3367_v56  ;;  %v3542_v14 = vld [vmem:[#allocation5 + $0x190] sm:$0xf]  ;;  %v4991_v15 = vld [vmem:[#allocation5 + $0x194] sm:$0xf0]  ;;  %v3479_v20 = vor.u32 %v4975_v13, %v3478_v12  ;;  %v3406_v21 = vld [vmem:[#allocation5 + $0x80] sm:$0xf]  ;;  %v3343_v31 = vor.u32 %v4941_v18, %v3342_v17 }
  0x2c   :  { %2495 = vmatpush.bf16.msra.mxu1 %v3431_v57  ;;  %v4957_v22 = vld [vmem:[#allocation5 + $0x84] sm:$0xf0]  ;;  %v3470_v23 = vld [vmem:[#allocation5 + $0x100] sm:$0xf]  ;;  %v3543_v24 = vor.u32 %v4991_v15, %v3542_v14  ;;  %v3654_v28 = vld [vmem:[#allocation5 + $0x270] sm:$0xf] }
  0x2d   :  { %2509 = vmatpush.bf16.msra.mxu2 %v3495_v58  ;;  %v4973_v25 = vld [vmem:[#allocation5 + $0x104] sm:$0xf0]  ;;  %v3534_v26 = vld [vmem:[#allocation5 + $0x180] sm:$0xf]  ;;  %v5019_v29 = vld [vmem:[#allocation5 + $0x274] sm:$0xf0]  ;;  %v3407_v35 = vor.u32 %v4957_v22, %v3406_v21 }
  0x2e   :  { %2523 = vmatpush.bf16.msra.mxu3 %v3559_v62  ;;  %v4989_v27 = vld [vmem:[#allocation5 + $0x184] sm:$0xf0]  ;;  %v3718_v30 = vld [vmem:[#allocation5 + $0x2f0] sm:$0xf]  ;;  %v5035_v32 = vld [vmem:[#allocation5 + $0x2f4] sm:$0xf0]  ;;  %v3471_v36 = vor.u32 %v4973_v25, %v3470_v23  ;;  %v3655_v40 = vor.u32 %v5019_v29, %v3654_v28 }
  0x2f   :  { %2482 = vmatpush.bf16.msra.mxu0 %v3359_v4  ;;  %v3782_v33 = vld [vmem:[#allocation5 + $0x370] sm:$0xf]  ;;  %v5051_v34 = vld [vmem:[#allocation5 + $0x374] sm:$0xf0]  ;;  %v3535_v39 = vor.u32 %v4989_v27, %v3534_v26  ;;  %v3646_v41 = vld [vmem:[#allocation5 + $0x260] sm:$0xf]  ;;  %v3719_v43 = vor.u32 %v5035_v32, %v3718_v30 }
  0x30   :  { %2496 = vmatpush.bf16.msra.mxu1 %v3423_v5  ;;  %v3846_v37 = vld [vmem:[#allocation5 + $0x3f0] sm:$0xf]  ;;  %v5067_v38 = vld [vmem:[#allocation5 + $0x3f4] sm:$0xf0]  ;;  %v5017_v42 = vld [vmem:[#allocation5 + $0x264] sm:$0xf0]  ;;  %v3783_v44 = vor.u32 %v5051_v34, %v3782_v33 }
  0x31   :  { %2510 = vmatpush.bf16.msra.mxu2 %v3487_v6  ;;  %v3710_v45 = vld [vmem:[#allocation5 + $0x2e0] sm:$0xf]  ;;  %v5033_v46 = vld [vmem:[#allocation5 + $0x2e4] sm:$0xf0]  ;;  %v3847_v48 = vor.u32 %v5067_v38, %v3846_v37  ;;  %v97_v54 = vld [vmem:[#allocation2 + $0x10] sm:$0xff]  ;;  %v3647_v55 = vor.u32 %v5017_v42, %v3646_v41  ;;  %s5521_s2 = smov [#allocation11]  }
  0x32   :  { %2524 = vmatpush.bf16.msra.mxu3 %v3551_v10  ;;  %v3774_v47 = vld [vmem:[#allocation5 + $0x360] sm:$0xf]  ;;  %v5049_v49 = vld [vmem:[#allocation5 + $0x364] sm:$0xf0]  ;;  %v3638_v56 = vld [vmem:[#allocation5 + $0x250] sm:$0xf]  ;;  %v3711_v60 = vor.u32 %v5033_v46, %v3710_v45 }
  0x33   :  { %2483 = vmatpush.bf16.msra.mxu0 %v3351_v16  ;;  %v3838_v50 = vld [vmem:[#allocation5 + $0x3e0] sm:$0xf]  ;;  %v5065_v51 = vld [vmem:[#allocation5 + $0x3e4] sm:$0xf0]  ;;  %v5015_v57 = vld [vmem:[#allocation5 + $0x254] sm:$0xf0]  ;;  %v3775_v61 = vor.u32 %v5049_v49, %v3774_v47 }
  0x34   :  { %2497 = vmatpush.bf16.msra.mxu1 %v3415_v19  ;;  %v95_v52 = vld [vmem:[#allocation2] sm:$0xff]  ;;  %v121_v59 = vld [vmem:[#allocation2 + $0xd0] sm:$0xff]  ;;  %v5031_v63 = vld [vmem:[#allocation5 + $0x2d4] sm:$0xf0]  ;;  %v3839_v2 = vor.u32 %v5065_v51, %v3838_v50  ;;  %v3639_v9 = vor.u32 %v5015_v57, %v3638_v56  ;;  %s3323_s4 = sshll.u32 %s5521_s2, 4  ;;  %s3325_s23 = sshll.u32 %s5786_s5, 4  ;;  %s3324_s4 = int_to_ptr.vmem [resolvable:$true] %s3323_s4  ;;  %s3326_s23 = int_to_ptr.hbm [resolvable:$true] %s3325_s23 }
  0x35   :  { %2511 = vmatpush.bf16.msra.mxu2 %v3479_v20  ;;  %v119_v53 = vld [vmem:[#allocation2 + $0xc0] sm:$0xff]  ;;  %v3702_v62 = vld [vmem:[#allocation5 + $0x2d0] sm:$0xf]  ;;  %v5572_v1 = vpack.c.bf16 %v121_v59, %v97_v54  ;;  %v5047_v3 = vld [vmem:[#allocation5 + $0x354] sm:$0xf0] }
  0x36   :  { %2525 = vmatpush.bf16.msra.mxu3 %v3543_v24  ;;  %v5570_v58 = vpack.c.bf16 %v119_v53, %v95_v52  ;;  %v3766_v0 = vld [vmem:[#allocation5 + $0x350] sm:$0xf]  ;;  %v5063_v5 = vld [vmem:[#allocation5 + $0x3d4] sm:$0xf0]  ;;  %v96_v6 = vld [vmem:[#allocation2 + $0x8] sm:$0xff]  ;;  %v3703_v12 = vor.u32 %v5031_v63, %v3702_v62 }
  0x37   :  { %2484 = vmatpush.bf16.msra.mxu0 %v3343_v31  ;;  %v3830_v4 = vld [vmem:[#allocation5 + $0x3d0] sm:$0xf]  ;;  %v120_v7 = vld [vmem:[#allocation2 + $0xc8] sm:$0xff]  ;;  %v98_v8 = vld [vmem:[#allocation2 + $0x18] sm:$0xff]  ;;  %v3767_v13 = vor.u32 %v5047_v3, %v3766_v0 }
  0x38   :  { %2498 = vmatpush.bf16.msra.mxu1 %v3407_v35  ;;  %v5576_v10 = vpack.c.bf16 %v120_v7, %v96_v6  ;;  %v122_v11 = vld [vmem:[#allocation2 + $0xd8] sm:$0xff]  ;;  %v3630_v14 = vld [vmem:[#allocation5 + $0x240] sm:$0xf]  ;;  %v5013_v15 = vld [vmem:[#allocation5 + $0x244] sm:$0xf0]  ;;  %v3831_v18 = vor.u32 %v5063_v5, %v3830_v4 }
  0x39   :  { %2512 = vmatpush.bf16.msra.mxu2 %v3471_v36  ;;  %v3694_v16 = vld [vmem:[#allocation5 + $0x2c0] sm:$0xf]  ;;  %v5578_v17 = vpack.c.bf16 %v122_v11, %v98_v8  ;;  %v5029_v19 = vld [vmem:[#allocation5 + $0x2c4] sm:$0xf0]  ;;  %v3631_v24 = vor.u32 %v5013_v15, %v3630_v14  ;;  %v3622_v27 = vld [vmem:[#allocation5 + $0x230] sm:$0xf] }
  0x3a   :  { %2526 = vmatpush.bf16.msra.mxu3 %v3535_v39  ;;  %2485 = vmatmul.bf16.vlgmr.msra.gmra.mxu0 %v5570_v58  ;;  %v3758_v20 = vld [vmem:[#allocation5 + $0x340] sm:$0xf]  ;;  %v5045_v21 = vld [vmem:[#allocation5 + $0x344] sm:$0xf0]  ;;  %v3695_v25 = vor.u32 %v5029_v19, %v3694_v16  ;;  %v5011_v28 = vld [vmem:[#allocation5 + $0x234] sm:$0xf0] }
  0x3b   :  { %2533 = vmatpush.bf16.msrb.mxu0 %v3655_v40  ;;  %2499 = vmatmul.bf16.vlgmr.msra.gmra.mxu1 %v5576_v10  ;;  %v3822_v22 = vld [vmem:[#allocation5 + $0x3c0] sm:$0xf]  ;;  %v5061_v23 = vld [vmem:[#allocation5 + $0x3c4] sm:$0xf0]  ;;  %v3759_v26 = vor.u32 %v5045_v21, %v3758_v20  ;;  %v3686_v29 = vld [vmem:[#allocation5 + $0x2b0] sm:$0xf]  ;;  %v3623_v36 = vor.u32 %v5011_v28, %v3622_v27 }
  0x3c   :  { %2547 = vmatpush.bf16.msrb.mxu1 %v3719_v43  ;;  %2513 = vmatmul.bf16.vlgmr.msra.gmra.mxu2 %v5572_v1  ;;  %v3823_v30 = vor.u32 %v5061_v23, %v3822_v22  ;;  %v5027_v31 = vld [vmem:[#allocation5 + $0x2b4] sm:$0xf0]  ;;  %v3750_v32 = vld [vmem:[#allocation5 + $0x330] sm:$0xf]  ;;  %v3614_v39 = vld [vmem:[#allocation5 + $0x220] sm:$0xf] }
  0x3d   :  { %2561 = vmatpush.bf16.msrb.mxu2 %v3783_v44  ;;  %2527 = vmatmul.bf16.vlgmr.msra.gmra.mxu3 %v5578_v17  ;;  %v5043_v33 = vld [vmem:[#allocation5 + $0x334] sm:$0xf0]  ;;  %v3814_v34 = vld [vmem:[#allocation5 + $0x3b0] sm:$0xf]  ;;  %v3687_v37 = vor.u32 %v5027_v31, %v3686_v29  ;;  %v5009_v40 = vld [vmem:[#allocation5 + $0x224] sm:$0xf0] }
  0x3e   :  { %2575 = vmatpush.bf16.msrb.mxu3 %v3847_v48  ;;  %v5059_v35 = vld [vmem:[#allocation5 + $0x3b4] sm:$0xf0]  ;;  %v3751_v38 = vor.u32 %v5043_v33, %v3750_v32  ;;  %v3678_v41 = vld [vmem:[#allocation5 + $0x2a0] sm:$0xf]  ;;  %v5025_v43 = vld [vmem:[#allocation5 + $0x2a4] sm:$0xf0]  ;;  %v3615_v48 = vor.u32 %v5009_v40, %v3614_v39 }
  0x3f   :  { %2534 = vmatpush.bf16.msrb.mxu0 %v3647_v55  ;;  %v3815_v42 = vor.u32 %v5059_v35, %v3814_v34  ;;  %v3742_v44 = vld [vmem:[#allocation5 + $0x320] sm:$0xf]  ;;  %v5041_v45 = vld [vmem:[#allocation5 + $0x324] sm:$0xf0]  ;;  %v3606_v49 = vld [vmem:[#allocation5 + $0x210] sm:$0xf]  ;;  %v3679_v50 = vor.u32 %v5025_v43, %v3678_v41 }
  0x40   :  { %2548 = vmatpush.bf16.msrb.mxu1 %v3711_v60  ;;  %v3806_v46 = vld [vmem:[#allocation5 + $0x3a0] sm:$0xf]  ;;  %v5057_v47 = vld [vmem:[#allocation5 + $0x3a4] sm:$0xf0]  ;;  %v3743_v51 = vor.u32 %v5041_v45, %v3742_v44  ;;  %v5007_v52 = vld [vmem:[#allocation5 + $0x214] sm:$0xf0] }
  0x41   :  { %2562 = vmatpush.bf16.msrb.mxu2 %v3775_v61  ;;  %v3670_v53 = vld [vmem:[#allocation5 + $0x290] sm:$0xf]  ;;  %v5023_v54 = vld [vmem:[#allocation5 + $0x294] sm:$0xf0]  ;;  %v3807_v55 = vor.u32 %v5057_v47, %v3806_v46  ;;  %v3598_v61 = vld [vmem:[#allocation5 + $0x200] sm:$0xf]  ;;  %v3607_v63 = vor.u32 %v5007_v52, %v3606_v49 }
  0x42   :  { %2576 = vmatpush.bf16.msrb.mxu3 %v3839_v2  ;;  %v3734_v56 = vld [vmem:[#allocation5 + $0x310] sm:$0xf]  ;;  %v5039_v57 = vld [vmem:[#allocation5 + $0x314] sm:$0xf0]  ;;  %v5005_v62 = vld [vmem:[#allocation5 + $0x204] sm:$0xf0]  ;;  %v3671_v5 = vor.u32 %v5023_v54, %v3670_v53 }
  0x43   :  { %2535 = vmatpush.bf16.msrb.mxu0 %v3639_v9  ;;  %v3798_v59 = vld [vmem:[#allocation5 + $0x390] sm:$0xf]  ;;  %v5055_v60 = vld [vmem:[#allocation5 + $0x394] sm:$0xf0]  ;;  %v3662_v0 = vld [vmem:[#allocation5 + $0x280] sm:$0xf]  ;;  %v3735_v6 = vor.u32 %v5039_v57, %v3734_v56  ;;  %v3599_v19 = vor.u32 %v5005_v62, %v3598_v61 }
  0x44   :  { %2549 = vmatpush.bf16.msrb.mxu1 %v3703_v12  ;;  %v5021_v2 = vld [vmem:[#allocation5 + $0x284] sm:$0xf0]  ;;  %v3726_v3 = vld [vmem:[#allocation5 + $0x300] sm:$0xf]  ;;  %v3910_v9 = vld [vmem:[#allocation5 + $0x470] sm:$0xf]  ;;  %v3799_v11 = vor.u32 %v5055_v60, %v3798_v59 }
  0x45   :  { %2563 = vmatpush.bf16.msrb.mxu2 %v3767_v13  ;;  %v5037_v4 = vld [vmem:[#allocation5 + $0x304] sm:$0xf0]  ;;  %v3790_v7 = vld [vmem:[#allocation5 + $0x380] sm:$0xf]  ;;  %v5083_v12 = vld [vmem:[#allocation5 + $0x474] sm:$0xf0]  ;;  %v3663_v23 = vor.u32 %v5021_v2, %v3662_v0 }
  0x46   :  { %2577 = vmatpush.bf16.msrb.mxu3 %v3831_v18  ;;  %v5053_v8 = vld [vmem:[#allocation5 + $0x384] sm:$0xf0]  ;;  %v3974_v13 = vld [vmem:[#allocation5 + $0x4f0] sm:$0xf]  ;;  %v5099_v14 = vld [vmem:[#allocation5 + $0x4f4] sm:$0xf0]  ;;  %v3911_v29 = vor.u32 %v5083_v12, %v3910_v9 }
  0x47   :  { %2536 = vmatpush.bf16.msrb.mxu0 %v3631_v24  ;;  %v4038_v15 = vld [vmem:[#allocation5 + $0x570] sm:$0xf]  ;;  %v5115_v16 = vld [vmem:[#allocation5 + $0x574] sm:$0xf0]  ;;  %v99_v21 = vld [vmem:[#allocation2 + $0x20] sm:$0xff]  ;;  %v3727_v24 = vor.u32 %v5037_v4, %v3726_v3  ;;  %v3791_v28 = vor.u32 %v5053_v8, %v3790_v7  ;;  %v3975_v33 = vor.u32 %v5099_v14, %v3974_v13 }
  0x48   :  { %2550 = vmatpush.bf16.msrb.mxu1 %v3695_v25  ;;  %v4102_v18 = vld [vmem:[#allocation5 + $0x5f0] sm:$0xf]  ;;  %v5131_v20 = vld [vmem:[#allocation5 + $0x5f4] sm:$0xf0]  ;;  %v123_v22 = vld [vmem:[#allocation2 + $0xe0] sm:$0xff]  ;;  %v4039_v34 = vor.u32 %v5115_v16, %v4038_v15 }
  0x49   :  { %2564 = vmatpush.bf16.msrb.mxu2 %v3759_v26  ;;  %v101_v25 = vld [vmem:[#allocation2 + $0x30] sm:$0xff]  ;;  %v100_v27 = vld [vmem:[#allocation2 + $0x28] sm:$0xff]  ;;  %v102_v31 = vld [vmem:[#allocation2 + $0x38] sm:$0xff]  ;;  %v5582_v39 = vpack.c.bf16 %v123_v22, %v99_v21 }
  0x4a   :  { %2578 = vmatpush.bf16.msrb.mxu3 %v3823_v30  ;;  %v125_v26 = vld [vmem:[#allocation2 + $0xf0] sm:$0xff]  ;;  %v124_v30 = vld [vmem:[#allocation2 + $0xe8] sm:$0xff]  ;;  %v126_v32 = vld [vmem:[#allocation2 + $0xf8] sm:$0xff] }
  0x4b   :  { %2537 = vmatpush.bf16.msrb.mxu0 %v3623_v36  ;;  %v3902_v35 = vld [vmem:[#allocation5 + $0x460] sm:$0xf]  ;;  %v5081_v36 = vld [vmem:[#allocation5 + $0x464] sm:$0xf0]  ;;  %v5584_v43 = vpack.c.bf16 %v125_v26, %v101_v25  ;;  %v5586_v44 = vpack.c.bf16 %v124_v30, %v100_v27  ;;  %v5588_v47 = vpack.c.bf16 %v126_v32, %v102_v31  ;;  %v5079_v52 = vld [vmem:[#allocation5 + $0x454] sm:$0xf0] }
  0x4c   :  { %2551 = vmatpush.bf16.msrb.mxu1 %v3687_v37  ;;  %v3966_v37 = vld [vmem:[#allocation5 + $0x4e0] sm:$0xf]  ;;  %v5097_v40 = vld [vmem:[#allocation5 + $0x4e4] sm:$0xf0]  ;;  %v3958_v53 = vld [vmem:[#allocation5 + $0x4d0] sm:$0xf] }
  0x4d   :  { %2565 = vmatpush.bf16.msrb.mxu2 %v3751_v38  ;;  %v4103_v38 = vor.u32 %v5131_v20, %v4102_v18  ;;  %v4030_v41 = vld [vmem:[#allocation5 + $0x560] sm:$0xf]  ;;  %v5129_v46 = vld [vmem:[#allocation5 + $0x5e4] sm:$0xf0]  ;;  %v3967_v49 = vor.u32 %v5097_v40, %v3966_v37  ;;  %v4022_v56 = vld [vmem:[#allocation5 + $0x550] sm:$0xf] }
  0x4e   :  { %2579 = vmatpush.bf16.msrb.mxu3 %v3815_v42  ;;  %v5113_v42 = vld [vmem:[#allocation5 + $0x564] sm:$0xf0]  ;;  %v4094_v45 = vld [vmem:[#allocation5 + $0x5e0] sm:$0xf]  ;;  %v5111_v57 = vld [vmem:[#allocation5 + $0x554] sm:$0xf0] }
  0x4f   :  { %2538 = vmatpush.bf16.msrb.mxu0 %v3615_v48  ;;  %v3903_v48 = vor.u32 %v5081_v36, %v3902_v35  ;;  %v4095_v54 = vor.u32 %v5129_v46, %v4094_v45  ;;  %v4086_v59 = vld [vmem:[#allocation5 + $0x5d0] sm:$0xf]  ;;  %v5127_v60 = vld [vmem:[#allocation5 + $0x5d4] sm:$0xf0]  ;;  %v3886_v0 = vld [vmem:[#allocation5 + $0x440] sm:$0xf] }
  0x50   :  { %2552 = vmatpush.bf16.msrb.mxu1 %v3679_v50  ;;  %v4031_v50 = vor.u32 %v5113_v42, %v4030_v41  ;;  %v5077_v2 = vld [vmem:[#allocation5 + $0x444] sm:$0xf0]  ;;  %v3950_v3 = vld [vmem:[#allocation5 + $0x4c0] sm:$0xf]  ;;  %v4087_v4 = vor.u32 %v5127_v60, %v4086_v59  ;;  %v3878_v14 = vld [vmem:[#allocation5 + $0x430] sm:$0xf] }
  0x51   :  { %2566 = vmatpush.bf16.msrb.mxu2 %v3743_v51  ;;  %v3894_v51 = vld [vmem:[#allocation5 + $0x450] sm:$0xf]  ;;  %v5109_v7 = vld [vmem:[#allocation5 + $0x544] sm:$0xf0]  ;;  %v4078_v8 = vld [vmem:[#allocation5 + $0x5c0] sm:$0xf] }
  0x52   :  { %2580 = vmatpush.bf16.msrb.mxu3 %v3807_v55  ;;  %v5095_v55 = vld [vmem:[#allocation5 + $0x4d4] sm:$0xf0]  ;;  %v3895_v61 = vor.u32 %v5079_v52, %v3894_v51  ;;  %v5125_v9 = vld [vmem:[#allocation5 + $0x5c4] sm:$0xf0]  ;;  %v3942_v16 = vld [vmem:[#allocation5 + $0x4b0] sm:$0xf] }
  0x53   :  { %2539 = vmatpush.bf16.msrb.mxu0 %v3607_v63  ;;  %v3959_v62 = vor.u32 %v5095_v55, %v3958_v53  ;;  %v4023_v63 = vor.u32 %v5111_v57, %v4022_v56  ;;  %v5075_v15 = vld [vmem:[#allocation5 + $0x434] sm:$0xf0]  ;;  %v4079_v18 = vor.u32 %v5125_v9, %v4078_v8  ;;  %v4006_v20 = vld [vmem:[#allocation5 + $0x530] sm:$0xf]  ;;  %v3870_v27 = vld [vmem:[#allocation5 + $0x420] sm:$0xf] }
  0x54   :  { %2553 = vmatpush.bf16.msrb.mxu1 %v3671_v5  ;;  %v5093_v5 = vld [vmem:[#allocation5 + $0x4c4] sm:$0xf0]  ;;  %v5107_v21 = vld [vmem:[#allocation5 + $0x534] sm:$0xf0]  ;;  %v4070_v22 = vld [vmem:[#allocation5 + $0x5b0] sm:$0xf] }
  0x55   :  { %2567 = vmatpush.bf16.msrb.mxu2 %v3735_v6  ;;  %v4014_v6 = vld [vmem:[#allocation5 + $0x540] sm:$0xf]  ;;  %v3951_v12 = vor.u32 %v5093_v5, %v3950_v3  ;;  %v4007_v26 = vor.u32 %v5107_v21, %v4006_v20  ;;  %v5089_v31 = vld [vmem:[#allocation5 + $0x4a4] sm:$0xf0]  ;;  %v3862_v37 = vld [vmem:[#allocation5 + $0x410] sm:$0xf] }
  0x56   :  { %2581 = vmatpush.bf16.msrb.mxu3 %v3799_v11  ;;  %v3887_v11 = vor.u32 %v5077_v2, %v3886_v0  ;;  %v4015_v13 = vor.u32 %v5109_v7, %v4014_v6  ;;  %v3998_v32 = vld [vmem:[#allocation5 + $0x520] sm:$0xf]  ;;  %v5121_v35 = vld [vmem:[#allocation5 + $0x5a4] sm:$0xf0]  ;;  %v5071_v41 = vld [vmem:[#allocation5 + $0x414] sm:$0xf0] }
  0x57   :  { %2540 = vmatpush.bf16.msrb.mxu0 %v3599_v19  ;;  %v5091_v19 = vld [vmem:[#allocation5 + $0x4b4] sm:$0xf0]  ;;  %v3926_v42 = vld [vmem:[#allocation5 + $0x490] sm:$0xf]  ;;  %v3854_v52 = vld [vmem:[#allocation5 + $0x400] sm:$0xf] }
  0x58   :  { %2554 = vmatpush.bf16.msrb.mxu1 %v3663_v23  ;;  %v5123_v23 = vld [vmem:[#allocation5 + $0x5b4] sm:$0xf0]  ;;  %v3943_v25 = vor.u32 %v5091_v19, %v3942_v16  ;;  %v5069_v53 = vld [vmem:[#allocation5 + $0x404] sm:$0xf0]  ;;  %v3918_v55 = vld [vmem:[#allocation5 + $0x480] sm:$0xf] }
  0x59   :  { %2568 = vmatpush.bf16.msrb.mxu2 %v3727_v24  ;;  %v3879_v24 = vor.u32 %v5075_v15, %v3878_v14  ;;  %v4071_v30 = vor.u32 %v5123_v23, %v4070_v22  ;;  %v5087_v45 = vld [vmem:[#allocation5 + $0x494] sm:$0xf0]  ;;  %v5085_v56 = vld [vmem:[#allocation5 + $0x484] sm:$0xf0]  ;;  %v3982_v57 = vld [vmem:[#allocation5 + $0x500] sm:$0xf]  ;;  %v3855_v9 = vor.u32 %v5069_v53, %v3854_v52 }
  0x5a   :  { %2582 = vmatpush.bf16.msrb.mxu3 %v3791_v28  ;;  %2541 = vmatmul.bf16.vlgmr.msrb.gmra.mxu0 %v5582_v39  ;;  %v5073_v28 = vld [vmem:[#allocation5 + $0x424] sm:$0xf0]  ;;  %v5119_v51 = vld [vmem:[#allocation5 + $0x594] sm:$0xf0]  ;;  %v3927_v60 = vor.u32 %v5087_v45, %v3926_v42  ;;  %v4166_v0 = vld [vmem:[#allocation5 + $0x670] sm:$0xf]  ;;  %v3919_v14 = vor.u32 %v5085_v56, %v3918_v55 }
  0x5b   :  { %2589 = vmatpush.bf16.msra.mxu0 %v3911_v29  ;;  %2555 = vmatmul.bf16.vlgmr.msrb.gmra.mxu1 %v5586_v44  ;;  %v3934_v29 = vld [vmem:[#allocation5 + $0x4a0] sm:$0xf]  ;;  %v3871_v36 = vor.u32 %v5073_v28, %v3870_v27  ;;  %v5101_v59 = vld [vmem:[#allocation5 + $0x504] sm:$0xf0]  ;;  %v5147_v3 = vld [vmem:[#allocation5 + $0x674] sm:$0xf0] }
  0x5c   :  { %2603 = vmatpush.bf16.msra.mxu1 %v3975_v33  ;;  %2569 = vmatmul.bf16.vlgmr.msrb.gmra.mxu2 %v5584_v43  ;;  %v5105_v33 = vld [vmem:[#allocation5 + $0x524] sm:$0xf0]  ;;  %v5163_v5 = vld [vmem:[#allocation5 + $0x6f4] sm:$0xf0]  ;;  %v4294_v6 = vld [vmem:[#allocation5 + $0x770] sm:$0xf]  ;;  %v3983_v15 = vor.u32 %v5101_v59, %v3982_v57  ;;  %v4167_v21 = vor.u32 %v5147_v3, %v4166_v0 }
  0x5d   :  { %2617 = vmatpush.bf16.msra.mxu2 %v4039_v34  ;;  %2583 = vmatmul.bf16.vlgmr.msrb.gmra.mxu3 %v5588_v47  ;;  %v4062_v34 = vld [vmem:[#allocation5 + $0x5a0] sm:$0xf]  ;;  %v3999_v40 = vor.u32 %v5105_v33, %v3998_v32  ;;  %v5179_v7 = vld [vmem:[#allocation5 + $0x774] sm:$0xf0]  ;;  %v4358_v8 = vld [vmem:[#allocation5 + $0x7f0] sm:$0xf] }
  0x5e   :  { %2631 = vmatpush.bf16.msra.mxu3 %v4103_v38  ;;  %v3935_v38 = vor.u32 %v5089_v31, %v3934_v29  ;;  %v4063_v46 = vor.u32 %v5121_v35, %v4062_v34  ;;  %v105_v16 = vld [vmem:[#allocation2 + $0x50] sm:$0xff]  ;;  %v104_v19 = vld [vmem:[#allocation2 + $0x48] sm:$0xff]  ;;  %v106_v23 = vld [vmem:[#allocation2 + $0x58] sm:$0xff] }
  0x5f   :  { %2590 = vmatpush.bf16.msra.mxu0 %v3903_v48  ;;  %v3990_v48 = vld [vmem:[#allocation5 + $0x510] sm:$0xf]  ;;  %v128_v22 = vld [vmem:[#allocation2 + $0x108] sm:$0xff]  ;;  %v4158_v27 = vld [vmem:[#allocation5 + $0x660] sm:$0xf] }
  0x60   :  { %2604 = vmatpush.bf16.msra.mxu1 %v3967_v49  ;;  %v5103_v49 = vld [vmem:[#allocation5 + $0x514] sm:$0xf0]  ;;  %v5145_v28 = vld [vmem:[#allocation5 + $0x664] sm:$0xf0]  ;;  %v4222_v29 = vld [vmem:[#allocation5 + $0x6e0] sm:$0xf] }
  0x61   :  { %2618 = vmatpush.bf16.msra.mxu2 %v4031_v50  ;;  %v4054_v50 = vld [vmem:[#allocation5 + $0x590] sm:$0xf]  ;;  %v5161_v32 = vld [vmem:[#allocation5 + $0x6e4] sm:$0xf0]  ;;  %v4286_v33 = vld [vmem:[#allocation5 + $0x760] sm:$0xf] }
  0x62   :  { %2632 = vmatpush.bf16.msra.mxu3 %v4095_v54  ;;  %v3863_v54 = vor.u32 %v5071_v41, %v3862_v37  ;;  %v4055_v2 = vor.u32 %v5119_v51, %v4054_v50  ;;  %v5177_v34 = vld [vmem:[#allocation5 + $0x764] sm:$0xf0]  ;;  %v4350_v37 = vld [vmem:[#allocation5 + $0x7e0] sm:$0xf]  ;;  %v4159_v41 = vor.u32 %v5145_v28, %v4158_v27  ;;  %v4223_v42 = vor.u32 %v5161_v32, %v4222_v29  ;;  %v5159_v51 = vld [vmem:[#allocation5 + $0x6d4] sm:$0xf0] }
  0x63   :  { %2591 = vmatpush.bf16.msra.mxu0 %v3895_v61  ;;  %v3991_v61 = vor.u32 %v5103_v49, %v3990_v48  ;;  %v4287_v45 = vor.u32 %v5177_v34, %v4286_v33  ;;  %v5143_v48 = vld [vmem:[#allocation5 + $0x654] sm:$0xf0]  ;;  %v4214_v49 = vld [vmem:[#allocation5 + $0x6d0] sm:$0xf]  ;;  %v5157_v0 = vld [vmem:[#allocation5 + $0x6c4] sm:$0xf0] }
  0x64   :  { %2605 = vmatpush.bf16.msra.mxu1 %v3959_v62  ;;  %v4046_v62 = vld [vmem:[#allocation5 + $0x580] sm:$0xf]  ;;  %v4278_v52 = vld [vmem:[#allocation5 + $0x750] sm:$0xf]  ;;  %v5175_v53 = vld [vmem:[#allocation5 + $0x754] sm:$0xf0]  ;;  %v4215_v57 = vor.u32 %v5159_v51, %v4214_v49 }
  0x65   :  { %2619 = vmatpush.bf16.msra.mxu2 %v4023_v63  ;;  %v5117_v63 = vld [vmem:[#allocation5 + $0x584] sm:$0xf0]  ;;  %v5191_v55 = vld [vmem:[#allocation5 + $0x7d4] sm:$0xf0]  ;;  %v4279_v59 = vor.u32 %v5175_v53, %v4278_v52  ;;  %v4254_v28 = vld [vmem:[#allocation5 + $0x720] sm:$0xf] }
  0x66   :  { %2633 = vmatpush.bf16.msra.mxu3 %v4087_v4  ;;  %v4230_v4 = vld [vmem:[#allocation5 + $0x6f0] sm:$0xf]  ;;  %v4047_v20 = vor.u32 %v5117_v63, %v4046_v62  ;;  %v4206_v62 = vld [vmem:[#allocation5 + $0x6c0] sm:$0xf]  ;;  %v5173_v3 = vld [vmem:[#allocation5 + $0x744] sm:$0xf0] }
  0x67   :  { %2592 = vmatpush.bf16.msra.mxu0 %v3887_v11  ;;  %v5195_v11 = vld [vmem:[#allocation5 + $0x7f4] sm:$0xf0]  ;;  %v5153_v27 = vld [vmem:[#allocation5 + $0x6a4] sm:$0xf0]  ;;  %v4118_v34 = vld [vmem:[#allocation5 + $0x610] sm:$0xf] }
  0x68   :  { %2606 = vmatpush.bf16.msra.mxu1 %v3951_v12  ;;  %v103_v12 = vld [vmem:[#allocation2 + $0x40] sm:$0xff]  ;;  %v5169_v29 = vld [vmem:[#allocation5 + $0x724] sm:$0xf0]  ;;  %v5167_v49 = vld [vmem:[#allocation5 + $0x714] sm:$0xf0] }
  0x69   :  { %2620 = vmatpush.bf16.msra.mxu2 %v4015_v13  ;;  %v127_v13 = vld [vmem:[#allocation2 + $0x100] sm:$0xff]  ;;  %v5185_v32 = vld [vmem:[#allocation5 + $0x7a4] sm:$0xf0]  ;;  %v5183_v51 = vld [vmem:[#allocation5 + $0x794] sm:$0xf0] }
  0x6a   :  { %2634 = vmatpush.bf16.msra.mxu3 %v4079_v18  ;;  %v129_v18 = vld [vmem:[#allocation2 + $0x110] sm:$0xff]  ;;  %v5594_v31 = vpack.c.bf16 %v127_v13, %v103_v12  ;;  %v4110_v52 = vld [vmem:[#allocation5 + $0x600] sm:$0xf]  ;;  %v5133_v53 = vld [vmem:[#allocation5 + $0x604] sm:$0xf0] }
  0x6b   :  { %2593 = vmatpush.bf16.msra.mxu0 %v3879_v24  ;;  %v130_v24 = vld [vmem:[#allocation2 + $0x118] sm:$0xff]  ;;  %v5596_v35 = vpack.c.bf16 %v129_v18, %v105_v16  ;;  %v4198_v12 = vld [vmem:[#allocation5 + $0x6b0] sm:$0xf] }
  0x6c   :  { %2607 = vmatpush.bf16.msra.mxu1 %v3943_v25  ;;  %v4231_v25 = vor.u32 %v5163_v5, %v4230_v4  ;;  %v4334_v4 = vld [vmem:[#allocation5 + $0x7c0] sm:$0xf]  ;;  %v5189_v5 = vld [vmem:[#allocation5 + $0x7c4] sm:$0xf0]  ;;  %v5171_v16 = vld [vmem:[#allocation5 + $0x734] sm:$0xf0] }
  0x6d   :  { %2621 = vmatpush.bf16.msra.mxu2 %v4007_v26  ;;  %v4295_v26 = vor.u32 %v5179_v7, %v4294_v6  ;;  %v4207_v7 = vor.u32 %v5157_v0, %v4206_v62  ;;  %v4335_v13 = vor.u32 %v5189_v5, %v4334_v4  ;;  %v4326_v18 = vld [vmem:[#allocation5 + $0x7b0] sm:$0xf]  ;;  %v4302_v62 = vld [vmem:[#allocation5 + $0x780] sm:$0xf]  ;;  %v5227_v5 = vld [vmem:[#allocation5 + $0x8f4] sm:$0xf0] }
  0x6e   :  { %2635 = vmatpush.bf16.msra.mxu3 %v4071_v30  ;;  %v4359_v30 = vor.u32 %v5195_v11, %v4358_v8  ;;  %v5139_v11 = vld [vmem:[#allocation5 + $0x634] sm:$0xf0]  ;;  %v4422_v0 = vld [vmem:[#allocation5 + $0x870] sm:$0xf] }
  0x6f   :  { %2594 = vmatpush.bf16.msra.mxu0 %v3871_v36  ;;  %v5598_v36 = vpack.c.bf16 %v128_v22, %v104_v19  ;;  %v5187_v19 = vld [vmem:[#allocation5 + $0x7b4] sm:$0xf0]  ;;  %v4486_v4 = vld [vmem:[#allocation5 + $0x8f0] sm:$0xf] }
  0x70   :  { %2608 = vmatpush.bf16.msra.mxu1 %v3935_v38  ;;  %v5193_v38 = vld [vmem:[#allocation5 + $0x7e4] sm:$0xf0] }
  0x71   :  { %2622 = vmatpush.bf16.msra.mxu2 %v3999_v40  ;;  %v5600_v40 = vpack.c.bf16 %v130_v24, %v106_v23  ;;  %v4351_v50 = vor.u32 %v5193_v38, %v4350_v37  ;;  %v4126_v23 = vld [vmem:[#allocation5 + $0x620] sm:$0xf]  ;;  %v5137_v24 = vld [vmem:[#allocation5 + $0x624] sm:$0xf0]  ;;  %v5135_v37 = vld [vmem:[#allocation5 + $0x614] sm:$0xf0] }
  0x72   :  { %2636 = vmatpush.bf16.msra.mxu3 %v4063_v46  ;;  %v4150_v46 = vld [vmem:[#allocation5 + $0x650] sm:$0xf]  ;;  %v4127_v33 = vor.u32 %v5137_v24, %v4126_v23  ;;  %v110_v23 = vld [vmem:[#allocation2 + $0x78] sm:$0xff] }
  0x73   :  { %2595 = vmatpush.bf16.msra.mxu0 %v3863_v54  ;;  %v4342_v54 = vld [vmem:[#allocation5 + $0x7d0] sm:$0xf]  ;;  %v4151_v56 = vor.u32 %v5143_v48, %v4150_v46  ;;  %v134_v24 = vld [vmem:[#allocation2 + $0x138] sm:$0xff] }
  0x74   :  { %2609 = vmatpush.bf16.msra.mxu1 %v3927_v60  ;;  %v4142_v60 = vld [vmem:[#allocation5 + $0x640] sm:$0xf]  ;;  %v4343_v63 = vor.u32 %v5191_v55, %v4342_v54  ;;  %v4246_v46 = vld [vmem:[#allocation5 + $0x710] sm:$0xf]  ;;  %v4119_v54 = vor.u32 %v5135_v37, %v4118_v34  ;;  %v5241_v37 = vld [vmem:[#allocation5 + $0x964] sm:$0xf0] }
  0x75   :  { %2623 = vmatpush.bf16.msra.mxu2 %v3991_v61  ;;  %v5141_v61 = vld [vmem:[#allocation5 + $0x644] sm:$0xf0]  ;;  %v4174_v55 = vld [vmem:[#allocation5 + $0x680] sm:$0xf] }
  0x76   :  { %2637 = vmatpush.bf16.msra.mxu3 %v4055_v2  ;;  %v4270_v2 = vld [vmem:[#allocation5 + $0x740] sm:$0xf]  ;;  %v4143_v6 = vor.u32 %v5141_v61, %v4142_v60  ;;  %v4247_v61 = vor.u32 %v5167_v49, %v4246_v46  ;;  %v5612_v46 = vpack.c.bf16 %v134_v24, %v110_v23  ;;  %v5251_v23 = vld [vmem:[#allocation5 + $0x9b4] sm:$0xf0] }
  0x77   :  { %2596 = vmatpush.bf16.msra.mxu0 %v3855_v9  ;;  %v4271_v8 = vor.u32 %v5173_v3, %v4270_v2  ;;  %v4134_v9 = vld [vmem:[#allocation5 + $0x630] sm:$0xf]  ;;  %v5211_v3 = vld [vmem:[#allocation5 + $0x874] sm:$0xf0]  ;;  %v4542_v34 = vld [vmem:[#allocation5 + $0x960] sm:$0xf] }
  0x78   :  { %2610 = vmatpush.bf16.msra.mxu1 %v3919_v14  ;;  %v5155_v14 = vld [vmem:[#allocation5 + $0x6b4] sm:$0xf0] }
  0x79   :  { %2624 = vmatpush.bf16.msra.mxu2 %v3983_v15  ;;  %v4262_v15 = vld [vmem:[#allocation5 + $0x730] sm:$0xf] }
  0x7a   :  { %2638 = vmatpush.bf16.msra.mxu3 %v4047_v20  ;;  %2597 = vmatmul.bf16.vlgmr.msra.gmra.mxu0 %v5594_v31  ;;  %v4135_v20 = vor.u32 %v5139_v11, %v4134_v9  ;;  %v4263_v22 = vor.u32 %v5171_v16, %v4262_v15  ;;  %v4111_v9 = vor.u32 %v5133_v53, %v4110_v52  ;;  %v5259_v11 = vld [vmem:[#allocation5 + $0x9f4] sm:$0xf0]  ;;  %v109_v16 = vld [vmem:[#allocation2 + $0x70] sm:$0xff] }
  0x7b   :  { %2645 = vmatpush.bf16.msrb.mxu0 %v4167_v21  ;;  %2611 = vmatmul.bf16.vlgmr.msra.gmra.mxu1 %v5598_v36  ;;  %v4199_v21 = vor.u32 %v5155_v14, %v4198_v12  ;;  %v107_v12 = vld [vmem:[#allocation2 + $0x60] sm:$0xff]  ;;  %v5207_v52 = vld [vmem:[#allocation5 + $0x854] sm:$0xf0]  ;;  %v4470_v53 = vld [vmem:[#allocation5 + $0x8d0] sm:$0xf] }
  0x7c   :  { %2659 = vmatpush.bf16.msrb.mxu1 %v4231_v25  ;;  %2625 = vmatmul.bf16.vlgmr.msra.gmra.mxu2 %v5596_v35  ;;  %v4190_v25 = vld [vmem:[#allocation5 + $0x6a0] sm:$0xf] }
  0x7d   :  { %2673 = vmatpush.bf16.msrb.mxu2 %v4295_v26  ;;  %2639 = vmatmul.bf16.vlgmr.msra.gmra.mxu3 %v5600_v40  ;;  %v4327_v26 = vor.u32 %v5187_v19, %v4326_v18  ;;  %v4191_v38 = vor.u32 %v5153_v27, %v4190_v25  ;;  %v133_v18 = vld [vmem:[#allocation2 + $0x130] sm:$0xff]  ;;  %v108_v19 = vld [vmem:[#allocation2 + $0x68] sm:$0xff]  ;;  %v4487_v25 = vor.u32 %v5227_v5, %v4486_v4  ;;  %v4414_v27 = vld [vmem:[#allocation5 + $0x860] sm:$0xf] }
  0x7e   :  { %2687 = vmatpush.bf16.msrb.mxu3 %v4359_v30  ;;  %v4318_v30 = vld [vmem:[#allocation5 + $0x7a0] sm:$0xf]  ;;  %v5221_v5 = vld [vmem:[#allocation5 + $0x8c4] sm:$0xf0] }
  0x7f   :  { %2646 = vmatpush.bf16.msrb.mxu0 %v4159_v41  ;;  %v4255_v41 = vor.u32 %v5169_v29, %v4254_v28  ;;  %v4319_v48 = vor.u32 %v5185_v32, %v4318_v30  ;;  %v5209_v28 = vld [vmem:[#allocation5 + $0x864] sm:$0xf0]  ;;  %v4478_v29 = vld [vmem:[#allocation5 + $0x8e0] sm:$0xf] }
  0x80   :  { %2660 = vmatpush.bf16.msrb.mxu1 %v4223_v42  ;;  %v4182_v42 = vld [vmem:[#allocation5 + $0x690] sm:$0xf] }
  0x81   :  { %2674 = vmatpush.bf16.msrb.mxu2 %v4287_v45  ;;  %v5151_v45 = vld [vmem:[#allocation5 + $0x694] sm:$0xf0] }
  0x82   :  { %2688 = vmatpush.bf16.msrb.mxu3 %v4351_v50  ;;  %v4310_v50 = vld [vmem:[#allocation5 + $0x790] sm:$0xf]  ;;  %v4183_v60 = vor.u32 %v5151_v45, %v4182_v42  ;;  %v4606_v42 = vld [vmem:[#allocation5 + $0x9e0] sm:$0xf]  ;;  %v5257_v45 = vld [vmem:[#allocation5 + $0x9e4] sm:$0xf0] }
  0x83   :  { %2647 = vmatpush.bf16.msrb.mxu0 %v4151_v56  ;;  %v5149_v56 = vld [vmem:[#allocation5 + $0x684] sm:$0xf0]  ;;  %v4311_v2 = vor.u32 %v5183_v51, %v4310_v50  ;;  %v4543_v50 = vor.u32 %v5241_v37, %v4542_v34  ;;  %v4406_v51 = vld [vmem:[#allocation5 + $0x850] sm:$0xf]  ;;  %v4510_v34 = vld [vmem:[#allocation5 + $0x920] sm:$0xf] }
  0x84   :  { %2661 = vmatpush.bf16.msrb.mxu1 %v4215_v57  ;;  %v4238_v57 = vld [vmem:[#allocation5 + $0x700] sm:$0xf]  ;;  %v4175_v14 = vor.u32 %v5149_v56, %v4174_v55  ;;  %v5223_v55 = vld [vmem:[#allocation5 + $0x8d4] sm:$0xf0]  ;;  %v4534_v56 = vld [vmem:[#allocation5 + $0x950] sm:$0xf] }
  0x85   :  { %2675 = vmatpush.bf16.msrb.mxu2 %v4279_v59  ;;  %v5165_v59 = vld [vmem:[#allocation5 + $0x704] sm:$0xf0] }
  0x86   :  { %2689 = vmatpush.bf16.msrb.mxu3 %v4343_v63  ;;  %v5181_v63 = vld [vmem:[#allocation5 + $0x784] sm:$0xf0]  ;;  %v4239_v15 = vor.u32 %v5165_v59, %v4238_v57  ;;  %v5239_v57 = vld [vmem:[#allocation5 + $0x954] sm:$0xf0]  ;;  %v4598_v59 = vld [vmem:[#allocation5 + $0x9d0] sm:$0xf] }
  0x87   :  { %2648 = vmatpush.bf16.msrb.mxu0 %v4143_v6  ;;  %v4550_v6 = vld [vmem:[#allocation5 + $0x970] sm:$0xf]  ;;  %v5233_v37 = vld [vmem:[#allocation5 + $0x924] sm:$0xf0] }
  0x88   :  { %2662 = vmatpush.bf16.msrb.mxu1 %v4207_v7  ;;  %v5243_v7 = vld [vmem:[#allocation5 + $0x974] sm:$0xf0] }
  0x89   :  { %2676 = vmatpush.bf16.msrb.mxu2 %v4271_v8  ;;  %v4614_v8 = vld [vmem:[#allocation5 + $0x9f0] sm:$0xf] }
  0x8a   :  { %2690 = vmatpush.bf16.msrb.mxu3 %v4335_v13  ;;  %v131_v13 = vld [vmem:[#allocation2 + $0x120] sm:$0xff]  ;;  %v4615_v30 = vor.u32 %v5259_v11, %v4614_v8 }
  0x8b   :  { %2649 = vmatpush.bf16.msrb.mxu0 %v4135_v20  ;;  %v4303_v20 = vor.u32 %v5181_v63, %v4302_v62  ;;  %v5606_v32 = vpack.c.bf16 %v131_v13, %v107_v12  ;;  %v4471_v62 = vor.u32 %v5223_v55, %v4470_v53  ;;  %v4535_v63 = vor.u32 %v5239_v57, %v4534_v56  ;;  %v4590_v8 = vld [vmem:[#allocation5 + $0x9c0] sm:$0xf]  ;;  %v4438_v53 = vld [vmem:[#allocation5 + $0x890] sm:$0xf]  ;;  %v5231_v57 = vld [vmem:[#allocation5 + $0x914] sm:$0xf0] }
  0x8c   :  { %2663 = vmatpush.bf16.msrb.mxu1 %v4199_v21  ;;  %v4423_v21 = vor.u32 %v5211_v3, %v4422_v0  ;;  %v4398_v0 = vld [vmem:[#allocation5 + $0x840] sm:$0xf]  ;;  %v4502_v56 = vld [vmem:[#allocation5 + $0x910] sm:$0xf] }
  0x8d   :  { %2677 = vmatpush.bf16.msrb.mxu2 %v4263_v22  ;;  %v132_v22 = vld [vmem:[#allocation2 + $0x128] sm:$0xff]  ;;  %v4462_v3 = vld [vmem:[#allocation5 + $0x8c0] sm:$0xf] }
  0x8e   :  { %2691 = vmatpush.bf16.msrb.mxu3 %v4327_v26  ;;  %v4551_v26 = vor.u32 %v5243_v7, %v4550_v6  ;;  %v4526_v6 = vld [vmem:[#allocation5 + $0x940] sm:$0xf]  ;;  %v5237_v7 = vld [vmem:[#allocation5 + $0x944] sm:$0xf0]  ;;  %v4463_v12 = vor.u32 %v5221_v5, %v4462_v3 }
  0x8f   :  { %2650 = vmatpush.bf16.msrb.mxu0 %v4127_v33  ;;  %v5225_v33 = vld [vmem:[#allocation5 + $0x8e4] sm:$0xf0]  ;;  %v4527_v13 = vor.u32 %v5237_v7, %v4526_v6  ;;  %v4494_v3 = vld [vmem:[#allocation5 + $0x900] sm:$0xf]  ;;  %v4503_v6 = vor.u32 %v5231_v57, %v4502_v56 }
  0x90   :  { %2664 = vmatpush.bf16.msrb.mxu1 %v4191_v38  ;;  %v5608_v38 = vpack.c.bf16 %v133_v18, %v109_v16  ;;  %v4479_v49 = vor.u32 %v5225_v33, %v4478_v29  ;;  %v4454_v16 = vld [vmem:[#allocation5 + $0x8b0] sm:$0xf]  ;;  %v4446_v29 = vld [vmem:[#allocation5 + $0x8a0] sm:$0xf]  ;;  %v5217_v33 = vld [vmem:[#allocation5 + $0x8a4] sm:$0xf0] }
  0x91   :  { %2678 = vmatpush.bf16.msrb.mxu2 %v4255_v41  ;;  %v5610_v41 = vpack.c.bf16 %v132_v22, %v108_v19  ;;  %v5219_v19 = vld [vmem:[#allocation5 + $0x8b4] sm:$0xf0]  ;;  %v4582_v22 = vld [vmem:[#allocation5 + $0x9b0] sm:$0xf]  ;;  %v4558_v7 = vld [vmem:[#allocation5 + $0x980] sm:$0xf] }
  0x92   :  { %2692 = vmatpush.bf16.msrb.mxu3 %v4319_v48  ;;  %v4415_v48 = vor.u32 %v5209_v28, %v4414_v27  ;;  %v4382_v27 = vld [vmem:[#allocation5 + $0x820] sm:$0xf]  ;;  %v5201_v28 = vld [vmem:[#allocation5 + $0x824] sm:$0xf0] }
  0x93   :  { %2651 = vmatpush.bf16.msrb.mxu0 %v4119_v54  ;;  %v4607_v54 = vor.u32 %v5257_v45, %v4606_v42  ;;  %v4574_v42 = vld [vmem:[#allocation5 + $0x9a0] sm:$0xf]  ;;  %v5249_v45 = vld [vmem:[#allocation5 + $0x9a4] sm:$0xf0] }
  0x94   :  { %2665 = vmatpush.bf16.msrb.mxu1 %v4183_v60  ;;  %v5255_v60 = vld [vmem:[#allocation5 + $0x9d4] sm:$0xf0]  ;;  %v4575_v55 = vor.u32 %v5249_v45, %v4574_v42  ;;  %v4670_v45 = vld [vmem:[#allocation5 + $0xa60] sm:$0xf] }
  0x95   :  { %2679 = vmatpush.bf16.msrb.mxu2 %v4247_v61  ;;  %v4407_v61 = vor.u32 %v5207_v52, %v4406_v51  ;;  %v4599_v4 = vor.u32 %v5255_v60, %v4598_v59  ;;  %v4511_v51 = vor.u32 %v5233_v37, %v4510_v34  ;;  %v5199_v52 = vld [vmem:[#allocation5 + $0x814] sm:$0xf0]  ;;  %v4566_v59 = vld [vmem:[#allocation5 + $0x990] sm:$0xf]  ;;  %v4862_v57 = vld [vmem:[#allocation5 + $0xbe0] sm:$0xf] }
  0x96   :  { %2693 = vmatpush.bf16.msrb.mxu3 %v4311_v2  ;;  %v5205_v2 = vld [vmem:[#allocation5 + $0x844] sm:$0xf0]  ;;  %v5247_v60 = vld [vmem:[#allocation5 + $0x994] sm:$0xf0] }
  0x97   :  { %2652 = vmatpush.bf16.msrb.mxu0 %v4111_v9  ;;  %v5253_v9 = vld [vmem:[#allocation5 + $0x9c4] sm:$0xf0]  ;;  %v4399_v11 = vor.u32 %v5205_v2, %v4398_v0  ;;  %v4430_v0 = vld [vmem:[#allocation5 + $0x880] sm:$0xf]  ;;  %v138_v34 = vld [vmem:[#allocation2 + $0x158] sm:$0xff] }
  0x98   :  { %2666 = vmatpush.bf16.msrb.mxu1 %v4175_v14  ;;  %v4390_v14 = vld [vmem:[#allocation5 + $0x830] sm:$0xf]  ;;  %v4591_v18 = vor.u32 %v5253_v9, %v4590_v8  ;;  %v5213_v2 = vld [vmem:[#allocation5 + $0x884] sm:$0xf0] }
  0x99   :  { %2680 = vmatpush.bf16.msrb.mxu2 %v4239_v15  ;;  %v5203_v15 = vld [vmem:[#allocation5 + $0x834] sm:$0xf0]  ;;  %v5245_v8 = vld [vmem:[#allocation5 + $0x984] sm:$0xf0]  ;;  %v4678_v9 = vld [vmem:[#allocation5 + $0xa70] sm:$0xf] }
  0x9a   :  { %2694 = vmatpush.bf16.msrb.mxu3 %v4303_v20  ;;  %2653 = vmatmul.bf16.vlgmr.msrb.gmra.mxu0 %v5606_v32  ;;  %v4518_v20 = vld [vmem:[#allocation5 + $0x930] sm:$0xf]  ;;  %v4391_v24 = vor.u32 %v5203_v15, %v4390_v14  ;;  %v5291_v14 = vld [vmem:[#allocation5 + $0xaf4] sm:$0xf0] }
  0x9b   :  { %2701 = vmatpush.bf16.msra.mxu0 %v4423_v21  ;;  %2667 = vmatmul.bf16.vlgmr.msrb.gmra.mxu1 %v5610_v41  ;;  %v5235_v21 = vld [vmem:[#allocation5 + $0x934] sm:$0xf0]  ;;  %v4806_v15 = vld [vmem:[#allocation5 + $0xb70] sm:$0xf] }
  0x9c   :  { %2715 = vmatpush.bf16.msra.mxu1 %v4487_v25  ;;  %2681 = vmatmul.bf16.vlgmr.msrb.gmra.mxu2 %v5608_v38  ;;  %v4455_v25 = vor.u32 %v5219_v19, %v4454_v16  ;;  %v5307_v16 = vld [vmem:[#allocation5 + $0xb74] sm:$0xf0] }
  0x9d   :  { %2729 = vmatpush.bf16.msra.mxu2 %v4551_v26  ;;  %2695 = vmatmul.bf16.vlgmr.msrb.gmra.mxu3 %v5612_v46  ;;  %v4519_v26 = vor.u32 %v5235_v21, %v4518_v20  ;;  %v5323_v20 = vld [vmem:[#allocation5 + $0xbf4] sm:$0xf0]  ;;  %v111_v21 = vld [vmem:[#allocation2 + $0x80] sm:$0xff]  ;;  %v4807_v42 = vor.u32 %v5307_v16, %v4806_v15  ;;  %v5269_v15 = vld [vmem:[#allocation5 + $0xa44] sm:$0xf0] }
  0x9e   :  { %2743 = vmatpush.bf16.msra.mxu3 %v4615_v30  ;;  %v4583_v30 = vor.u32 %v5251_v23, %v4582_v22  ;;  %v135_v22 = vld [vmem:[#allocation2 + $0x140] sm:$0xff]  ;;  %v4431_v23 = vor.u32 %v5213_v2, %v4430_v0  ;;  %v4662_v0 = vld [vmem:[#allocation5 + $0xa50] sm:$0xf]  ;;  %v5271_v2 = vld [vmem:[#allocation5 + $0xa54] sm:$0xf0] }
  0x9f   :  { %2702 = vmatpush.bf16.msra.mxu0 %v4415_v48  ;;  %v4383_v48 = vor.u32 %v5201_v28, %v4382_v27  ;;  %v112_v27 = vld [vmem:[#allocation2 + $0x88] sm:$0xff]  ;;  %v4559_v28 = vor.u32 %v5245_v8, %v4558_v7  ;;  %v5303_v7 = vld [vmem:[#allocation5 + $0xb54] sm:$0xf0]  ;;  %v4854_v8 = vld [vmem:[#allocation5 + $0xbd0] sm:$0xf] }
  0xa0   :  { %2716 = vmatpush.bf16.msra.mxu1 %v4479_v49  ;;  %v4374_v49 = vld [vmem:[#allocation5 + $0x810] sm:$0xf]  ;;  %v4718_v16 = vld [vmem:[#allocation5 + $0xac0] sm:$0xf] }
  0xa1   :  { %2730 = vmatpush.bf16.msra.mxu2 %v4543_v50  ;;  %v4447_v50 = vor.u32 %v5217_v33, %v4446_v29  ;;  %v114_v33 = vld [vmem:[#allocation2 + $0x98] sm:$0xff] }
  0xa2   :  { %2744 = vmatpush.bf16.msra.mxu3 %v4607_v54  ;;  %v5215_v54 = vld [vmem:[#allocation5 + $0x894] sm:$0xf0] }
  0xa3   :  { %2703 = vmatpush.bf16.msra.mxu0 %v4407_v61  ;;  %v4366_v61 = vld [vmem:[#allocation5 + $0x800] sm:$0xf]  ;;  %v4439_v5 = vor.u32 %v5215_v54, %v4438_v53  ;;  %v5305_v54 = vld [vmem:[#allocation5 + $0xb64] sm:$0xf0] }
  0xa4   :  { %2717 = vmatpush.bf16.msra.mxu1 %v4471_v62  ;;  %v5197_v62 = vld [vmem:[#allocation5 + $0x804] sm:$0xf0]  ;;  %v4798_v53 = vld [vmem:[#allocation5 + $0xb60] sm:$0xf] }
  0xa5   :  { %2731 = vmatpush.bf16.msra.mxu2 %v4535_v63  ;;  %v4375_v63 = vor.u32 %v5199_v52, %v4374_v49  ;;  %v4367_v19 = vor.u32 %v5197_v62, %v4366_v61  ;;  %v4734_v49 = vld [vmem:[#allocation5 + $0xae0] sm:$0xf]  ;;  %v5289_v52 = vld [vmem:[#allocation5 + $0xae4] sm:$0xf0] }
  0xa6   :  { %2745 = vmatpush.bf16.msra.mxu3 %v4599_v4  ;;  %v5229_v4 = vld [vmem:[#allocation5 + $0x904] sm:$0xf0]  ;;  %v4735_v62 = vor.u32 %v5289_v52, %v4734_v49  ;;  %v4638_v52 = vld [vmem:[#allocation5 + $0xa20] sm:$0xf] }
  0xa7   :  { %2704 = vmatpush.bf16.msra.mxu0 %v4399_v11  ;;  %v4567_v11 = vor.u32 %v5247_v60, %v4566_v59  ;;  %v5321_v59 = vld [vmem:[#allocation5 + $0xbe4] sm:$0xf0]  ;;  %v5624_v60 = vpack.c.bf16 %v138_v34, %v114_v33  ;;  %v5283_v33 = vld [vmem:[#allocation5 + $0xab4] sm:$0xf0]  ;;  %v4774_v34 = vld [vmem:[#allocation5 + $0xb30] sm:$0xf] }
  0xa8   :  { %2718 = vmatpush.bf16.msra.mxu1 %v4463_v12  ;;  %v5275_v12 = vld [vmem:[#allocation5 + $0xa74] sm:$0xf0] }
  0xa9   :  { %2732 = vmatpush.bf16.msra.mxu2 %v4527_v13  ;;  %v4742_v13 = vld [vmem:[#allocation5 + $0xaf0] sm:$0xf]  ;;  %v4679_v29 = vor.u32 %v5275_v12, %v4678_v9  ;;  %v5319_v9 = vld [vmem:[#allocation5 + $0xbd4] sm:$0xf0] }
  0xaa   :  { %2746 = vmatpush.bf16.msra.mxu3 %v4591_v18  ;;  %v4870_v18 = vld [vmem:[#allocation5 + $0xbf0] sm:$0xf]  ;;  %v4743_v37 = vor.u32 %v5291_v14, %v4742_v13  ;;  %v4654_v14 = vld [vmem:[#allocation5 + $0xa40] sm:$0xf] }
  0xab   :  { %2705 = vmatpush.bf16.msra.mxu0 %v4391_v24  ;;  %v4495_v24 = vor.u32 %v5229_v4, %v4494_v3  ;;  %v4726_v3 = vld [vmem:[#allocation5 + $0xad0] sm:$0xf]  ;;  %v4863_v4 = vor.u32 %v5321_v59, %v4862_v57  ;;  %v5281_v59 = vld [vmem:[#allocation5 + $0xaa4] sm:$0xf0] }
  0xac   :  { %2719 = vmatpush.bf16.msra.mxu1 %v4455_v25  ;;  %v113_v25 = vld [vmem:[#allocation2 + $0x90] sm:$0xff] }
  0xad   :  { %2733 = vmatpush.bf16.msra.mxu2 %v4519_v26  ;;  %v137_v26 = vld [vmem:[#allocation2 + $0x150] sm:$0xff] }
  0xae   :  { %2747 = vmatpush.bf16.msra.mxu3 %v4583_v30  ;;  %v136_v30 = vld [vmem:[#allocation2 + $0x148] sm:$0xff] }
  0xaf   :  { %2706 = vmatpush.bf16.msra.mxu0 %v4383_v48  ;;  %v5273_v48 = vld [vmem:[#allocation5 + $0xa64] sm:$0xf0]  ;;  %v5622_v56 = vpack.c.bf16 %v136_v30, %v112_v27  ;;  %v4646_v27 = vld [vmem:[#allocation5 + $0xa30] sm:$0xf] }
  0xb0   :  { %2720 = vmatpush.bf16.msra.mxu1 %v4447_v50  ;;  %v4871_v50 = vor.u32 %v5323_v20, %v4870_v18  ;;  %v4671_v61 = vor.u32 %v5273_v48, %v4670_v45  ;;  %v4855_v18 = vor.u32 %v5319_v9, %v4854_v8  ;;  %v4782_v20 = vld [vmem:[#allocation5 + $0xb40] sm:$0xf]  ;;  %v5315_v45 = vld [vmem:[#allocation5 + $0xbb4] sm:$0xf0] }
  0xb1   :  { %2734 = vmatpush.bf16.msra.mxu2 %v4511_v51  ;;  %v5618_v51 = vpack.c.bf16 %v135_v22, %v111_v21  ;;  %v5301_v21 = vld [vmem:[#allocation5 + $0xb44] sm:$0xf0]  ;;  %v4846_v22 = vld [vmem:[#allocation5 + $0xbc0] sm:$0xf]  ;;  %v5279_v8 = vld [vmem:[#allocation5 + $0xa94] sm:$0xf0] }
  0xb2   :  { %2748 = vmatpush.bf16.msra.mxu3 %v4575_v55  ;;  %v5620_v55 = vpack.c.bf16 %v137_v26, %v113_v25  ;;  %v4783_v26 = vor.u32 %v5301_v21, %v4782_v20  ;;  %v5277_v20 = vld [vmem:[#allocation5 + $0xa84] sm:$0xf0]  ;;  %v4750_v21 = vld [vmem:[#allocation5 + $0xb00] sm:$0xf] }
  0xb3   :  { %2707 = vmatpush.bf16.msra.mxu0 %v4375_v63  ;;  %v4799_v63 = vor.u32 %v5305_v54, %v4798_v53  ;;  %v5265_v53 = vld [vmem:[#allocation5 + $0xa24] sm:$0xf0]  ;;  %v4702_v54 = vld [vmem:[#allocation5 + $0xaa0] sm:$0xf] }
  0xb4   :  { %2721 = vmatpush.bf16.msra.mxu1 %v4439_v5  ;;  %v5287_v5 = vld [vmem:[#allocation5 + $0xad4] sm:$0xf0] }
  0xb5   :  { %2735 = vmatpush.bf16.msra.mxu2 %v4503_v6  ;;  %v4790_v6 = vld [vmem:[#allocation5 + $0xb50] sm:$0xf]  ;;  %v4727_v12 = vor.u32 %v5287_v5, %v4726_v3 }
  0xb6   :  { %2749 = vmatpush.bf16.msra.mxu3 %v4567_v11  ;;  %v4663_v11 = vor.u32 %v5271_v2, %v4662_v0  ;;  %v4791_v13 = vor.u32 %v5303_v7, %v4790_v6  ;;  %v5313_v0 = vld [vmem:[#allocation5 + $0xba4] sm:$0xf0]  ;;  %v4639_v2 = vor.u32 %v5265_v53, %v4638_v52  ;;  %v4630_v3 = vld [vmem:[#allocation5 + $0xa10] sm:$0xf]  ;;  %v5263_v6 = vld [vmem:[#allocation5 + $0xa14] sm:$0xf0] }
  0xb7   :  { %2708 = vmatpush.bf16.msra.mxu0 %v4367_v19  ;;  %v5285_v19 = vld [vmem:[#allocation5 + $0xac4] sm:$0xf0]  ;;  %v4694_v7 = vld [vmem:[#allocation5 + $0xa90] sm:$0xf] }
  0xb8   :  { %2722 = vmatpush.bf16.msra.mxu1 %v4431_v23  ;;  %v5317_v23 = vld [vmem:[#allocation5 + $0xbc4] sm:$0xf0]  ;;  %v4719_v25 = vor.u32 %v5285_v19, %v4718_v16  ;;  %v4686_v19 = vld [vmem:[#allocation5 + $0xa80] sm:$0xf] }
  0xb9   :  { %2736 = vmatpush.bf16.msra.mxu2 %v4495_v24  ;;  %v4655_v24 = vor.u32 %v5269_v15, %v4654_v14  ;;  %v4847_v30 = vor.u32 %v5317_v23, %v4846_v22  ;;  %v5311_v14 = vld [vmem:[#allocation5 + $0xb94] sm:$0xf0]  ;;  %v4622_v15 = vld [vmem:[#allocation5 + $0xa00] sm:$0xf]  ;;  %v5261_v16 = vld [vmem:[#allocation5 + $0xa04] sm:$0xf0]  ;;  %v4695_v23 = vor.u32 %v5279_v8, %v4694_v7  ;;  %v4687_v52 = vor.u32 %v5277_v20, %v4686_v19 }
  0xba   :  { %2750 = vmatpush.bf16.msra.mxu3 %v4559_v28  ;;  %2709 = vmatmul.bf16.vlgmr.msra.gmra.mxu0 %v5618_v51  ;;  %v5267_v28 = vld [vmem:[#allocation5 + $0xa34] sm:$0xf0]  ;;  %v5293_v22 = vld [vmem:[#allocation5 + $0xb04] sm:$0xf0]  ;;  %v4968_v7 = vld [vmem:[#allocation5 + $0xe4] sm:$0xf] }
  0xbb   :  { %2757 = vmatpush.bf16.msrb.mxu0 %v4679_v29  ;;  %2723 = vmatmul.bf16.vlgmr.msra.gmra.mxu1 %v5622_v56  ;;  %v4710_v29 = vld [vmem:[#allocation5 + $0xab0] sm:$0xf]  ;;  %v4647_v48 = vor.u32 %v5267_v28, %v4646_v27  ;;  %v4954_v27 = vld [vmem:[#allocation5 + $0x74] sm:$0xf]  ;;  %v4751_v53 = vor.u32 %v5293_v22, %v4750_v21 }
  0xbc   :  { %2771 = vmatpush.bf16.msrb.mxu1 %v4743_v37  ;;  %2737 = vmatmul.bf16.vlgmr.msra.gmra.mxu2 %v5620_v55  ;;  %v5299_v37 = vld [vmem:[#allocation5 + $0xb34] sm:$0xf0]  ;;  %v4711_v49 = vor.u32 %v5283_v33, %v4710_v29  ;;  %v3400_v29 = vld [vmem:[#allocation5 + $0x78] sm:$0xf0] }
  0xbd   :  { %2785 = vmatpush.bf16.msrb.mxu2 %v4807_v42  ;;  %2751 = vmatmul.bf16.vlgmr.msra.gmra.mxu3 %v5624_v60  ;;  %v4838_v42 = vld [vmem:[#allocation5 + $0xbb0] sm:$0xf]  ;;  %v3464_v33 = vld [vmem:[#allocation5 + $0xf8] sm:$0xf0] }
  0xbe   :  { %2799 = vmatpush.bf16.msrb.mxu3 %v4871_v50  ;;  %v4775_v50 = vor.u32 %v5299_v37, %v4774_v34  ;;  %v4839_v57 = vor.u32 %v5315_v45, %v4838_v42  ;;  %v4986_v34 = vld [vmem:[#allocation5 + $0x174] sm:$0xf]  ;;  %v3528_v37 = vld [vmem:[#allocation5 + $0x178] sm:$0xf0]  ;;  %v4623_v45 = vor.u32 %v5261_v16, %v4622_v15  ;;  %v5000_v16 = vld [vmem:[#allocation5 + $0x1e4] sm:$0xf] }
  0xbf   :  { %2758 = vmatpush.bf16.msrb.mxu0 %v4671_v61  ;;  %v4766_v61 = vld [vmem:[#allocation5 + $0xb20] sm:$0xf]  ;;  %v5002_v42 = vld [vmem:[#allocation5 + $0x1f4] sm:$0xf] }
  0xc0   :  { %2772 = vmatpush.bf16.msrb.mxu1 %v4735_v62  ;;  %v5297_v62 = vld [vmem:[#allocation5 + $0xb24] sm:$0xf0] }
  0xc1   :  { %2786 = vmatpush.bf16.msrb.mxu2 %v4799_v63  ;;  %v4830_v63 = vld [vmem:[#allocation5 + $0xba0] sm:$0xf]  ;;  %v4767_v5 = vor.u32 %v5297_v62, %v4766_v61  ;;  %v3403_v62 = vor.u32 %v4954_v27, %v3400_v29  ;;  %v3448_v27 = vld [vmem:[#allocation5 + $0xd8] sm:$0xf0] }
  0xc2   :  { %2800 = vmatpush.bf16.msrb.mxu3 %v4863_v4  ;;  %v4703_v4 = vor.u32 %v5281_v59, %v4702_v54  ;;  %v4831_v9 = vor.u32 %v5313_v0, %v4830_v63  ;;  %v117_v54 = vld [vmem:[#allocation2 + $0xb0] sm:$0xff]  ;;  %v116_v59 = vld [vmem:[#allocation2 + $0xa8] sm:$0xff]  ;;  %v118_v0 = vld [vmem:[#allocation2 + $0xb8] sm:$0xff] }
  0xc3   :  { %2759 = vmatpush.bf16.msrb.mxu0 %v4663_v11  ;;  %v4758_v11 = vld [vmem:[#allocation5 + $0xb10] sm:$0xf]  ;;  %v140_v63 = vld [vmem:[#allocation2 + $0x168] sm:$0xff]  ;;  %v3512_v29 = vld [vmem:[#allocation5 + $0x158] sm:$0xf0] }
  0xc4   :  { %2773 = vmatpush.bf16.msrb.mxu1 %v4727_v12  ;;  %v5295_v12 = vld [vmem:[#allocation5 + $0xb14] sm:$0xf0]  ;;  %v5634_v15 = vpack.c.bf16 %v140_v63, %v116_v59  ;;  %v3568_v59 = vld [vmem:[#allocation5 + $0x1c8] sm:$0xf0] }
  0xc5   :  { %2787 = vmatpush.bf16.msrb.mxu2 %v4791_v13  ;;  %v4822_v13 = vld [vmem:[#allocation5 + $0xb90] sm:$0xf] }
  0xc6   :  { %2801 = vmatpush.bf16.msrb.mxu3 %v4855_v18  ;;  %v4631_v18 = vor.u32 %v5263_v6, %v4630_v3  ;;  %v4823_v28 = vor.u32 %v5311_v14, %v4822_v13  ;;  %v3392_v6 = vld [vmem:[#allocation5 + $0x68] sm:$0xf0] }
  0xc7   :  { %2760 = vmatpush.bf16.msrb.mxu0 %v4655_v24  ;;  %v4759_v24 = vor.u32 %v5295_v12, %v4758_v11  ;;  %v3456_v11 = vld [vmem:[#allocation5 + $0xe8] sm:$0xf0]  ;;  %v4984_v12 = vld [vmem:[#allocation5 + $0x164] sm:$0xf] }
  0xc8   :  { %2774 = vmatpush.bf16.msrb.mxu1 %v4719_v25  ;;  %v4814_v25 = vld [vmem:[#allocation5 + $0xb80] sm:$0xf]  ;;  %v3520_v13 = vld [vmem:[#allocation5 + $0x168] sm:$0xf0]  ;;  %v3459_v21 = vor.u32 %v4968_v7, %v3456_v11  ;;  %v3496_v7 = vld [vmem:[#allocation5 + $0x138] sm:$0xf0] }
  0xc9   :  { %2788 = vmatpush.bf16.msrb.mxu2 %v4783_v26  ;;  %v5309_v26 = vld [vmem:[#allocation5 + $0xb84] sm:$0xf0]  ;;  %v3523_v22 = vor.u32 %v4984_v12, %v3520_v13  ;;  %v3560_v11 = vld [vmem:[#allocation5 + $0x1b8] sm:$0xf0] }
  0xca   :  { %2802 = vmatpush.bf16.msrb.mxu3 %v4847_v30  ;;  %v4970_v30 = vld [vmem:[#allocation5 + $0xf4] sm:$0xf]  ;;  %v4815_v61 = vor.u32 %v5309_v26, %v4814_v25 }
  0xcb   :  { %2761 = vmatpush.bf16.msrb.mxu0 %v4647_v48  ;;  %v3592_v48 = vld [vmem:[#allocation5 + $0x1f8] sm:$0xf0]  ;;  %v3467_v3 = vor.u32 %v4970_v30, %v3464_v33  ;;  %v4966_v25 = vld [vmem:[#allocation5 + $0xd4] sm:$0xf] }
  0xcc   :  { %2775 = vmatpush.bf16.msrb.mxu1 %v4711_v49  ;;  %v115_v49 = vld [vmem:[#allocation2 + $0xa0] sm:$0xff]  ;;  %v3595_v8 = vor.u32 %v5002_v42, %v3592_v48  ;;  %v4998_v30 = vld [vmem:[#allocation5 + $0x1d4] sm:$0xf]  ;;  %v3576_v33 = vld [vmem:[#allocation5 + $0x1d8] sm:$0xf0] }
  0xcd   :  { %2789 = vmatpush.bf16.msrb.mxu2 %v4775_v50  ;;  %v139_v50 = vld [vmem:[#allocation2 + $0x160] sm:$0xff]  ;;  %v3376_v48 = vld [vmem:[#allocation5 + $0x48] sm:$0xf0] }
  0xce   :  { %2803 = vmatpush.bf16.msrb.mxu3 %v4839_v57  ;;  %v141_v57 = vld [vmem:[#allocation2 + $0x170] sm:$0xff] }
  0xcf   :  { %2762 = vmatpush.bf16.msrb.mxu0 %v4639_v2  ;;  %v142_v2 = vld [vmem:[#allocation2 + $0x178] sm:$0xff]  ;;  %v5632_v14 = vpack.c.bf16 %v141_v57, %v117_v54  ;;  %v3504_v54 = vld [vmem:[#allocation5 + $0x148] sm:$0xf0]  ;;  %v4996_v57 = vld [vmem:[#allocation5 + $0x1c4] sm:$0xf] }
  0xd0   :  { %2776 = vmatpush.bf16.msrb.mxu1 %v4703_v4  ;;  %v3531_v4 = vor.u32 %v4986_v34, %v3528_v37  ;;  %v5636_v19 = vpack.c.bf16 %v142_v2, %v118_v0  ;;  %v3451_v37 = vor.u32 %v4966_v25, %v3448_v27  ;;  %v4946_v0 = vld [vmem:[#allocation5 + $0x34] sm:$0xf]  ;;  %v3368_v2 = vld [vmem:[#allocation5 + $0x38] sm:$0xf0]  ;;  %v3488_v25 = vld [vmem:[#allocation5 + $0x128] sm:$0xf0] }
  0xd1   :  { %2790 = vmatpush.bf16.msrb.mxu2 %v4767_v5  ;;  %v4952_v5 = vld [vmem:[#allocation5 + $0x64] sm:$0xf]  ;;  %v3371_v12 = vor.u32 %v4946_v0, %v3368_v2  ;;  %v3552_v27 = vld [vmem:[#allocation5 + $0x1a8] sm:$0xf0] }
  0xd2   :  { %2804 = vmatpush.bf16.msrb.mxu3 %v4831_v9  ;;  %v5630_v9 = vpack.c.bf16 %v139_v50, %v115_v49  ;;  %v3395_v20 = vor.u32 %v4952_v5, %v3392_v6  ;;  %v4964_v49 = vld [vmem:[#allocation5 + $0xc4] sm:$0xf]  ;;  %v3579_v50 = vor.u32 %v4998_v30, %v3576_v33  ;;  %v3432_v5 = vld [vmem:[#allocation5 + $0xb8] sm:$0xf0]  ;;  %v4978_v6 = vld [vmem:[#allocation5 + $0x134] sm:$0xf] }
  0xd3   :  { %2763 = vmatpush.bf16.msrb.mxu0 %v4631_v18  ;;  %v3584_v18 = vld [vmem:[#allocation5 + $0x1e8] sm:$0xf0]  ;;  %v4942_v33 = vld [vmem:[#allocation5 + $0x14] sm:$0xf]  ;;  %v4972_v0 = vld [vmem:[#allocation5 + $0x104] sm:$0xf] }
  0xd4   :  { %2777 = vmatpush.bf16.msrb.mxu1 %v4695_v23  ;;  %v4950_v23 = vld [vmem:[#allocation5 + $0x54] sm:$0xf]  ;;  %v3587_v26 = vor.u32 %v5000_v16, %v3584_v18  ;;  %v3499_v16 = vor.u32 %v4978_v6, %v3496_v7  ;;  %v4944_v18 = vld [vmem:[#allocation5 + $0x24] sm:$0xf]  ;;  %v3656_v7 = vld [vmem:[#allocation5 + $0x278] sm:$0xf0] }
  0xd5   :  { %2791 = vmatpush.bf16.msrb.mxu2 %v4759_v24  ;;  %v3384_v24 = vld [vmem:[#allocation5 + $0x58] sm:$0xf0]  ;;  %v5018_v6 = vld [vmem:[#allocation5 + $0x274] sm:$0xf] }
  0xd6   :  { %2805 = vmatpush.bf16.msrb.mxu3 %v4823_v28  ;;  %v4982_v28 = vld [vmem:[#allocation5 + $0x154] sm:$0xf]  ;;  %v3387_v34 = vor.u32 %v4950_v23, %v3384_v24  ;;  %v3424_v23 = vld [vmem:[#allocation5 + $0xa8] sm:$0xf0]  ;;  %v4976_v24 = vld [vmem:[#allocation5 + $0x124] sm:$0xf] }
  0xd7   :  { %2764 = vmatpush.bf16.msrb.mxu0 %v4623_v45  ;;  %v3515_v42 = vor.u32 %v4982_v28, %v3512_v29  ;;  %v4948_v45 = vld [vmem:[#allocation5 + $0x44] sm:$0xf]  ;;  %v3491_v30 = vor.u32 %v4976_v24, %v3488_v25  ;;  %v3659_v24 = vor.u32 %v5018_v6, %v3656_v7  ;;  %v3632_v6 = vld [vmem:[#allocation5 + $0x248] sm:$0xf0] }
  0xd8   :  { %2778 = vmatpush.bf16.msrb.mxu1 %v4687_v52  ;;  %v3440_v52 = vld [vmem:[#allocation5 + $0xc8] sm:$0xf0]  ;;  %v5028_v7 = vld [vmem:[#allocation5 + $0x2c4] sm:$0xf] }
  0xd9   :  { %2792 = vmatpush.bf16.msrb.mxu2 %v4751_v53  ;;  %v4980_v53 = vld [vmem:[#allocation5 + $0x144] sm:$0xf] }
  0xda   :  { %2806 = vmatpush.bf16.msrb.mxu3 %v4815_v61  ;;  %2765 = vmatmul.bf16.vlgmr.msrb.gmra.mxu0 %v5630_v9  ;;  %v3379_v61 = vor.u32 %v4948_v45, %v3376_v48  ;;  %v3507_v63 = vor.u32 %v4980_v53, %v3504_v54  ;;  %v3416_v45 = vld [vmem:[#allocation5 + $0x98] sm:$0xf0]  ;;  %v4974_v48 = vld [vmem:[#allocation5 + $0x114] sm:$0xf]  ;;  %v4940_v54 = vld [vmem:[#allocation5 + $0x4] sm:$0xf] }
  0xdb   :  { %2813 = vmatpush.bf16.msra.mxu0 %v3403_v62  ;;  %2779 = vmatmul.bf16.vlgmr.msrb.gmra.mxu1 %v5634_v15  ;;  %v3443_v62 = vor.u32 %v4964_v49, %v3440_v52  ;;  %v3480_v49 = vld [vmem:[#allocation5 + $0x118] sm:$0xf0] }
  0xdc   :  { %2827 = vmatpush.bf16.msra.mxu1 %v3467_v3  ;;  %2793 = vmatmul.bf16.vlgmr.msrb.gmra.mxu2 %v5632_v14  ;;  %v4962_v3 = vld [vmem:[#allocation5 + $0xb4] sm:$0xf]  ;;  %v3544_v52 = vld [vmem:[#allocation5 + $0x198] sm:$0xf0] }
  0xdd   :  { %2841 = vmatpush.bf16.msra.mxu2 %v3531_v4  ;;  %2807 = vmatmul.bf16.vlgmr.msrb.gmra.mxu3 %v5636_v19  ;;  %v3571_v4 = vor.u32 %v4996_v57, %v3568_v59  ;;  %v3435_v13 = vor.u32 %v4962_v3, %v3432_v5  ;;  %v3344_v57 = vld [vmem:[#allocation5 + $0x8] sm:$0xf0] }
  0xde   :  { %2855 = vmatpush.bf16.msra.mxu3 %v3595_v8  ;;  %v4994_v8 = vld [vmem:[#allocation5 + $0x1b4] sm:$0xf]  ;;  %v3472_v3 = vld [vmem:[#allocation5 + $0x108] sm:$0xf0] }
  0xdf   :  { %2814 = vmatpush.bf16.msra.mxu0 %v3395_v20  ;;  %v3360_v20 = vld [vmem:[#allocation5 + $0x28] sm:$0xf0] }
  0xe0   :  { %2828 = vmatpush.bf16.msra.mxu1 %v3459_v21  ;;  %v4960_v21 = vld [vmem:[#allocation5 + $0xa4] sm:$0xf]  ;;  %v3363_v28 = vor.u32 %v4944_v18, %v3360_v20  ;;  %v3536_v5 = vld [vmem:[#allocation5 + $0x188] sm:$0xf0]  ;;  %v3475_v20 = vor.u32 %v4972_v0, %v3472_v3  ;;  %v3832_v0 = vld [vmem:[#allocation5 + $0x3d8] sm:$0xf0] }
  0xe1   :  { %2842 = vmatpush.bf16.msra.mxu2 %v3523_v22  ;;  %v3563_v22 = vor.u32 %v4994_v8, %v3560_v11  ;;  %v3427_v29 = vor.u32 %v4960_v21, %v3424_v23  ;;  %v5034_v8 = vld [vmem:[#allocation5 + $0x2f4] sm:$0xf]  ;;  %v3347_v11 = vor.u32 %v4940_v54, %v3344_v57 }
  0xe2   :  { %2856 = vmatpush.bf16.msra.mxu3 %v3587_v26  ;;  %v4992_v26 = vld [vmem:[#allocation5 + $0x1a4] sm:$0xf]  ;;  %v5066_v21 = vld [vmem:[#allocation5 + $0x3f4] sm:$0xf] }
  0xe3   :  { %2815 = vmatpush.bf16.msra.mxu0 %v3387_v34  ;;  %v3352_v34 = vld [vmem:[#allocation5 + $0x18] sm:$0xf0]  ;;  %v5030_v54 = vld [vmem:[#allocation5 + $0x2d4] sm:$0xf] }
  0xe4   :  { %2829 = vmatpush.bf16.msra.mxu1 %v3451_v37  ;;  %v4958_v37 = vld [vmem:[#allocation5 + $0x94] sm:$0xf]  ;;  %v3355_v53 = vor.u32 %v4942_v33, %v3352_v34  ;;  %v3712_v33 = vld [vmem:[#allocation5 + $0x2e8] sm:$0xf0]  ;;  %v5048_v34 = vld [vmem:[#allocation5 + $0x364] sm:$0xf] }
  0xe5   :  { %2843 = vmatpush.bf16.msra.mxu2 %v3515_v42  ;;  %v3555_v42 = vor.u32 %v4992_v26, %v3552_v27  ;;  %v3419_v59 = vor.u32 %v4958_v37, %v3416_v45  ;;  %v5016_v27 = vld [vmem:[#allocation5 + $0x264] sm:$0xf]  ;;  %v3776_v37 = vld [vmem:[#allocation5 + $0x368] sm:$0xf0] }
  0xe6   :  { %2857 = vmatpush.bf16.msra.mxu3 %v3579_v50  ;;  %v4990_v50 = vld [vmem:[#allocation5 + $0x194] sm:$0xf]  ;;  %v3840_v45 = vld [vmem:[#allocation5 + $0x3e8] sm:$0xf0] }
  0xe7   :  { %2816 = vmatpush.bf16.msra.mxu0 %v3379_v61  ;;  %v3483_v61 = vor.u32 %v4974_v48, %v3480_v49  ;;  %v3547_v2 = vor.u32 %v4990_v50, %v3544_v52  ;;  %v3779_v50 = vor.u32 %v5048_v34, %v3776_v37  ;;  %v5014_v52 = vld [vmem:[#allocation5 + $0x254] sm:$0xf]  ;;  %v3616_v34 = vld [vmem:[#allocation5 + $0x228] sm:$0xf0]  ;;  %v5024_v37 = vld [vmem:[#allocation5 + $0x2a4] sm:$0xf] }
  0xe8   :  { %2830 = vmatpush.bf16.msra.mxu1 %v3443_v62  ;;  %v4956_v62 = vld [vmem:[#allocation5 + $0x84] sm:$0xf] }
  0xe9   :  { %2844 = vmatpush.bf16.msra.mxu2 %v3507_v63  ;;  %v3408_v63 = vld [vmem:[#allocation5 + $0x88] sm:$0xf0] }
  0xea   :  { %2858 = vmatpush.bf16.msra.mxu3 %v3571_v4  ;;  %v4988_v4 = vld [vmem:[#allocation5 + $0x184] sm:$0xf]  ;;  %v3411_v18 = vor.u32 %v4956_v62, %v3408_v63  ;;  %v3768_v62 = vld [vmem:[#allocation5 + $0x358] sm:$0xf0]  ;;  %v5062_v63 = vld [vmem:[#allocation5 + $0x3d4] sm:$0xf] }
  0xeb   :  { %2817 = vmatpush.bf16.msra.mxu0 %v3371_v12  ;;  %v3720_v12 = vld [vmem:[#allocation5 + $0x2f8] sm:$0xf0]  ;;  %v3539_v23 = vor.u32 %v4988_v4, %v3536_v5  ;;  %v5012_v5 = vld [vmem:[#allocation5 + $0x244] sm:$0xf] }
  0xec   :  { %2831 = vmatpush.bf16.msra.mxu1 %v3435_v13  ;;  %v5050_v13 = vld [vmem:[#allocation5 + $0x374] sm:$0xf]  ;;  %v3723_v25 = vor.u32 %v5034_v8, %v3720_v12  ;;  %v3835_v8 = vor.u32 %v5062_v63, %v3832_v0  ;;  %v3760_v12 = vld [vmem:[#allocation5 + $0x348] sm:$0xf0]  ;;  %v3672_v0 = vld [vmem:[#allocation5 + $0x298] sm:$0xf0] }
  0xed   :  { %2845 = vmatpush.bf16.msra.mxu2 %v3499_v16  ;;  %v3784_v16 = vld [vmem:[#allocation5 + $0x378] sm:$0xf0] }
  0xee   :  { %2859 = vmatpush.bf16.msra.mxu3 %v3563_v22  ;;  %v3848_v22 = vld [vmem:[#allocation5 + $0x3f8] sm:$0xf0]  ;;  %v3787_v26 = vor.u32 %v5050_v13, %v3784_v16  ;;  %v5060_v13 = vld [vmem:[#allocation5 + $0x3c4] sm:$0xf] }
  0xef   :  { %2818 = vmatpush.bf16.msra.mxu0 %v3363_v28  ;;  %v3648_v28 = vld [vmem:[#allocation5 + $0x268] sm:$0xf0] }
  0xf0   :  { %2832 = vmatpush.bf16.msra.mxu1 %v3427_v29  ;;  %v5032_v29 = vld [vmem:[#allocation5 + $0x2e4] sm:$0xf]  ;;  %v3651_v48 = vor.u32 %v5016_v27, %v3648_v28  ;;  %v3816_v27 = vld [vmem:[#allocation5 + $0x3b8] sm:$0xf0] }
  0xf1   :  { %2846 = vmatpush.bf16.msra.mxu2 %v3491_v30  ;;  %v3851_v30 = vor.u32 %v5066_v21, %v3848_v22  ;;  %v3715_v49 = vor.u32 %v5032_v29, %v3712_v33  ;;  %v5026_v21 = vld [vmem:[#allocation5 + $0x2b4] sm:$0xf]  ;;  %v5008_v33 = vld [vmem:[#allocation5 + $0x224] sm:$0xf] }
  0xf2   :  { %2860 = vmatpush.bf16.msra.mxu3 %v3555_v42  ;;  %v5064_v42 = vld [vmem:[#allocation5 + $0x3e4] sm:$0xf] }
  0xf3   :  { %2819 = vmatpush.bf16.msra.mxu0 %v3355_v53  ;;  %v3640_v53 = vld [vmem:[#allocation5 + $0x258] sm:$0xf0]  ;;  %v3843_v57 = vor.u32 %v5064_v42, %v3840_v45  ;;  %v3680_v45 = vld [vmem:[#allocation5 + $0x2a8] sm:$0xf0] }
  0xf4   :  { %2833 = vmatpush.bf16.msra.mxu1 %v3419_v59  ;;  %v3704_v59 = vld [vmem:[#allocation5 + $0x2d8] sm:$0xf0] }
  0xf5   :  { %2847 = vmatpush.bf16.msra.mxu2 %v3483_v61  ;;  %v5046_v61 = vld [vmem:[#allocation5 + $0x354] sm:$0xf]  ;;  %v3707_v3 = vor.u32 %v5030_v54, %v3704_v59  ;;  %v3683_v54 = vor.u32 %v5024_v37, %v3680_v45  ;;  %v5080_v45 = vld [vmem:[#allocation5 + $0x464] sm:$0xf] }
  0xf6   :  { %2861 = vmatpush.bf16.msra.mxu3 %v3547_v2  ;;  %v3643_v2 = vor.u32 %v5014_v52, %v3640_v53  ;;  %v3771_v4 = vor.u32 %v5046_v61, %v3768_v62  ;;  %v3808_v52 = vld [vmem:[#allocation5 + $0x3a8] sm:$0xf0]  ;;  %v3619_v53 = vor.u32 %v5008_v33, %v3616_v34  ;;  %v5006_v59 = vld [vmem:[#allocation5 + $0x214] sm:$0xf]  ;;  %v3608_v61 = vld [vmem:[#allocation5 + $0x218] sm:$0xf0] }
  0xf7   :  { %2820 = vmatpush.bf16.msra.mxu0 %v3347_v11  ;;  %v5044_v11 = vld [vmem:[#allocation5 + $0x344] sm:$0xf]  ;;  %v5022_v62 = vld [vmem:[#allocation5 + $0x294] sm:$0xf] }
  0xf8   :  { %2834 = vmatpush.bf16.msra.mxu1 %v3411_v18  ;;  %v5010_v18 = vld [vmem:[#allocation5 + $0x234] sm:$0xf] }
  0xf9   :  { %2848 = vmatpush.bf16.msra.mxu2 %v3475_v20  ;;  %v3624_v20 = vld [vmem:[#allocation5 + $0x238] sm:$0xf0] }
  0xfa   :  { %2862 = vmatpush.bf16.msra.mxu3 %v3539_v23  ;;  %2821 = vmatmul.bf16.vlgmr.msra.gmra.mxu0 %v5570_v58  ;;  %v3696_v58 = vld [vmem:[#allocation5 + $0x2c8] sm:$0xf0]  ;;  %v3688_v23 = vld [vmem:[#allocation5 + $0x2b8] sm:$0xf0]  ;;  %v3627_v28 = vor.u32 %v5010_v18, %v3624_v20  ;;  %v5082_v20 = vld [vmem:[#allocation5 + $0x474] sm:$0xf] }
  0xfb   :  { %2869 = vmatpush.bf16.msrb.mxu0 %v3659_v24  ;;  %2835 = vmatmul.bf16.vlgmr.msra.gmra.mxu1 %v5576_v10  ;;  %v3635_v10 = vor.u32 %v5012_v5, %v3632_v6  ;;  %v3699_v16 = vor.u32 %v5028_v7, %v3696_v58  ;;  %v5042_v24 = vld [vmem:[#allocation5 + $0x334] sm:$0xf]  ;;  %v3691_v29 = vor.u32 %v5026_v21, %v3688_v23  ;;  %v3800_v5 = vld [vmem:[#allocation5 + $0x398] sm:$0xf0]  ;;  %v5004_v7 = vld [vmem:[#allocation5 + $0x204] sm:$0xf] }
  0xfc   :  { %2883 = vmatpush.bf16.msrb.mxu1 %v3723_v25  ;;  %2849 = vmatmul.bf16.vlgmr.msra.gmra.mxu2 %v5572_v1  ;;  %v3824_v1 = vld [vmem:[#allocation5 + $0x3c8] sm:$0xf0]  ;;  %v3752_v25 = vld [vmem:[#allocation5 + $0x338] sm:$0xf0]  ;;  %v3611_v6 = vor.u32 %v5006_v59, %v3608_v61  ;;  %v3675_v58 = vor.u32 %v5022_v62, %v3672_v0  ;;  %v5078_v0 = vld [vmem:[#allocation5 + $0x454] sm:$0xf] }
  0xfd   :  { %2897 = vmatpush.bf16.msrb.mxu2 %v3787_v26  ;;  %2863 = vmatmul.bf16.vlgmr.msra.gmra.mxu3 %v5578_v17  ;;  %v3763_v17 = vor.u32 %v5044_v11, %v3760_v12  ;;  %v3827_v22 = vor.u32 %v5060_v13, %v3824_v1  ;;  %v5058_v26 = vld [vmem:[#allocation5 + $0x3b4] sm:$0xf]  ;;  %v5020_v12 = vld [vmem:[#allocation5 + $0x284] sm:$0xf]  ;;  %v3664_v13 = vld [vmem:[#allocation5 + $0x288] sm:$0xf0] }
  0xfe   :  { %2911 = vmatpush.bf16.msrb.mxu3 %v3851_v30  ;;  %v3755_v30 = vor.u32 %v5042_v24, %v3752_v25  ;;  %v3819_v42 = vor.u32 %v5058_v26, %v3816_v27  ;;  %v5036_v1 = vld [vmem:[#allocation5 + $0x304] sm:$0xf]  ;;  %v3792_v18 = vld [vmem:[#allocation5 + $0x388] sm:$0xf0]  ;;  %v3912_v21 = vld [vmem:[#allocation5 + $0x478] sm:$0xf0]  ;;  %v3667_v27 = vor.u32 %v5020_v12, %v3664_v13 }
  0xff   :  { %2870 = vmatpush.bf16.msrb.mxu0 %v3651_v48  ;;  %v5040_v48 = vld [vmem:[#allocation5 + $0x324] sm:$0xf]  ;;  %v3976_v24 = vld [vmem:[#allocation5 + $0x4f8] sm:$0xf0]  ;;  %v5114_v25 = vld [vmem:[#allocation5 + $0x574] sm:$0xf]  ;;  %v3915_v34 = vor.u32 %v5082_v20, %v3912_v21 }
 0x100   :  { %2884 = vmatpush.bf16.msrb.mxu1 %v3715_v49  ;;  %v3744_v49 = vld [vmem:[#allocation5 + $0x328] sm:$0xf0]  ;;  %v4040_v26 = vld [vmem:[#allocation5 + $0x578] sm:$0xf0]  ;;  %v5124_v20 = vld [vmem:[#allocation5 + $0x5c4] sm:$0xf] }
 0x101   :  { %2898 = vmatpush.bf16.msrb.mxu2 %v3779_v50  ;;  %v5056_v50 = vld [vmem:[#allocation5 + $0x3a4] sm:$0xf]  ;;  %v4096_v59 = vld [vmem:[#allocation5 + $0x5e8] sm:$0xf0] }
 0x102   :  { %2912 = vmatpush.bf16.msrb.mxu3 %v3843_v57  ;;  %v3747_v57 = vor.u32 %v5040_v48, %v3744_v49  ;;  %v3811_v63 = vor.u32 %v5056_v50, %v3808_v52  ;;  %v3904_v48 = vld [vmem:[#allocation5 + $0x468] sm:$0xf0]  ;;  %v5096_v49 = vld [vmem:[#allocation5 + $0x4e4] sm:$0xf] }
 0x103   :  { %2871 = vmatpush.bf16.msrb.mxu0 %v3643_v2  ;;  %v5038_v2 = vld [vmem:[#allocation5 + $0x314] sm:$0xf]  ;;  %v3968_v52 = vld [vmem:[#allocation5 + $0x4e8] sm:$0xf0]  ;;  %v3907_v61 = vor.u32 %v5080_v45, %v3904_v48  ;;  %v5072_v45 = vld [vmem:[#allocation5 + $0x424] sm:$0xf] }
 0x104   :  { %2885 = vmatpush.bf16.msrb.mxu1 %v3707_v3  ;;  %v3736_v3 = vld [vmem:[#allocation5 + $0x318] sm:$0xf0]  ;;  %v3971_v62 = vor.u32 %v5096_v49, %v3968_v52  ;;  %v3872_v48 = vld [vmem:[#allocation5 + $0x428] sm:$0xf0]  ;;  %v5088_v49 = vld [vmem:[#allocation5 + $0x4a4] sm:$0xf] }
 0x105   :  { %2899 = vmatpush.bf16.msrb.mxu2 %v3771_v4  ;;  %v5054_v4 = vld [vmem:[#allocation5 + $0x394] sm:$0xf]  ;;  %v3739_v11 = vor.u32 %v5038_v2, %v3736_v3  ;;  %v3896_v2 = vld [vmem:[#allocation5 + $0x458] sm:$0xf0]  ;;  %v3936_v52 = vld [vmem:[#allocation5 + $0x4a8] sm:$0xf0] }
 0x106   :  { %2913 = vmatpush.bf16.msrb.mxu3 %v3835_v8  ;;  %v3600_v8 = vld [vmem:[#allocation5 + $0x208] sm:$0xf0]  ;;  %v5094_v3 = vld [vmem:[#allocation5 + $0x4d4] sm:$0xf] }
 0x107   :  { %2872 = vmatpush.bf16.msrb.mxu0 %v3635_v10  ;;  %v3803_v10 = vor.u32 %v5054_v4, %v3800_v5  ;;  %v3603_v23 = vor.u32 %v5004_v7, %v3600_v8  ;;  %v3960_v5 = vld [vmem:[#allocation5 + $0x4d8] sm:$0xf0]  ;;  %v5126_v8 = vld [vmem:[#allocation5 + $0x5d4] sm:$0xf] }
 0x108   :  { %2886 = vmatpush.bf16.msrb.mxu1 %v3699_v16  ;;  %v3728_v16 = vld [vmem:[#allocation5 + $0x308] sm:$0xf0]  ;;  %v4024_v7 = vld [vmem:[#allocation5 + $0x558] sm:$0xf0]  ;;  %v3963_v12 = vor.u32 %v5094_v3, %v3960_v5  ;;  %v5086_v3 = vld [vmem:[#allocation5 + $0x494] sm:$0xf] }
 0x109   :  { %2900 = vmatpush.bf16.msrb.mxu2 %v3763_v17  ;;  %v5052_v17 = vld [vmem:[#allocation5 + $0x384] sm:$0xf]  ;;  %v3928_v5 = vld [vmem:[#allocation5 + $0x498] sm:$0xf0] }
 0x10a   :  { %2914 = vmatpush.bf16.msrb.mxu3 %v3827_v22  ;;  %v5098_v22 = vld [vmem:[#allocation5 + $0x4f4] sm:$0xf]  ;;  %v3795_v33 = vor.u32 %v5052_v17, %v3792_v18  ;;  %v3952_v17 = vld [vmem:[#allocation5 + $0x4c8] sm:$0xf0]  ;;  %v5108_v18 = vld [vmem:[#allocation5 + $0x544] sm:$0xf] }
 0x10b   :  { %2873 = vmatpush.bf16.msrb.mxu0 %v3627_v28  ;;  %v3731_v28 = vor.u32 %v5036_v1, %v3728_v16  ;;  %v3979_v37 = vor.u32 %v5098_v22, %v3976_v24  ;;  %v5076_v1 = vld [vmem:[#allocation5 + $0x444] sm:$0xf]  ;;  %v3880_v24 = vld [vmem:[#allocation5 + $0x438] sm:$0xf0] }
 0x10c   :  { %2887 = vmatpush.bf16.msrb.mxu1 %v3691_v29  ;;  %v5130_v29 = vld [vmem:[#allocation5 + $0x5f4] sm:$0xf] }
 0x10d   :  { %2901 = vmatpush.bf16.msrb.mxu2 %v3755_v30  ;;  %v4104_v30 = vld [vmem:[#allocation5 + $0x5f8] sm:$0xf0] }
 0x10e   :  { %2915 = vmatpush.bf16.msrb.mxu3 %v3819_v42  ;;  %v4043_v42 = vor.u32 %v5114_v25, %v4040_v26  ;;  %v4107_v50 = vor.u32 %v5130_v29, %v4104_v30  ;;  %v5090_v25 = vld [vmem:[#allocation5 + $0x4b4] sm:$0xf]  ;;  %v4008_v29 = vld [vmem:[#allocation5 + $0x538] sm:$0xf0] }
 0x10f   :  { %2874 = vmatpush.bf16.msrb.mxu0 %v3619_v53  ;;  %v5112_v53 = vld [vmem:[#allocation5 + $0x564] sm:$0xf]  ;;  %v5122_v30 = vld [vmem:[#allocation5 + $0x5b4] sm:$0xf] }
 0x110   :  { %2888 = vmatpush.bf16.msrb.mxu1 %v3683_v54  ;;  %v4032_v54 = vld [vmem:[#allocation5 + $0x568] sm:$0xf0] }
 0x111   :  { %2902 = vmatpush.bf16.msrb.mxu2 %v3747_v57  ;;  %v5128_v57 = vld [vmem:[#allocation5 + $0x5e4] sm:$0xf] }
 0x112   :  { %2916 = vmatpush.bf16.msrb.mxu3 %v3811_v63  ;;  %v4035_v63 = vor.u32 %v5112_v53, %v4032_v54  ;;  %v4099_v4 = vor.u32 %v5128_v57, %v4096_v59  ;;  %v5104_v53 = vld [vmem:[#allocation5 + $0x524] sm:$0xf]  ;;  %v4000_v54 = vld [vmem:[#allocation5 + $0x528] sm:$0xf0] }
 0x113   :  { %2875 = vmatpush.bf16.msrb.mxu0 %v3611_v6  ;;  %v5110_v6 = vld [vmem:[#allocation5 + $0x554] sm:$0xf]  ;;  %v5120_v57 = vld [vmem:[#allocation5 + $0x5a4] sm:$0xf]  ;;  %v4064_v59 = vld [vmem:[#allocation5 + $0x5a8] sm:$0xf0] }
 0x114   :  { %2889 = vmatpush.bf16.msrb.mxu1 %v3675_v58  ;;  %v4088_v58 = vld [vmem:[#allocation5 + $0x5d8] sm:$0xf0]  ;;  %v4027_v13 = vor.u32 %v5110_v6, %v4024_v7  ;;  %v5102_v6 = vld [vmem:[#allocation5 + $0x514] sm:$0xf] }
 0x115   :  { %2903 = vmatpush.bf16.msrb.mxu2 %v3739_v11  ;;  %v3899_v11 = vor.u32 %v5078_v0, %v3896_v2  ;;  %v4091_v16 = vor.u32 %v5126_v8, %v4088_v58  ;;  %v5070_v0 = vld [vmem:[#allocation5 + $0x414] sm:$0xf]  ;;  %v3864_v2 = vld [vmem:[#allocation5 + $0x418] sm:$0xf0] }
 0x116   :  { %2917 = vmatpush.bf16.msrb.mxu3 %v3803_v10  ;;  %v5092_v10 = vld [vmem:[#allocation5 + $0x4c4] sm:$0xf]  ;;  %v3992_v7 = vld [vmem:[#allocation5 + $0x518] sm:$0xf0]  ;;  %v5118_v8 = vld [vmem:[#allocation5 + $0x594] sm:$0xf] }
 0x117   :  { %2876 = vmatpush.bf16.msrb.mxu0 %v3603_v23  ;;  %v5074_v23 = vld [vmem:[#allocation5 + $0x434] sm:$0xf]  ;;  %v4056_v58 = vld [vmem:[#allocation5 + $0x598] sm:$0xf0] }
 0x118   :  { %2890 = vmatpush.bf16.msrb.mxu1 %v3667_v27  ;;  %v3944_v27 = vld [vmem:[#allocation5 + $0x4b8] sm:$0xf0] }
 0x119   :  { %2904 = vmatpush.bf16.msrb.mxu2 %v3731_v28  ;;  %v5106_v28 = vld [vmem:[#allocation5 + $0x534] sm:$0xf] }
 0x11a   :  { %2918 = vmatpush.bf16.msrb.mxu3 %v3795_v33  ;;  %2877 = vmatmul.bf16.vlgmr.msrb.gmra.mxu0 %v5582_v39  ;;  %v3888_v39 = vld [vmem:[#allocation5 + $0x448] sm:$0xf0]  ;;  %v4072_v33 = vld [vmem:[#allocation5 + $0x5b8] sm:$0xf0] }
 0x11b   :  { %2925 = vmatpush.bf16.msra.mxu0 %v3915_v34  ;;  %2891 = vmatmul.bf16.vlgmr.msrb.gmra.mxu1 %v5586_v44  ;;  %v4080_v44 = vld [vmem:[#allocation5 + $0x5c8] sm:$0xf0]  ;;  %v3891_v21 = vor.u32 %v5076_v1, %v3888_v39  ;;  %v3883_v34 = vor.u32 %v5074_v23, %v3880_v24  ;;  %v3931_v1 = vor.u32 %v5086_v3, %v3928_v5  ;;  %v4232_v24 = vld [vmem:[#allocation5 + $0x6f8] sm:$0xf0]  ;;  %v5142_v3 = vld [vmem:[#allocation5 + $0x654] sm:$0xf] }
 0x11c   :  { %2939 = vmatpush.bf16.msra.mxu1 %v3979_v37  ;;  %2905 = vmatmul.bf16.vlgmr.msrb.gmra.mxu2 %v5584_v43  ;;  %v4016_v43 = vld [vmem:[#allocation5 + $0x548] sm:$0xf0]  ;;  %v4083_v26 = vor.u32 %v5124_v20, %v4080_v44  ;;  %v3947_v37 = vor.u32 %v5090_v25, %v3944_v27  ;;  %v3995_v39 = vor.u32 %v5102_v6, %v3992_v7  ;;  %v5116_v20 = vld [vmem:[#allocation5 + $0x584] sm:$0xf]  ;;  %v5178_v25 = vld [vmem:[#allocation5 + $0x774] sm:$0xf]  ;;  %v5654_v6 = vpop.f32.mrf.mxu2 }
 0x11d   :  { %2953 = vmatpush.bf16.msra.mxu2 %v4043_v42  ;;  %2919 = vmatmul.bf16.vlgmr.msrb.gmra.mxu3 %v5588_v47  ;;  %v3955_v47 = vor.u32 %v5092_v10, %v3952_v17  ;;  %v4019_v22 = vor.u32 %v5108_v18, %v4016_v43  ;;  %v4011_v42 = vor.u32 %v5106_v28, %v4008_v29  ;;  %v5084_v10 = vld [vmem:[#allocation5 + $0x484] sm:$0xf]  ;;  %v3984_v43 = vld [vmem:[#allocation5 + $0x508] sm:$0xf0]  ;;  %v5194_v29 = vld [vmem:[#allocation5 + $0x7f4] sm:$0xf] }
 0x11e   :  { %2967 = vmatpush.bf16.msra.mxu3 %v4107_v50  ;;  %v4075_v50 = vor.u32 %v5122_v30, %v4072_v33  ;;  %v5100_v17 = vld [vmem:[#allocation5 + $0x504] sm:$0xf]  ;;  %v4059_v18 = vor.u32 %v5118_v8, %v4056_v58  ;;  %v4048_v44 = vld [vmem:[#allocation5 + $0x588] sm:$0xf0]  ;;  %v4360_v30 = vld [vmem:[#allocation5 + $0x7f8] sm:$0xf0]  ;;  %v5650_v33 = vpop.f32.mrf.mxu0 }
 0x11f   :  { %2926 = vmatpush.bf16.msra.mxu0 %v3907_v61  ;;  %v3875_v61 = vor.u32 %v5072_v45, %v3872_v48  ;;  %v3987_v28 = vor.u32 %v5100_v17, %v3984_v43  ;;  %v5144_v48 = vld [vmem:[#allocation5 + $0x664] sm:$0xf]  ;;  %v5158_v5 = vld [vmem:[#allocation5 + $0x6d4] sm:$0xf]  ;;  %v4216_v8 = vld [vmem:[#allocation5 + $0x6d8] sm:$0xf0]  ;;  %v5662_v43 = vpop.f32.mrf.mxu3 }
 0x120   :  { %2940 = vmatpush.bf16.msra.mxu1 %v3971_v62  ;;  %v3939_v62 = vor.u32 %v5088_v49, %v3936_v52  ;;  %v4160_v49 = vld [vmem:[#allocation5 + $0x668] sm:$0xf0]  ;;  %v4363_v52 = vor.u32 %v5194_v29, %v4360_v30  ;;  %v5174_v58 = vld [vmem:[#allocation5 + $0x754] sm:$0xf]  ;;  %v5156_v17 = vld [vmem:[#allocation5 + $0x6c4] sm:$0xf] }
 0x121   :  { %2954 = vmatpush.bf16.msra.mxu2 %v4035_v63  ;;  %v4003_v63 = vor.u32 %v5104_v53, %v4000_v54  ;;  %v4224_v53 = vld [vmem:[#allocation5 + $0x6e8] sm:$0xf0]  ;;  %v5176_v54 = vld [vmem:[#allocation5 + $0x764] sm:$0xf]  ;;  %v4200_v29 = vld [vmem:[#allocation5 + $0x6b8] sm:$0xf0] }
 0x122   :  { %2968 = vmatpush.bf16.msra.mxu3 %v4099_v4  ;;  %v4067_v4 = vor.u32 %v5120_v57, %v4064_v59  ;;  %v4288_v57 = vld [vmem:[#allocation5 + $0x768] sm:$0xf0]  ;;  %v5192_v59 = vld [vmem:[#allocation5 + $0x7e4] sm:$0xf]  ;;  %v5170_v30 = vld [vmem:[#allocation5 + $0x734] sm:$0xf] }
 0x123   :  { %2927 = vmatpush.bf16.msra.mxu0 %v3899_v11  ;;  %v3867_v11 = vor.u32 %v5070_v0, %v3864_v2  ;;  %v4291_v2 = vor.u32 %v5176_v54, %v4288_v57  ;;  %v5152_v54 = vld [vmem:[#allocation5 + $0x6a4] sm:$0xf] }
 0x124   :  { %2941 = vmatpush.bf16.msra.mxu1 %v3963_v12  ;;  %v5068_v12 = vld [vmem:[#allocation5 + $0x404] sm:$0xf] }
 0x125   :  { %2955 = vmatpush.bf16.msra.mxu2 %v4027_v13  ;;  %v3856_v13 = vld [vmem:[#allocation5 + $0x408] sm:$0xf0] }
 0x126   :  { %2969 = vmatpush.bf16.msra.mxu3 %v4091_v16  ;;  %v3920_v16 = vld [vmem:[#allocation5 + $0x488] sm:$0xf0]  ;;  %v3859_v23 = vor.u32 %v5068_v12, %v3856_v13  ;;  %v5190_v12 = vld [vmem:[#allocation5 + $0x7d4] sm:$0xf]  ;;  %v4344_v13 = vld [vmem:[#allocation5 + $0x7d8] sm:$0xf0] }
 0x127   :  { %2928 = vmatpush.bf16.msra.mxu0 %v3891_v21  ;;  %v5146_v21 = vld [vmem:[#allocation5 + $0x674] sm:$0xf]  ;;  %v3923_v27 = vor.u32 %v5084_v10, %v3920_v16  ;;  %v5140_v16 = vld [vmem:[#allocation5 + $0x644] sm:$0xf] }
 0x128   :  { %2942 = vmatpush.bf16.msra.mxu1 %v3955_v47  ;;  %v4168_v47 = vld [vmem:[#allocation5 + $0x678] sm:$0xf0] }
 0x129   :  { %2956 = vmatpush.bf16.msra.mxu2 %v4019_v22  ;;  %v5162_v22 = vld [vmem:[#allocation5 + $0x6f4] sm:$0xf] }
 0x12a   :  { %2970 = vmatpush.bf16.msra.mxu3 %v4083_v26  ;;  %v4296_v26 = vld [vmem:[#allocation5 + $0x778] sm:$0xf0] }
 0x12b   :  { %2929 = vmatpush.bf16.msra.mxu0 %v3883_v34  ;;  %v4051_v34 = vor.u32 %v5116_v20, %v4048_v44  ;;  %v4299_v45 = vor.u32 %v5178_v25, %v4296_v26  ;;  %v5172_v20 = vld [vmem:[#allocation5 + $0x744] sm:$0xf]  ;;  %v4272_v44 = vld [vmem:[#allocation5 + $0x748] sm:$0xf0]  ;;  %v4136_v25 = vld [vmem:[#allocation5 + $0x638] sm:$0xf0] }
 0x12c   :  { %2943 = vmatpush.bf16.msra.mxu1 %v3947_v37  ;;  %v4171_v37 = vor.u32 %v5146_v21, %v4168_v47  ;;  %v5188_v21 = vld [vmem:[#allocation5 + $0x7c4] sm:$0xf]  ;;  %v5154_v26 = vld [vmem:[#allocation5 + $0x6b4] sm:$0xf] }
 0x12d   :  { %2957 = vmatpush.bf16.msra.mxu2 %v4011_v42  ;;  %v4235_v42 = vor.u32 %v5162_v22, %v4232_v24  ;;  %v5138_v24 = vld [vmem:[#allocation5 + $0x634] sm:$0xf] }
 0x12e   :  { %2971 = vmatpush.bf16.msra.mxu3 %v4075_v50  ;;  %v5160_v50 = vld [vmem:[#allocation5 + $0x6e4] sm:$0xf] }
 0x12f   :  { %2930 = vmatpush.bf16.msra.mxu0 %v3875_v61  ;;  %v4352_v61 = vld [vmem:[#allocation5 + $0x7e8] sm:$0xf0]  ;;  %v4227_v0 = vor.u32 %v5160_v50, %v4224_v53 }
 0x130   :  { %2944 = vmatpush.bf16.msra.mxu1 %v3939_v62  ;;  %v5652_v62 = vpop.f32.mrf.mxu1  ;;  %v4355_v7 = vor.u32 %v5192_v59, %v4352_v61  ;;  %v4128_v53 = vld [vmem:[#allocation5 + $0x628] sm:$0xf0]  ;;  %v5168_v61 = vld [vmem:[#allocation5 + $0x724] sm:$0xf] }
 0x131   :  { %2958 = vmatpush.bf16.msra.mxu2 %v4003_v63  ;;  %v4163_v63 = vor.u32 %v5144_v48, %v4160_v49  ;;  %v4139_v48 = vor.u32 %v5138_v24, %v4136_v25  ;;  %v4203_v49 = vor.u32 %v5154_v26, %v4200_v29  ;;  %v4192_v59 = vld [vmem:[#allocation5 + $0x6a8] sm:$0xf0]  ;;  %v5180_v26 = vld [vmem:[#allocation5 + $0x784] sm:$0xf]  ;;  %v5210_v29 = vld [vmem:[#allocation5 + $0x874] sm:$0xf] }
 0x132   :  { %2972 = vmatpush.bf16.msra.mxu3 %v4067_v4  ;;  %v4152_v4 = vld [vmem:[#allocation5 + $0x658] sm:$0xf0]  ;;  %v4240_v25 = vld [vmem:[#allocation5 + $0x708] sm:$0xf0] }
 0x133   :  { %2931 = vmatpush.bf16.msra.mxu0 %v3867_v11  ;;  %v4280_v11 = vld [vmem:[#allocation5 + $0x758] sm:$0xf0] }
 0x134   :  { %2945 = vmatpush.bf16.msra.mxu1 %v3931_v1  ;;  %v4155_v1 = vor.u32 %v5142_v3, %v4152_v4  ;;  %v4283_v10 = vor.u32 %v5174_v58, %v4280_v11  ;;  %v5668_v3 = vpop.f32.mrf.mxu3  ;;  %v5134_v58 = vld [vmem:[#allocation5 + $0x614] sm:$0xf]  ;;  %v4120_v11 = vld [vmem:[#allocation5 + $0x618] sm:$0xf0] }
 0x135   :  { %2959 = vmatpush.bf16.msra.mxu2 %v3995_v39  ;;  %v4219_v39 = vor.u32 %v5158_v5, %v4216_v8 }
 0x136   :  { %2973 = vmatpush.bf16.msra.mxu3 %v4059_v18  ;;  %v5660_v18 = vpop.f32.mrf.mxu0 }
 0x137   :  { %2932 = vmatpush.bf16.msra.mxu0 %v3859_v23  ;;  %v4275_v23 = vor.u32 %v5172_v20, %v4272_v44  ;;  %v4112_v20 = vld [vmem:[#allocation5 + $0x608] sm:$0xf0] }
 0x138   :  { %2946 = vmatpush.bf16.msra.mxu1 %v3923_v27  ;;  %v5664_v27 = vpop.f32.mrf.mxu1 }
 0x139   :  { %2960 = vmatpush.bf16.msra.mxu2 %v3987_v28 }
 0x13a   :  { %2974 = vmatpush.bf16.msra.mxu3 %v4051_v34  ;;  %2933 = vmatmul.bf16.vlgmr.msra.gmra.mxu0 %v5594_v31  ;;  %v4144_v31 = vld [vmem:[#allocation5 + $0x648] sm:$0xf0]  ;;  %v4264_v34 = vld [vmem:[#allocation5 + $0x738] sm:$0xf0] }
 0x13b   :  { %2981 = vmatpush.bf16.msrb.mxu0 %v4171_v37  ;;  %2947 = vmatmul.bf16.vlgmr.msra.gmra.mxu1 %v5598_v36  ;;  %v4208_v36 = vld [vmem:[#allocation5 + $0x6c8] sm:$0xf0]  ;;  %v4147_v47 = vor.u32 %v5140_v16, %v4144_v31  ;;  %v5186_v37 = vld [vmem:[#allocation5 + $0x7b4] sm:$0xf]  ;;  %v4267_v50 = vor.u32 %v5170_v30, %v4264_v34  ;;  %v4312_v31 = vld [vmem:[#allocation5 + $0x798] sm:$0xf0] }
 0x13c   :  { %2995 = vmatpush.bf16.msrb.mxu1 %v4235_v42  ;;  %2961 = vmatmul.bf16.vlgmr.msra.gmra.mxu2 %v5596_v35  ;;  %v4347_v35 = vor.u32 %v5190_v12, %v4344_v13  ;;  %v4211_v22 = vor.u32 %v5156_v17, %v4208_v36  ;;  %v4328_v42 = vld [vmem:[#allocation5 + $0x7b8] sm:$0xf0]  ;;  %v5150_v12 = vld [vmem:[#allocation5 + $0x694] sm:$0xf]  ;;  %v5132_v36 = vld [vmem:[#allocation5 + $0x604] sm:$0xf] }
 0x13d   :  { %3009 = vmatpush.bf16.msrb.mxu2 %v4299_v45  ;;  %2975 = vmatmul.bf16.vlgmr.msra.gmra.mxu3 %v5600_v40  ;;  %v4336_v40 = vld [vmem:[#allocation5 + $0x7c8] sm:$0xf0]  ;;  %v5666_v45 = vpop.f32.mrf.mxu2  ;;  %v4331_v57 = vor.u32 %v5186_v37, %v4328_v42  ;;  %v5182_v16 = vld [vmem:[#allocation5 + $0x794] sm:$0xf]  ;;  %v4424_v30 = vld [vmem:[#allocation5 + $0x878] sm:$0xf0]  ;;  %v4115_v37 = vor.u32 %v5132_v36, %v4112_v20 }
 0x13e   :  { %3023 = vmatpush.bf16.msrb.mxu3 %v4363_v52  ;;  %v4339_v28 = vor.u32 %v5188_v21, %v4336_v40  ;;  %v5136_v52 = vld [vmem:[#allocation5 + $0x624] sm:$0xf]  ;;  %v5670_v4 = vpop.f32.mrf.mxu0  ;;  %v4315_v24 = vor.u32 %v5182_v16, %v4312_v31  ;;  %v5226_v34 = vld [vmem:[#allocation5 + $0x8f4] sm:$0xf]  ;;  %v4488_v42 = vld [vmem:[#allocation5 + $0x8f8] sm:$0xf0] }
 0x13f   :  { %2982 = vmatpush.bf16.msrb.mxu0 %v4163_v63  ;;  %v4256_v63 = vld [vmem:[#allocation5 + $0x728] sm:$0xf0]  ;;  %v4131_v5 = vor.u32 %v5136_v52, %v4128_v53  ;;  %v5148_v40 = vld [vmem:[#allocation5 + $0x684] sm:$0xf]  ;;  %v5258_v53 = vld [vmem:[#allocation5 + $0x9f4] sm:$0xf] }
 0x140   :  { %2996 = vmatpush.bf16.msrb.mxu1 %v4227_v0  ;;  %v5184_v0 = vld [vmem:[#allocation5 + $0x7a4] sm:$0xf]  ;;  %v4259_v8 = vor.u32 %v5168_v61, %v4256_v63  ;;  %v5672_v17 = vpop.f32.mrf.mxu1  ;;  %v5680_v61 = vpop.f32.mrf.mxu3 }
 0x141   :  { %3010 = vmatpush.bf16.msrb.mxu2 %v4291_v2  ;;  %v4320_v2 = vld [vmem:[#allocation5 + $0x7a8] sm:$0xf0] }
 0x142   :  { %3024 = vmatpush.bf16.msrb.mxu3 %v4355_v7  ;;  %v4195_v7 = vor.u32 %v5152_v54, %v4192_v59  ;;  %v4323_v13 = vor.u32 %v5184_v0, %v4320_v2  ;;  %v4616_v54 = vld [vmem:[#allocation5 + $0x9f8] sm:$0xf0]  ;;  %v4427_v0 = vor.u32 %v5210_v29, %v4424_v30  ;;  %v4491_v2 = vor.u32 %v5226_v34, %v4488_v42  ;;  %v5204_v42 = vld [vmem:[#allocation5 + $0x844] sm:$0xf] }
 0x143   :  { %2983 = vmatpush.bf16.msrb.mxu0 %v4155_v1  ;;  %v4184_v1 = vld [vmem:[#allocation5 + $0x698] sm:$0xf0] }
 0x144   :  { %2997 = vmatpush.bf16.msrb.mxu1 %v4219_v39  ;;  %v5166_v39 = vld [vmem:[#allocation5 + $0x714] sm:$0xf]  ;;  %v4187_v44 = vor.u32 %v5150_v12, %v4184_v1  ;;  %v4480_v12 = vld [vmem:[#allocation5 + $0x8e8] sm:$0xf0]  ;;  %v4600_v29 = vld [vmem:[#allocation5 + $0x9d8] sm:$0xf0] }
 0x145   :  { %3011 = vmatpush.bf16.msrb.mxu2 %v4283_v10  ;;  %v4248_v10 = vld [vmem:[#allocation5 + $0x718] sm:$0xf0]  ;;  %v4544_v1 = vld [vmem:[#allocation5 + $0x968] sm:$0xf0] }
 0x146   :  { %3025 = vmatpush.bf16.msrb.mxu3 %v4347_v35  ;;  %v4123_v35 = vor.u32 %v5134_v58, %v4120_v11  ;;  %v4251_v21 = vor.u32 %v5166_v39, %v4248_v10  ;;  %v5678_v59 = vpop.f32.mrf.mxu0  ;;  %v5224_v58 = vld [vmem:[#allocation5 + $0x8e4] sm:$0xf]  ;;  %v4619_v11 = vor.u32 %v5258_v53, %v4616_v54  ;;  %v4608_v10 = vld [vmem:[#allocation5 + $0x9e8] sm:$0xf0] }
 0x147   :  { %2984 = vmatpush.bf16.msrb.mxu0 %v4147_v47  ;;  %v4176_v47 = vld [vmem:[#allocation5 + $0x688] sm:$0xf0]  ;;  %v5256_v39 = vld [vmem:[#allocation5 + $0x9e4] sm:$0xf]  ;;  %v4483_v36 = vor.u32 %v5224_v58, %v4480_v12  ;;  %v4392_v58 = vld [vmem:[#allocation5 + $0x838] sm:$0xf0] }
 0x148   :  { %2998 = vmatpush.bf16.msrb.mxu1 %v4211_v22  ;;  %v5164_v22 = vld [vmem:[#allocation5 + $0x704] sm:$0xf]  ;;  %v5683_v31 = vpop.f32.mrf.mxu1  ;;  %v4528_v54 = vld [vmem:[#allocation5 + $0x948] sm:$0xf0] }
 0x149   :  { %3012 = vmatpush.bf16.msrb.mxu2 %v4275_v23  ;;  %v5674_v23 = vpop.f32.mrf.mxu2  ;;  %v4243_v52 = vor.u32 %v5164_v22, %v4240_v25  ;;  %v4611_v22 = vor.u32 %v5256_v39, %v4608_v10  ;;  %v5238_v25 = vld [vmem:[#allocation5 + $0x954] sm:$0xf]  ;;  %v5236_v53 = vld [vmem:[#allocation5 + $0x944] sm:$0xf]  ;;  %v4520_v10 = vld [vmem:[#allocation5 + $0x938] sm:$0xf0] }
 0x14a   :  { %3026 = vmatpush.bf16.msrb.mxu3 %v4339_v28  ;;  %v4304_v28 = vld [vmem:[#allocation5 + $0x788] sm:$0xf0]  ;;  %v5234_v39 = vld [vmem:[#allocation5 + $0x934] sm:$0xf] }
 0x14b   :  { %2985 = vmatpush.bf16.msrb.mxu0 %v4139_v48  ;;  %v5242_v48 = vld [vmem:[#allocation5 + $0x974] sm:$0xf]  ;;  %v4307_v63 = vor.u32 %v5180_v26, %v4304_v28  ;;  %v4536_v26 = vld [vmem:[#allocation5 + $0x958] sm:$0xf0] }
 0x14c   :  { %2999 = vmatpush.bf16.msrb.mxu1 %v4203_v49  ;;  %v4552_v49 = vld [vmem:[#allocation5 + $0x978] sm:$0xf0]  ;;  %v5254_v28 = vld [vmem:[#allocation5 + $0x9d4] sm:$0xf] }
 0x14d   :  { %3013 = vmatpush.bf16.msrb.mxu2 %v4267_v50  ;;  %v4179_v50 = vor.u32 %v5148_v40, %v4176_v47  ;;  %v5222_v40 = vld [vmem:[#allocation5 + $0x8d4] sm:$0xf] }
 0x14e   :  { %3027 = vmatpush.bf16.msrb.mxu3 %v4331_v57  ;;  %v5676_v57 = vld [vmem:[#allocation7] sm:$0x3]  ;;  %v5690_v30 = vpop.f32.mrf.mxu0 }
 0x14f   :  { %2986 = vmatpush.bf16.msrb.mxu0 %v4131_v5  ;;  %v4555_v5 = vor.u32 %v5242_v48, %v4552_v49  ;;  %v553_v16 = vperm.slane %v5676_v57, 0  ;;  %v4400_v48 = vld [vmem:[#allocation5 + $0x848] sm:$0xf0]  ;;  %v5220_v49 = vld [vmem:[#allocation5 + $0x8c4] sm:$0xf] }
 0x150   :  { %3000 = vmatpush.bf16.msrb.mxu1 %v4195_v7  ;;  %v5208_v7 = vld [vmem:[#allocation5 + $0x864] sm:$0xf] }
 0x151   :  { %3014 = vmatpush.bf16.msrb.mxu2 %v4259_v8  ;;  %v4416_v8 = vld [vmem:[#allocation5 + $0x868] sm:$0xf0]  ;;  %v5685_v47 = vpop.f32.mrf.mxu2 }
 0x152   :  { %3028 = vmatpush.bf16.msrb.mxu3 %v4323_v13  ;;  %v5240_v13 = vld [vmem:[#allocation5 + $0x964] sm:$0xf] }
 0x153   :  { %2987 = vmatpush.bf16.msrb.mxu0 %v4123_v35  ;;  %v4419_v35 = vor.u32 %v5208_v7, %v4416_v8  ;;  %v4547_v20 = vor.u32 %v5240_v13, %v4544_v1  ;;  %v4531_v8 = vor.u32 %v5236_v53, %v4528_v54 }
 0x154   :  { %3001 = vmatpush.bf16.msrb.mxu1 %v4187_v44  ;;  %v5206_v44 = vld [vmem:[#allocation5 + $0x854] sm:$0xf] }
 0x155   :  { %3015 = vmatpush.bf16.msrb.mxu2 %v4251_v21  ;;  %v4408_v21 = vld [vmem:[#allocation5 + $0x858] sm:$0xf0] }
 0x156   :  { %3029 = vmatpush.bf16.msrb.mxu3 %v4315_v24  ;;  %v4472_v24 = vld [vmem:[#allocation5 + $0x8d8] sm:$0xf0]  ;;  %v4411_v34 = vor.u32 %v5206_v44, %v4408_v21  ;;  %v4523_v21 = vor.u32 %v5234_v39, %v4520_v10  ;;  %v4432_v39 = vld [vmem:[#allocation5 + $0x888] sm:$0xf0]  ;;  %v5228_v10 = vld [vmem:[#allocation5 + $0x904] sm:$0xf] }
 0x157   :  { %2988 = vmatpush.bf16.msrb.mxu0 %v4115_v37  ;;  %v4475_v37 = vor.u32 %v5222_v40, %v4472_v24  ;;  %v5200_v40 = vld [vmem:[#allocation5 + $0x824] sm:$0xf] }
 0x158   :  { %3002 = vmatpush.bf16.msrb.mxu1 %v4179_v50  ;;  %v2487_v50 = vadd.f32 %v5650_v33, %v553_v16  ;;  %v5202_v33 = vld [vmem:[#allocation5 + $0x834] sm:$0xf] }
 0x159   :  { %3016 = vmatpush.bf16.msrb.mxu2 %v4243_v52  ;;  %v4464_v52 = vld [vmem:[#allocation5 + $0x8c8] sm:$0xf0]  ;;  %v5700_v13 = vpop.f32.mrf.mxu2 }
 0x15a   :  { %3030 = vmatpush.bf16.msrb.mxu3 %v4307_v63  ;;  %2989 = vmatmul.bf16.vlgmr.msrb.gmra.mxu0 %v5606_v32  ;;  %v4539_v32 = vor.u32 %v5238_v25, %v4536_v26  ;;  %v5252_v63 = vld [vmem:[#allocation5 + $0x9c4] sm:$0xf]  ;;  %v4467_v7 = vor.u32 %v5220_v49, %v4464_v52  ;;  %v2501_v12 = vadd.f32 %v5652_v62, %v2487_v50  ;;  %v5704_v25 = vpop.f32.mrf.mxu0  ;;  %v5214_v52 = vld [vmem:[#allocation5 + $0x894] sm:$0xf] }
 0x15b   :  { %3037 = vmatpush.bf16.msra.mxu0 %v4427_v0  ;;  %3003 = vmatmul.bf16.vlgmr.msrb.gmra.mxu1 %v5610_v41  ;;  %v4603_v41 = vor.u32 %v5254_v28, %v4600_v29  ;;  %v4592_v0 = vld [vmem:[#allocation5 + $0x9c8] sm:$0xf0]  ;;  %v5216_v62 = vld [vmem:[#allocation5 + $0x8a4] sm:$0xf] }
 0x15c   :  { %3051 = vmatpush.bf16.msra.mxu1 %v4491_v2  ;;  %3017 = vmatmul.bf16.vlgmr.msrb.gmra.mxu2 %v5608_v38  ;;  %v5694_v38 = vpop.f32.mrf.mxu3  ;;  %v5697_v2 = vpop.f32.mrf.mxu1  ;;  %v4595_v1 = vor.u32 %v5252_v63, %v4592_v0  ;;  %v2515_v24 = vadd.f32 %v5654_v6, %v2501_v12  ;;  %v5232_v29 = vld [vmem:[#allocation5 + $0x924] sm:$0xf]  ;;  %v5198_v6 = vld [vmem:[#allocation5 + $0x814] sm:$0xf]  ;;  %v4440_v63 = vld [vmem:[#allocation5 + $0x898] sm:$0xf0] }
 0x15d   :  { %3065 = vmatpush.bf16.msra.mxu2 %v4555_v5  ;;  %3031 = vmatmul.bf16.vlgmr.msrb.gmra.mxu3 %v5612_v46  ;;  %v2489_v46 = vadd.f32 %v5660_v18, %v553_v16  ;;  %v4403_v5 = vor.u32 %v5204_v42, %v4400_v48  ;;  %v4456_v18 = vld [vmem:[#allocation5 + $0x8b8] sm:$0xf0]  ;;  %v4576_v42 = vld [vmem:[#allocation5 + $0x9a8] sm:$0xf0]  ;;  %v5230_v0 = vld [vmem:[#allocation5 + $0x914] sm:$0xf] }
 0x15e   :  { %3079 = vmatpush.bf16.msra.mxu3 %v4619_v11  ;;  %v5218_v11 = vld [vmem:[#allocation5 + $0x8b4] sm:$0xf]  ;;  %v2529_v53 = vadd.f32 %v5662_v43, %v2515_v24  ;;  %v4368_v12 = vld [vmem:[#allocation5 + $0x808] sm:$0xf0]  ;;  %v4443_v43 = vor.u32 %v5214_v52, %v4440_v63  ;;  %v5288_v63 = vld [vmem:[#allocation5 + $0xae4] sm:$0xf] }
 0x15f   :  { %3038 = vmatpush.bf16.msra.mxu0 %v4419_v35  ;;  %v2503_v16 = vadd.f32 %v5664_v27, %v2489_v46  ;;  %v5250_v35 = vld [vmem:[#allocation5 + $0x9b4] sm:$0xf]  ;;  %v4459_v44 = vor.u32 %v5218_v11, %v4456_v18  ;;  %v4448_v27 = vld [vmem:[#allocation5 + $0x8a8] sm:$0xf0]  ;;  %v5196_v11 = vld [vmem:[#allocation5 + $0x804] sm:$0xf] }
 0x160   :  { %3052 = vmatpush.bf16.msra.mxu1 %v4483_v36  ;;  %v4584_v36 = vld [vmem:[#allocation5 + $0x9b8] sm:$0xf0]  ;;  %v4451_v49 = vor.u32 %v5216_v62, %v4448_v27  ;;  %v5212_v18 = vld [vmem:[#allocation5 + $0x884] sm:$0xf]  ;;  %v5290_v62 = vld [vmem:[#allocation5 + $0xaf4] sm:$0xf] }
 0x161   :  { %3066 = vmatpush.bf16.msra.mxu2 %v4547_v20  ;;  %v4395_v20 = vor.u32 %v5202_v33, %v4392_v58  ;;  %v4587_v28 = vor.u32 %v5250_v35, %v4584_v36  ;;  %v5713_v33 = vpop.f32.mrf.mxu2  ;;  %v4496_v36 = vld [vmem:[#allocation5 + $0x908] sm:$0xf0]  ;;  %v4744_v27 = vld [vmem:[#allocation5 + $0xaf8] sm:$0xf0] }
 0x162   :  { %3080 = vmatpush.bf16.msra.mxu3 %v4611_v22  ;;  %v4384_v22 = vld [vmem:[#allocation5 + $0x828] sm:$0xf0]  ;;  %v5716_v35 = vpop.f32.mrf.mxu0 }
 0x163   :  { %3039 = vmatpush.bf16.msra.mxu0 %v4411_v34  ;;  %v4512_v34 = vld [vmem:[#allocation5 + $0x928] sm:$0xf0]  ;;  %v4387_v48 = vor.u32 %v5200_v40, %v4384_v22  ;;  %v5274_v40 = vld [vmem:[#allocation5 + $0xa74] sm:$0xf]  ;;  %v4680_v22 = vld [vmem:[#allocation5 + $0xa78] sm:$0xf0] }
 0x164   :  { %3053 = vmatpush.bf16.msra.mxu1 %v4475_v37  ;;  %v5706_v26 = vpop.f32.mrf.mxu3  ;;  %v2517_v37 = vadd.f32 %v5666_v45, %v2503_v16  ;;  %v4515_v50 = vor.u32 %v5232_v29, %v4512_v34  ;;  %v5710_v54 = vpop.f32.mrf.mxu1  ;;  %v4504_v45 = vld [vmem:[#allocation5 + $0x918] sm:$0xf0]  ;;  %v2543_v16 = vadd.f32 %v5670_v4, %v2529_v53  ;;  %v5306_v29 = vld [vmem:[#allocation5 + $0xb74] sm:$0xf]  ;;  %v4435_v4 = vor.u32 %v5212_v18, %v4432_v39  ;;  %v5272_v53 = vld [vmem:[#allocation5 + $0xa64] sm:$0xf] }
 0x165   :  { %3067 = vmatpush.bf16.msra.mxu2 %v4539_v32  ;;  %v5248_v32 = vld [vmem:[#allocation5 + $0x9a4] sm:$0xf]  ;;  %v4808_v34 = vld [vmem:[#allocation5 + $0xb78] sm:$0xf0]  ;;  %v5270_v18 = vld [vmem:[#allocation5 + $0xa54] sm:$0xf] }
 0x166   :  { %3081 = vmatpush.bf16.msra.mxu3 %v4603_v41  ;;  %v4376_v41 = vld [vmem:[#allocation5 + $0x818] sm:$0xf0]  ;;  %v4579_v46 = vor.u32 %v5248_v32, %v4576_v42  ;;  %v5322_v32 = vld [vmem:[#allocation5 + $0xbf4] sm:$0xf]  ;;  %v4811_v52 = vor.u32 %v5306_v29, %v4808_v34  ;;  %v5268_v29 = vld [vmem:[#allocation5 + $0xa44] sm:$0xf] }
 0x167   :  { %3040 = vmatpush.bf16.msra.mxu0 %v4403_v5  ;;  %v2531_v5 = vadd.f32 %v5668_v3, %v2517_v37  ;;  %v4379_v58 = vor.u32 %v5198_v6, %v4376_v41  ;;  %v4499_v37 = vor.u32 %v5228_v10, %v4496_v36  ;;  %v4872_v42 = vld [vmem:[#allocation5 + $0xbf8] sm:$0xf0]  ;;  %v4747_v41 = vor.u32 %v5290_v62, %v4744_v27  ;;  %v5286_v10 = vld [vmem:[#allocation5 + $0xad4] sm:$0xf]  ;;  %v5284_v34 = vld [vmem:[#allocation5 + $0xac4] sm:$0xf] }
 0x168   :  { %3054 = vmatpush.bf16.msra.mxu1 %v4467_v7  ;;  %v5246_v7 = vld [vmem:[#allocation5 + $0x994] sm:$0xf]  ;;  %v4664_v39 = vld [vmem:[#allocation5 + $0xa58] sm:$0xf0] }
 0x169   :  { %3068 = vmatpush.bf16.msra.mxu2 %v4531_v8  ;;  %v4568_v8 = vld [vmem:[#allocation5 + $0x998] sm:$0xf0]  ;;  %v4667_v62 = vor.u32 %v5270_v18, %v4664_v39  ;;  %v5280_v18 = vld [vmem:[#allocation5 + $0xaa4] sm:$0xf] }
 0x16a   :  { %3082 = vmatpush.bf16.msra.mxu3 %v4595_v1  ;;  %v4507_v1 = vor.u32 %v5230_v0, %v4504_v45  ;;  %v4571_v3 = vor.u32 %v5246_v7, %v4568_v8  ;;  %v5725_v0 = vpop.f32.mrf.mxu2  ;;  %v4875_v45 = vor.u32 %v5322_v32, %v4872_v42  ;;  %v5304_v7 = vld [vmem:[#allocation5 + $0xb64] sm:$0xf]  ;;  %v4800_v8 = vld [vmem:[#allocation5 + $0xb68] sm:$0xf0]  ;;  %v4728_v36 = vld [vmem:[#allocation5 + $0xad8] sm:$0xf0] }
 0x16b   :  { %3041 = vmatpush.bf16.msra.mxu0 %v4395_v20  ;;  %v5244_v20 = vld [vmem:[#allocation5 + $0x984] sm:$0xf]  ;;  %v4848_v42 = vld [vmem:[#allocation5 + $0xbc8] sm:$0xf0] }
 0x16c   :  { %3055 = vmatpush.bf16.msra.mxu1 %v4459_v44  ;;  %v4560_v44 = vld [vmem:[#allocation5 + $0x988] sm:$0xf0]  ;;  %v5719_v24 = vpop.f32.mrf.mxu3  ;;  %v5316_v32 = vld [vmem:[#allocation5 + $0xbc4] sm:$0xf] }
 0x16d   :  { %3069 = vmatpush.bf16.msra.mxu2 %v4523_v21  ;;  %v2545_v21 = vadd.f32 %v5678_v59, %v2531_v5  ;;  %v4563_v59 = vor.u32 %v5244_v20, %v4560_v44  ;;  %v4736_v5 = vld [vmem:[#allocation5 + $0xae8] sm:$0xf0]  ;;  %v4792_v20 = vld [vmem:[#allocation5 + $0xb58] sm:$0xf0] }
 0x16e   :  { %3083 = vmatpush.bf16.msra.mxu3 %v4587_v28  ;;  %v4371_v28 = vor.u32 %v5196_v11, %v4368_v12  ;;  %v4864_v11 = vld [vmem:[#allocation5 + $0xbe8] sm:$0xf0] }
 0x16f   :  { %3042 = vmatpush.bf16.msra.mxu0 %v4387_v48  ;;  %v2557_v48 = vadd.f32 %v5672_v17, %v2543_v16  ;;  %v2559_v6 = vadd.f32 %v5683_v31, %v2545_v21  ;;  %v5729_v16 = vpop.f32.mrf.mxu0  ;;  %v5318_v21 = vld [vmem:[#allocation5 + $0xbd4] sm:$0xf] }
 0x170   :  { %3056 = vmatpush.bf16.msra.mxu1 %v4451_v49  ;;  %v5722_v49 = vpop.f32.mrf.mxu1 }
 0x171   :  { %3070 = vmatpush.bf16.msra.mxu2 %v4515_v50  ;;  %v4683_v50 = vor.u32 %v5274_v40, %v4680_v22  ;;  %v2573_v17 = vadd.f32 %v5685_v47, %v2559_v6  ;;  %v2571_v31 = vadd.f32 %v5674_v23, %v2557_v48  ;;  %v5302_v23 = vld [vmem:[#allocation5 + $0xb54] sm:$0xf]  ;;  %v4856_v40 = vld [vmem:[#allocation5 + $0xbd8] sm:$0xf0] }
 0x172   :  { %3084 = vmatpush.bf16.msra.mxu3 %v4579_v46  ;;  %v4672_v46 = vld [vmem:[#allocation5 + $0xa68] sm:$0xf0]  ;;  %v4795_v27 = vor.u32 %v5302_v23, %v4792_v20  ;;  %v5743_v48 = vpop.f32.mrf.mxu2  ;;  %v5312_v23 = vld [vmem:[#allocation5 + $0xba4] sm:$0xf] }
 0x173   :  { %3043 = vmatpush.bf16.msra.mxu0 %v4379_v58  ;;  %v5320_v58 = vld [vmem:[#allocation5 + $0xbe4] sm:$0xf]  ;;  %v4675_v12 = vor.u32 %v5272_v53, %v4672_v46  ;;  %v2587_v44 = vadd.f32 %v5694_v38, %v2573_v17  ;;  %v2585_v22 = vadd.f32 %v5680_v61, %v2571_v31  ;;  %v4656_v38 = vld [vmem:[#allocation5 + $0xa48] sm:$0xf0]  ;;  %v5314_v17 = vld [vmem:[#allocation5 + $0xbb4] sm:$0xf] }
 0x174   :  { %3057 = vmatpush.bf16.msra.mxu1 %v4443_v43  ;;  %v4739_v43 = vor.u32 %v5288_v63, %v4736_v5  ;;  %v4867_v47 = vor.u32 %v5320_v58, %v4864_v11  ;;  %v4720_v61 = vld [vmem:[#allocation5 + $0xac8] sm:$0xf0]  ;;  %v4851_v63 = vor.u32 %v5316_v32, %v4848_v42  ;;  %v5298_v5 = vld [vmem:[#allocation5 + $0xb34] sm:$0xf] }
 0x175   :  { %3071 = vmatpush.bf16.msra.mxu2 %v4507_v1  ;;  %v4803_v1 = vor.u32 %v5304_v7, %v4800_v8  ;;  %v4776_v7 = vld [vmem:[#allocation5 + $0xb38] sm:$0xf0]  ;;  %v4832_v20 = vld [vmem:[#allocation5 + $0xba8] sm:$0xf0] }
 0x176   :  { %3085 = vmatpush.bf16.msra.mxu3 %v4571_v3  ;;  %v5731_v3 = vpop.f32.mrf.mxu3 }
 0x177   :  { %3044 = vmatpush.bf16.msra.mxu0 %v4371_v28  ;;  %v4731_v28 = vor.u32 %v5286_v10, %v4728_v36  ;;  %v5747_v46 = vpop.f32.mrf.mxu0  ;;  %v4768_v36 = vld [vmem:[#allocation5 + $0xb28] sm:$0xf0] }
 0x178   :  { %3058 = vmatpush.bf16.msra.mxu1 %v4435_v4  ;;  %v4859_v4 = vor.u32 %v5318_v21, %v4856_v40 }
 0x179   :  { %3072 = vmatpush.bf16.msra.mxu2 %v4499_v37  ;;  %v5300_v37 = vld [vmem:[#allocation5 + $0xb44] sm:$0xf] }
 0x17a   :  { %3086 = vmatpush.bf16.msra.mxu3 %v4563_v59  ;;  %3045 = vmatmul.bf16.vlgmr.msra.gmra.mxu0 %v5618_v51  ;;  %v2601_v51 = vadd.f32 %v5704_v25, %v2587_v44  ;;  %v4659_v25 = vor.u32 %v5268_v29, %v4656_v38  ;;  %v5757_v21 = vpop.f32.mrf.mxu2  ;;  %v5278_v29 = vld [vmem:[#allocation5 + $0xa94] sm:$0xf]  ;;  %v4835_v38 = vor.u32 %v5312_v23, %v4832_v20 }
 0x17b   :  { %3093 = vmatpush.bf16.msrb.mxu0 %v4683_v50  ;;  %3059 = vmatmul.bf16.vlgmr.msra.gmra.mxu1 %v5622_v56  ;;  %v5741_v56 = vpop.f32.mrf.mxu1  ;;  %v4723_v50 = vor.u32 %v5284_v34, %v4720_v61  ;;  %v5294_v34 = vld [vmem:[#allocation5 + $0xb14] sm:$0xf]  ;;  %v4824_v61 = vld [vmem:[#allocation5 + $0xb98] sm:$0xf0] }
 0x17c   :  { %3107 = vmatpush.bf16.msrb.mxu1 %v4747_v41  ;;  %3073 = vmatmul.bf16.vlgmr.msra.gmra.mxu2 %v5620_v55  ;;  %v2599_v55 = vadd.f32 %v5690_v30, %v2585_v22  ;;  %v2615_v59 = vadd.f32 %v5710_v54, %v2601_v51  ;;  %v5266_v30 = vld [vmem:[#allocation5 + $0xa34] sm:$0xf]  ;;  %v4648_v41 = vld [vmem:[#allocation5 + $0xa38] sm:$0xf0] }
 0x17d   :  { %3121 = vmatpush.bf16.msrb.mxu2 %v4811_v52  ;;  %3087 = vmatmul.bf16.vlgmr.msra.gmra.mxu3 %v5624_v60  ;;  %v4784_v60 = vld [vmem:[#allocation5 + $0xb48] sm:$0xf0]  ;;  %v5282_v52 = vld [vmem:[#allocation5 + $0xab4] sm:$0xf]  ;;  %v4840_v54 = vld [vmem:[#allocation5 + $0xbb8] sm:$0xf0]  ;;  %v4651_v31 = vor.u32 %v5266_v30, %v4648_v41 }
 0x17e   :  { %3135 = vmatpush.bf16.msrb.mxu3 %v4875_v45  ;;  %v4787_v6 = vor.u32 %v5300_v37, %v4784_v60  ;;  %v2613_v53 = vadd.f32 %v5697_v2, %v2599_v55  ;;  %v4712_v45 = vld [vmem:[#allocation5 + $0xab8] sm:$0xf0]  ;;  %v2629_v8 = vadd.f32 %v5713_v33, %v2615_v59  ;;  %v5751_v11 = vpop.f32.mrf.mxu3  ;;  %v4843_v10 = vor.u32 %v5314_v17, %v4840_v54  ;;  %v4704_v33 = vld [vmem:[#allocation5 + $0xaa8] sm:$0xf0]  ;;  %v5260_v59 = vld [vmem:[#allocation5 + $0xa04] sm:$0xf] }
 0x17f   :  { %3094 = vmatpush.bf16.msrb.mxu0 %v4675_v12  ;;  %v4715_v2 = vor.u32 %v5282_v52, %v4712_v45  ;;  %v4779_v12 = vor.u32 %v5298_v5, %v4776_v7  ;;  %v4760_v55 = vld [vmem:[#allocation5 + $0xb18] sm:$0xf0]  ;;  %v2712_v37 = vpop.f32.mrf.mxu0  ;;  %v4688_v41 = vld [vmem:[#allocation5 + $0xa88] sm:$0xf0]  ;;  %v5292_v52 = vld [vmem:[#allocation5 + $0xb04] sm:$0xf] }
 0x180   :  { %3108 = vmatpush.bf16.msrb.mxu1 %v4739_v43  ;;  %v2627_v58 = vadd.f32 %v5700_v13, %v2613_v53  ;;  %v5264_v43 = vld [vmem:[#allocation5 + $0xa24] sm:$0xf]  ;;  %v2643_v13 = vadd.f32 %v5719_v24, %v2629_v8  ;;  %v4696_v24 = vld [vmem:[#allocation5 + $0xa98] sm:$0xf0]  ;;  %v4816_v5 = vld [vmem:[#allocation5 + $0xb88] sm:$0xf0] }
 0x181   :  { %3122 = vmatpush.bf16.msrb.mxu2 %v4803_v1  ;;  %v4640_v1 = vld [vmem:[#allocation5 + $0xa28] sm:$0xf0]  ;;  %v4699_v42 = vor.u32 %v5278_v29, %v4696_v24  ;;  %v5308_v45 = vld [vmem:[#allocation5 + $0xb84] sm:$0xf] }
 0x182   :  { %3136 = vmatpush.bf16.msrb.mxu3 %v4867_v47  ;;  %v5296_v47 = vld [vmem:[#allocation5 + $0xb24] sm:$0xf]  ;;  %v2641_v44 = vadd.f32 %v5706_v26, %v2627_v58  ;;  %v4643_v40 = vor.u32 %v5264_v43, %v4640_v1  ;;  %v2657_v22 = vadd.f32 %v5729_v16, %v2643_v13  ;;  %v2740_v58 = vpop.f32.mrf.mxu2 }
 0x183   :  { %3095 = vmatpush.bf16.msrb.mxu0 %v4667_v62  ;;  %v5753_v39 = vpop.f32.mrf.mxu1  ;;  %v4707_v62 = vor.u32 %v5280_v18, %v4704_v33  ;;  %v4771_v51 = vor.u32 %v5296_v47, %v4768_v36  ;;  %v5329_v33 = vld [vmem:[#allocation8 + $0x28] sm:$0xff] }
 0x184   :  { %3109 = vmatpush.bf16.msrb.mxu1 %v4731_v28  ;;  %v5262_v28 = vld [vmem:[#allocation5 + $0xa14] sm:$0xf]  ;;  %v2655_v26 = vadd.f32 %v5716_v35, %v2641_v44  ;;  %v2671_v32 = vadd.f32 %v5741_v56, %v2657_v22  ;;  %v4752_v35 = vld [vmem:[#allocation5 + $0xb08] sm:$0xf0] }
 0x185   :  { %3123 = vmatpush.bf16.msrb.mxu2 %v4795_v27  ;;  %v4632_v27 = vld [vmem:[#allocation5 + $0xa18] sm:$0xf0]  ;;  %v4755_v54 = vor.u32 %v5292_v52, %v4752_v35 }
 0x186   :  { %3137 = vmatpush.bf16.msrb.mxu3 %v4859_v4  ;;  %v5310_v4 = vld [vmem:[#allocation5 + $0xb94] sm:$0xf]  ;;  %v2752_v60 = vpop.f32.mrf.mxu3  ;;  %v4635_v16 = vor.u32 %v5262_v28, %v4632_v27  ;;  %v2669_v53 = vadd.f32 %v5722_v49, %v2655_v26 }
 0x187   :  { %3096 = vmatpush.bf16.msrb.mxu0 %v4659_v25  ;;  %v4763_v25 = vor.u32 %v5294_v34, %v4760_v55  ;;  %v4827_v30 = vor.u32 %v5310_v4, %v4824_v61  ;;  %v2766_v49 = vpop.f32.mrf.mxu0  ;;  %v5324_v34 = vld [vmem:[#allocation8] sm:$0xff] }
 0x188   :  { %3110 = vmatpush.bf16.msrb.mxu1 %v4723_v50  ;;  %v4624_v50 = vld [vmem:[#allocation5 + $0xa08] sm:$0xf0]  ;;  %v2683_v8 = vadd.f32 %v5725_v0, %v2669_v53  ;;  %v5330_v0 = vld [vmem:[#allocation8 + $0x30] sm:$0xff] }
 0x189   :  { %3124 = vmatpush.bf16.msrb.mxu2 %v4787_v6  ;;  %v5276_v6 = vld [vmem:[#allocation5 + $0xa84] sm:$0xf]  ;;  %v4627_v56 = vor.u32 %v5260_v59, %v4624_v50 }
 0x18a   :  { %3138 = vmatpush.bf16.msrb.mxu3 %v4851_v63  ;;  %v2685_v63 = vadd.f32 %v5743_v48, %v2671_v32  ;;  %v4691_v17 = vor.u32 %v5276_v6, %v4688_v41  ;;  %v2697_v48 = vadd.f32 %v5731_v3, %v2683_v8  ;;  %v2794_v3 = vpop.f32.mrf.mxu2  ;;  %v554_v41 = vperm.slane %v5676_v57, 1 }
 0x18b   :  { %3097 = vmatpush.bf16.msrb.mxu0 %v4651_v31  ;;  %v2726_v7 = vpop.f32.mrf.mxu1  ;;  %v4819_v31 = vor.u32 %v5308_v45, %v4816_v5 }
 0x18c   :  { %3111 = vmatpush.bf16.msrb.mxu1 %v4715_v2  ;;  %v5331_v2 = vld [vmem:[#allocation8 + $0x38] sm:$0xff]  ;;  %v2711_v18 = vadd.f32 %v5747_v46, %v2697_v48 }
 0x18d   :  { %3125 = vmatpush.bf16.msrb.mxu2 %v4779_v12  ;;  %v2699_v12 = vadd.f32 %v5751_v11, %v2685_v63 }
 0x18e   :  { %3139 = vmatpush.bf16.msrb.mxu3 %v4843_v10  ;;  %v2754_v1 = vpop.f32.mrf.mxu3  ;;  %v2725_v47 = vadd.f32 %v5753_v39, %v2711_v18  ;;  %v5338_v18 = vld [vmem:[#allocation8 + $0x70] sm:$0xff] }
 0x18f   :  { %3098 = vmatpush.bf16.msrb.mxu0 %v4643_v40  ;;  %v2713_v43 = vadd.f32 %v2712_v37, %v2699_v12  ;;  %v2768_v23 = vpop.f32.mrf.mxu0 }
 0x190   :  { %3112 = vmatpush.bf16.msrb.mxu1 %v4707_v62  ;;  %v2739_v13 = vadd.f32 %v5757_v21, %v2725_v47  ;;  %v5325_v21 = vld [vmem:[#allocation8 + $0x8] sm:$0xff] }
 0x191   :  { %3126 = vmatpush.bf16.msrb.mxu2 %v4771_v51  ;;  %v2727_v11 = vadd.f32 %v2726_v7, %v2713_v43  ;;  %v5326_v51 = vld [vmem:[#allocation8 + $0x10] sm:$0xff] }
 0x192   :  { %3140 = vmatpush.bf16.msrb.mxu3 %v4835_v38  ;;  %v2753_v44 = vadd.f32 %v2752_v60, %v2739_v13 }
 0x193   :  { %3099 = vmatpush.bf16.msrb.mxu0 %v4635_v16  ;;  %v2780_v10 = vpop.f32.mrf.mxu1  ;;  %v2741_v36 = vadd.f32 %v2740_v58, %v2727_v11 }
 0x194   :  { %3113 = vmatpush.bf16.msrb.mxu1 %v4699_v42  ;;  %v2767_v22 = vadd.f32 %v2766_v49, %v2753_v44 }
 0x195   :  { %3127 = vmatpush.bf16.msrb.mxu2 %v4763_v25  ;;  %v2755_v20 = vadd.f32 %v2754_v1, %v2741_v36  ;;  %v5339_v1 = vld [vmem:[#allocation8 + $0x78] sm:$0xff] }
 0x196   :  { %3141 = vmatpush.bf16.msrb.mxu3 %v4827_v30  ;;  %v2808_v46 = vpop.f32.mrf.mxu3  ;;  %v2781_v28 = vadd.f32 %v2780_v10, %v2767_v22 }
 0x197   :  { %3100 = vmatpush.bf16.msrb.mxu0 %v4627_v56  ;;  %v2822_v61 = vpop.f32.mrf.mxu0 }
 0x198   :  { %3114 = vmatpush.bf16.msrb.mxu1 %v4691_v17  ;;  %v2795_v29 = vadd.f32 %v2794_v3, %v2781_v28  ;;  %v2823_v53 = vadd.f32 %v2822_v61, %v554_v41 }
 0x199   :  { %3128 = vmatpush.bf16.msrb.mxu2 %v4755_v54 }
 0x19a   :  { %3142 = vmatpush.bf16.msrb.mxu3 %v4819_v31  ;;  %3101 = vmatmul.bf16.vlgmr.msrb.gmra.mxu0 %v5630_v9  ;;  %v5328_v9 = vld [vmem:[#allocation8 + $0x20] sm:$0xff]  ;;  %v2809_v24 = vadd.f32 %v2808_v46, %v2795_v29 }
 0x19b   :  { %3287 = vmatpush.bf16.msra.mxu0 %v5331_v2  ;;  %3115 = vmatmul.bf16.vlgmr.msrb.gmra.mxu1 %v5634_v15  ;;  %v2769_v15 = vadd.f32 %v2768_v23, %v2755_v20  ;;  %v2782_v40 = vpop.f32.mrf.mxu1  ;;  %v5337_v20 = vld [vmem:[#allocation8 + $0x68] sm:$0xff] }
 0x19c   :  { %3129 = vmatmul.bf16.vlgmr.msrb.gmra.mxu2 %v5632_v14  ;;  %v5327_v14 = vld [vmem:[#allocation8 + $0x18] sm:$0xff]  ;;  %v3149_v26 = vmax.f32 %v2809_v24, 0.0  ;;  %3301 = vmatpush.bf16.msra.mxu1 %v5339_v1  ;;  %v5334_v24 = vld [vmem:[#allocation8 + $0x50] sm:$0xff] }
 0x19d   :  { %3143 = vmatmul.bf16.vlgmr.msrb.gmra.mxu3 %v5636_v19  ;;  %v2796_v19 = vpop.f32.mrf.mxu2  ;;  %v2783_v62 = vadd.f32 %v2782_v40, %v2769_v15  ;;  %v5336_v40 = vld [vmem:[#allocation8 + $0x60] sm:$0xff] }
 0x19e   :  { %v2810_v27 = vpop.f32.mrf.mxu3 }
 0x19f   :  { %3288 = vmatpush.bf16.msra.mxu0 %v5330_v0  ;;  %v2797_v39 = vadd.f32 %v2796_v19, %v2783_v62  ;;  %v2824_v32 = vpop.f32.mrf.mxu0 }
 0x1a0   :  { %v2825_v7 = vadd.f32 %v2824_v32, %v554_v41  ;;  %3302 = vmatpush.bf16.msra.mxu1 %v5338_v18 }
 0x1a1   :  { %v2811_v38 = vadd.f32 %v2810_v27, %v2797_v39  ;;  %v5335_v39 = vld [vmem:[#allocation8 + $0x58] sm:$0xff] }
 0x1a3   :  { %3289 = vmatpush.bf16.msra.mxu0 %v5329_v33  ;;  %v3151_v55 = vmax.f32 %v2811_v38, 0.0  ;;  %v2836_v37 = vpop.f32.mrf.mxu1 }
 0x1a4   :  { %v2837_v45 = vadd.f32 %v2836_v37, %v2823_v53  ;;  %3303 = vmatpush.bf16.msra.mxu1 %v5337_v20  ;;  %v5333_v37 = vld [vmem:[#allocation8 + $0x48] sm:$0xff] }
 0x1a5   :  { %v3153_v4 = vpack.c.bf16 %v3151_v55, %v3149_v26  ;;  %v2850_v60 = vpop.f32.mrf.mxu2 }
 0x1a6   :  { %v2864_v16 = vpop.f32.mrf.mxu3  ;;  %v2851_v17 = vadd.f32 %v2850_v60, %v2837_v45 }
 0x1a7   :  { %3290 = vmatpush.bf16.msra.mxu0 %v5328_v9  ;;  %v2878_v50 = vpop.f32.mrf.mxu0 }
 0x1a8   :  { %v2865_v31 = vadd.f32 %v2864_v16, %v2851_v17  ;;  %3304 = vmatpush.bf16.msra.mxu1 %v5336_v40 }
 0x1aa   :  { %v2879_v48 = vadd.f32 %v2878_v50, %v2865_v31 }
 0x1ab   :  { %3291 = vmatpush.bf16.msra.mxu0 %v5327_v14  ;;  %v2838_v42 = vpop.f32.mrf.mxu1 }
 0x1ac   :  { %v2839_v58 = vadd.f32 %v2838_v42, %v2825_v7  ;;  %3305 = vmatpush.bf16.msra.mxu1 %v5335_v39 }
 0x1ad   :  { %v2852_v25 = vpop.f32.mrf.mxu2 }
 0x1ae   :  { %v2866_v59 = vpop.f32.mrf.mxu3  ;;  %v2853_v12 = vadd.f32 %v2852_v25, %v2839_v58  ;;  %v5332_v25 = vld [vmem:[#allocation8 + $0x40] sm:$0xff] }
 0x1af   :  { %3292 = vmatpush.bf16.msra.mxu0 %v5326_v51  ;;  %v2880_v35 = vpop.f32.mrf.mxu0 }
 0x1b0   :  { %v2867_v57 = vadd.f32 %v2866_v59, %v2853_v12  ;;  %3306 = vmatpush.bf16.msra.mxu1 %v5334_v24 }
 0x1b2   :  { %v2881_v11 = vadd.f32 %v2880_v35, %v2867_v57 }
 0x1b3   :  { %3293 = vmatpush.bf16.msra.mxu0 %v5325_v21  ;;  %v2892_v6 = vpop.f32.mrf.mxu1 }
 0x1b4   :  { %v2893_v10 = vadd.f32 %v2892_v6, %v2879_v48  ;;  %3307 = vmatpush.bf16.msra.mxu1 %v5333_v37 }
 0x1b5   :  { %v2906_v30 = vpop.f32.mrf.mxu2 }
 0x1b6   :  { %v2920_v52 = vpop.f32.mrf.mxu3  ;;  %v2907_v33 = vadd.f32 %v2906_v30, %v2893_v10 }
 0x1b7   :  { %3294 = vmatpush.bf16.msra.mxu0 %v5324_v34  ;;  %v2934_v8 = vpop.f32.mrf.mxu0 }
 0x1b8   :  { %v2921_v46 = vadd.f32 %v2920_v52, %v2907_v33  ;;  %3308 = vmatpush.bf16.msra.mxu1 %v5332_v25 }
 0x1ba   :  { %3295 = vmatmul.bf16.vlgmr.msra.gmra.mxu0 %v3153_v4  ;;  %v2935_v44 = vadd.f32 %v2934_v8, %v2921_v46 }
 0x1bb   :  { %v2894_v63 = vpop.f32.mrf.mxu1 }
 0x1bc   :  { %v2895_v13 = vadd.f32 %v2894_v63, %v2881_v11 }
 0x1bd   :  { %v2908_v5 = vpop.f32.mrf.mxu2 }
 0x1be   :  { %v2922_v56 = vpop.f32.mrf.mxu3  ;;  %v2909_v9 = vadd.f32 %v2908_v5, %v2895_v13 }
 0x1bf   :  { %v2936_v43 = vpop.f32.mrf.mxu0 }
 0x1c0   :  { %v2923_v14 = vadd.f32 %v2922_v56, %v2909_v9 }
 0x1c2   :  { %v2937_v62 = vadd.f32 %v2936_v43, %v2923_v14 }
 0x1c3   :  { %v2948_v54 = vpop.f32.mrf.mxu1 }
 0x1c4   :  { %v2949_v19 = vadd.f32 %v2948_v54, %v2935_v44 }
 0x1c5   :  { %v2962_v2 = vpop.f32.mrf.mxu2 }
 0x1c6   :  { %v2976_v49 = vpop.f32.mrf.mxu3  ;;  %v2963_v28 = vadd.f32 %v2962_v2, %v2949_v19 }
 0x1c8   :  { %v2977_v21 = vadd.f32 %v2976_v49, %v2963_v28 }
 0x1cb   :  { %v2950_v0 = vpop.f32.mrf.mxu1 }
 0x1cc   :  { %v2951_v29 = vadd.f32 %v2950_v0, %v2937_v62 }
 0x1cd   :  { %v2964_v3 = vpop.f32.mrf.mxu2 }
 0x1ce   :  { %v2978_v47 = vpop.f32.mrf.mxu3  ;;  %v2965_v38 = vadd.f32 %v2964_v3, %v2951_v29 }
 0x1d0   :  { %v2979_v61 = vadd.f32 %v2978_v47, %v2965_v38 }
 0x1d7   :  { %v2990_v36 = vpop.f32.mrf.mxu0 }
 0x1d8   :  { %v3004_v23 = vpop.f32.mrf.mxu1  ;;  %v2991_v55 = vadd.f32 %v2990_v36, %v2977_v21 }
 0x1da   :  { %v3005_v16 = vadd.f32 %v3004_v23, %v2991_v55 }
 0x1df   :  { %v3018_v15 = vpop.f32.mrf.mxu2  ;;  %v2992_v51 = vpop.f32.mrf.mxu0 }
 0x1e0   :  { %v3032_v22 = vpop.f32.mrf.mxu3  ;;  %v3006_v27 = vpop.f32.mrf.mxu1  ;;  %v2993_v32 = vadd.f32 %v2992_v51, %v2979_v61  ;;  %v3019_v42 = vadd.f32 %v3018_v15, %v3005_v16  ;;  %v5357_v15 = vld [vmem:[#allocation10] ss:$0 sm:$0xff] }
 0x1e2   :  { %v3007_v50 = vadd.f32 %v3006_v27, %v2993_v32  ;;  %v3033_v30 = vadd.f32 %v3032_v22, %v3019_v42 }
 0x1e7   :  { %v3020_v34 = vpop.f32.mrf.mxu2 }
 0x1e8   :  { %v3034_v26 = vpop.f32.mrf.mxu3  ;;  %v3021_v41 = vadd.f32 %v3020_v34, %v3007_v50 }
 0x1ea   :  { %v3035_v63 = vadd.f32 %v3034_v26, %v3021_v41 }
 0x1f7   :  { %v3046_v4 = vpop.f32.mrf.mxu0 }
 0x1f8   :  { %v3060_v60 = vpop.f32.mrf.mxu1  ;;  %v3047_v35 = vadd.f32 %v3046_v4, %v3033_v30 }
 0x1fa   :  { %v3061_v45 = vadd.f32 %v3060_v60, %v3047_v35 }
 0x1ff   :  { %v3074_v59 = vpop.f32.mrf.mxu2  ;;  %v3048_v52 = vpop.f32.mrf.mxu0 }
 0x200   :  { %v3088_v6 = vpop.f32.mrf.mxu3  ;;  %v3062_v53 = vpop.f32.mrf.mxu1  ;;  %v3049_v5 = vadd.f32 %v3048_v52, %v3035_v63  ;;  %v3075_v56 = vadd.f32 %v3074_v59, %v3061_v45 }
 0x202   :  { %v3063_v54 = vadd.f32 %v3062_v53, %v3049_v5  ;;  %v3089_v31 = vadd.f32 %v3088_v6, %v3075_v56 }
 0x207   :  { %v3076_v7 = vpop.f32.mrf.mxu2 }
 0x208   :  { %v3090_v8 = vpop.f32.mrf.mxu3  ;;  %v3077_v2 = vadd.f32 %v3076_v7, %v3063_v54 }
 0x20a   :  { %v3091_v48 = vadd.f32 %v3090_v8, %v3077_v2 }
 0x217   :  { %v3102_v17 = vpop.f32.mrf.mxu0 }
 0x218   :  { %v3116_v58 = vpop.f32.mrf.mxu1  ;;  %v3103_v12 = vadd.f32 %v3102_v17, %v3089_v31 }
 0x21a   :  { %v3117_v57 = vadd.f32 %v3116_v58, %v3103_v12 }
 0x21f   :  { %v3130_v49 = vpop.f32.mrf.mxu2  ;;  %v3104_v1 = vpop.f32.mrf.mxu0 }
 0x220   :  { %v3144_v43 = vpop.f32.mrf.mxu3  ;;  %v3105_v0 = vadd.f32 %v3104_v1, %v3091_v48  ;;  %v3131_v18 = vadd.f32 %v3130_v49, %v3117_v57  ;;  %v3118_v10 = vpop.f32.mrf.mxu1 }
 0x222   :  { %v3119_v11 = vadd.f32 %v3118_v10, %v3105_v0  ;;  %v3145_v33 = vadd.f32 %v3144_v43, %v3131_v18 }
 0x224   :  { %v3150_v23 = vmax.f32 %v3145_v33, 0.0 }
 0x227   :  { %v3132_v3 = vpop.f32.mrf.mxu2 }
 0x228   :  { %v3133_v47 = vadd.f32 %v3132_v3, %v3119_v11  ;;  %v3146_v36 = vpop.f32.mrf.mxu3 }
 0x22a   :  { %v3147_v13 = vadd.f32 %v3146_v36, %v3133_v47 }
 0x22c   :  { %v3152_v46 = vmax.f32 %v3147_v13, 0.0 }
 0x22e   :  { %v3154_v9 = vpack.c.bf16 %v3152_v46, %v3150_v23 }
 0x230   :  { %3309 = vmatmul.bf16.vlgmr.msra.gmra.mxu1 %v3154_v9 }
 0x237   :  { %v3296_v20 = vpop.f32.mrf.mxu0 }
 0x238   :  { %v3297_v14 = vadd.f32 %v5357_v15, %v3296_v20 }
 0x23f   :  { %v3298_v40 = vpop.f32.mrf.mxu0 }
 0x240   :  { %v3299_v22 = vadd.f32 %v5357_v15, %v3298_v40 }
 0x2ad   :  { %v3310_v44 = vpop.f32.mrf.mxu1 }
 0x2ae   :  { %v3311_v62 = vadd.f32 %v3310_v44, %v3297_v14 }
 0x2b5   :  { %v3312_v19 = vpop.f32.mrf.mxu1 }
 0x2b6   :  { %v3313_v51 = vadd.f32 %v3312_v19, %v3299_v22 }
 0x2b8   :  { %v5343_v28 = vpack.c.bf16 %v3313_v51, %v3311_v62 }
 0x2ba   :  { %5344 = vst [vmem:[#allocation11] sm:$0xff] %v5343_v28  }
 0x2bb   :  { %3331 = dma.vmem_to_hbm [thread:$0]  %s3324_s4, 128, %s3326_s23, [#allocation4], %s5514_s30, %s5514_s30, %s5515_s6  }
 0x2bc   :  { %5508 = dma.done.wait [#allocation4], 128  }
 0x2bd   :  { %5509 = vsyncadd [#allocation4], 4294967168 }
 0x2be   :  { %3336 = vsyncpa [#allocation3], 1 }
 0x2bf   :  { %3337 = vsyncpa [#allocation6], 1 }
 0x2c0   :  { %3338 = vsyncpa [#allocation9], 1 }
 0x2c1   :  { %3339 = vsyncpa [#allocation4], 1 }

</bundles_post_ra>
